<compile_context>
chip_gen: v7x
topology: tpu7x:2x2x1
jax: 0.10.0
libtpu: 0.0.40
codegen_flags: <defaults>
</compile_context>

<pallas_src>
import functools

import jax
import jax.numpy as jnp
from jax.experimental import pallas as pl
from jax.experimental.pallas import tpu as pltpu


def _leaky(x):
    return jnp.where(x >= 0, x, 0.2 * x)


def _default_tile(n):
    """Largest node tile that divides n; generation-aware VMEM budget."""
    try:
        kind = jax.devices()[0].device_kind.lower()
    except Exception:  # pragma: no cover - defensive
        kind = ""
    # v7x: 64 MiB physical VMEM -> keep the (tile, N) rank scratch small.
    preferred = (256, 128) if ("v7" in kind or "7x" in kind) else (512, 256, 128)
    for t in preferred:
        if n % t == 0:
            return t
    return n  # fall back to the full extent (block dims == array dims)


# ---------------------------------------------------------------------------
# Fully fused kernel: kNN + gather + node/edge affine + shared MLP + max-agg
# ---------------------------------------------------------------------------
def _edgeconv_kernel(f_ref, wn_ref, bn_ref, we_ref, be_ref,
                     w1_ref, b1_ref, w2t_ref, b2t_ref,
                     o_ref, rank_ref, *, k, dilation, tile_n, compute_dtype):
    # f_ref:   (1, N, C)  full per-batch features (f32), fetched once per batch
    # o_ref:   (1, Cout, TILE_N)  channels-first, lane-dense over nodes
    # rank_ref: VMEM scratch (TILE_N, N) f32 — the only persistent (TN,N) buffer
    cdt = compute_dtype
    m = pl.program_id(1)
    start = pl.multiple_of(m * tile_n, tile_n)
    n = f_ref.shape[1]

    xa = f_ref[0]                                    # (N, C)  all points
    xc = f_ref[0, pl.ds(start, tile_n), :]           # (TN, C) centres of this tile
    xa_c = xa.astype(cdt)

    wn, we, w1, w2t = wn_ref[...], we_ref[...], w1_ref[...], w2t_ref[...]
    bn, be, b1, b2t = bn_ref[...], be_ref[...], b1_ref[...], b2t_ref[...]

    # ---- pairwise distance ranks (f32; column norm folded into one matmul).
    # rank(i,j) = ||x_j||^2 - 2 x_i . x_j  — same per-row ordering as the full
    # squared distance (row norm is constant per row).
    xr_aug = jnp.concatenate(
        [xc * jnp.float32(-2.0), jnp.ones((tile_n, 1), jnp.float32)], axis=-1)
    xa_aug = jnp.concatenate(
        [xa, jnp.sum(xa * xa, axis=-1, keepdims=True)], axis=-1)
    rank_ref[...] = jax.lax.dot_general(
        xr_aug, xa_aug, (((1,), (1,)), ((), ())),
        preferred_element_type=jnp.float32)          # (TN, N)

    # centre @ We, once per node (edge tensor eliminated algebraically:
    # leaky(edge@We + be) = leaky(g@We - centre@We + be)).
    ce = jnp.dot(xc.astype(cdt), we, preferred_element_type=jnp.float32)  # (TN, H)

    col_f = jax.lax.broadcasted_iota(jnp.int32, (tile_n, n), 1).astype(jnp.float32)
    acc = None
    for j in range(k):                               # k = 9 -> fully unrolled
        rank = rank_ref[...]
        row_min = jnp.min(rank, axis=-1, keepdims=True)
        # lowest column index attaining the minimum (same tie-break as top_k)
        idx_f = jnp.min(jnp.where(rank == row_min, col_f, jnp.float32(n)),
                        axis=-1, keepdims=True)
        sel = col_f == idx_f                         # exactly-one-hot (TN, N)
        rank_ref[...] = jnp.where(sel, jnp.float32(jnp.inf), rank)  # mask in place
        if j % dilation != 0:                        # dilated kNN: keep 0, d, 2d, ...
            continue

        # neighbour gather on the MXU: the selection one-hot IS the gather op.
        sel_c = jnp.where(sel, jnp.float32(1.0), jnp.float32(0.0)).astype(cdt)
        gj = jax.lax.dot_general(
            sel_c, xa_c, (((1,), (0,)), ((), ())),
            preferred_element_type=jnp.float32).astype(cdt)       # (TN, C)

        # node / edge affines: two matmuls sharing the same LHS (tile-aligned)
        hn = _leaky(jnp.dot(gj, wn, preferred_element_type=jnp.float32) + bn)
        he = _leaky(jnp.dot(gj, we, preferred_element_type=jnp.float32) - ce + be)
        h = (hn + he).astype(cdt)                                 # (TN, H)

        # shared MLP: H -> H
        h = _leaky(jnp.dot(h, w1, preferred_element_type=jnp.float32) + b1)

        # H -> Cout, emitted transposed -> (Cout, TN): lane-dense output stores
        y = jax.lax.dot_general(
            w2t, h.astype(cdt), (((1,), (1,)), ((), ())),
            preferred_element_type=jnp.float32)
        y = _leaky(y + b2t)                                       # (Cout, TN)

        # aggregate='max' over neighbours: running max, (Cout, TN) live only
        acc = y if acc is None else jnp.maximum(acc, y)

    o_ref[0] = acc.astype(o_ref.dtype)


def edgeconv_pallas(feat_bnc, packed, *, k, dilation, tile_n=None,
                    compute_dtype=jnp.float32):
    """feat_bnc: [B, N, C] f32 -> [B, Cout, N] f32 (fully fused EdgeConv)."""
    B, N, C = feat_bnc.shape
    wn, bn, we, be, w1, b1, w2t, b2t = packed
    H = w1.shape[0]
    Cout = w2t.shape[0]
    tn = tile_n or _default_tile(N)
    assert N % tn == 0
    assert N < (1 << 24)        # column indices are carried exactly in f32

    k_eff = len(range(0, k, dilation))
    flops = 2 * B * N * (N * (C + 1)                 # distance ranks
                         + k_eff * N * C             # one-hot MXU gathers
                         + C * H                     # centre @ We
                         + k_eff * (2 * C * H + H * H + H * Cout))
    bytes_accessed = 4 * (B * N * C + B * Cout * N) \
        + 2 * (2 * C * H + H * H + H * Cout + 3 * H + Cout)
    cost = pl.CostEstimate(flops=int(flops), transcendentals=0,
                           bytes_accessed=int(bytes_accessed))

    def full(shape):
        nd = len(shape)
        return pl.BlockSpec(shape, lambda b, m, _nd=nd: (0,) * _nd)

    return pl.pallas_call(
        functools.partial(_edgeconv_kernel, k=k, dilation=dilation,
                          tile_n=tn, compute_dtype=compute_dtype),
        out_shape=jax.ShapeDtypeStruct((B, Cout, N), jnp.float32),
        grid_spec=pltpu.PrefetchScalarGridSpec(
            num_scalar_prefetch=0,
            grid=(B, N // tn),
            in_specs=[
                # whole-batch feature block: index constant over the node-tile
                # axis, so it is DMA'd once per batch, not once per tile.
                pl.BlockSpec((1, N, C), lambda b, m: (b, 0, 0)),
                full(wn.shape), full(bn.shape),
                full(we.shape), full(be.shape),
                full(w1.shape), full(b1.shape),
                full(w2t.shape), full(b2t.shape),
            ],
            out_specs=pl.BlockSpec((1, Cout, tn), lambda b, m: (b, 0, m)),
            scratch_shapes=[pltpu.VMEM((tn, N), jnp.float32)],   # rank matrix
        ),
        compiler_params=pltpu.CompilerParams(
            dimension_semantics=("parallel", "parallel"),
            vmem_limit_bytes=64 * 1024 * 1024),
        cost_estimate=cost,
    )(feat_bnc, wn, bn, we, be, w1, b1, w2t, b2t)


# ---------------------------------------------------------------------------
# Parameter construction (deterministic), BN folded into scale/shift
# ---------------------------------------------------------------------------
def _fold_conv_bn(key, cin, cout, eps=1e-5):
    k1, k2, k3, k4, k5 = jax.random.split(key, 5)
    w = jax.random.normal(k1, (cin, cout), jnp.float32) * 0.1       # conv1x1, no bias
    gamma = 1.0 + 0.1 * jax.random.normal(k2, (cout,), jnp.float32)
    beta = 0.1 * jax.random.normal(k3, (cout,), jnp.float32)
    rmean = 0.1 * jax.random.normal(k4, (cout,), jnp.float32)
    rvar = 1.0 + 0.1 * jax.random.uniform(k5, (cout,), jnp.float32)
    scale = gamma / jnp.sqrt(rvar + eps)
    return w * scale[None, :], (beta - rmean * scale)[None, :]      # (cin,cout),(1,cout)


def make_params(key, in_feat, out_feat):
    h = out_feat // 2
    ks = jax.random.split(key, 4)
    wn, bn = _fold_conv_bn(ks[0], in_feat, h)   # node_affine
    we, be = _fold_conv_bn(ks[1], in_feat, h)   # edge_affine
    w1, b1 = _fold_conv_bn(ks[2], h, h)         # mlp layer 1
    w2, b2 = _fold_conv_bn(ks[3], h, out_feat)  # mlp layer 2
    return (wn, bn, we, be, w1, b1, w2, b2)


def pack_params(params, compute_dtype=jnp.float32):
    """Weights cast to the MXU compute dtype (bf16 fast path); biases stay f32."""
    wn, bn, we, be, w1, b1, w2, b2 = params
    cd = compute_dtype
    return (wn.astype(cd), bn, we.astype(cd), be, w1.astype(cd), b1,
            jnp.transpose(w2).astype(cd),        # (Cout, H) for transposed last matmul
            jnp.transpose(b2))                   # (Cout, 1)


# ---------------------------------------------------------------------------
# Full EdgeConv forward (PyTorch layouts)
# ---------------------------------------------------------------------------
@functools.partial(jax.jit, static_argnames=("k", "dilation", "compute_dtype"))
def edgeconv_forward(feat_bcn, params, k=9, dilation=1,
                     compute_dtype=jnp.float32):
    """feat_bcn: [B, C, N] -> [B, Cout, N, 1] (PyTorch output layout)."""
    feat_bnc = jnp.transpose(feat_bcn, (0, 2, 1))        # [B, N, C]
    packed = pack_params(params, compute_dtype)
    out_bcn = edgeconv_pallas(feat_bnc, packed, k=k, dilation=dilation,
                              compute_dtype=compute_dtype)   # [B, Cout, N]
    return out_bcn[..., None]                            # [B, Cout, N, 1]


# ---------------------------------------------------------------------------
# Pure-JAX reference (explicit kNN + gather + edge tensor) for correctness
# ---------------------------------------------------------------------------
def edgeconv_reference(feat_bcn, params, k=9, dilation=1):
    wn, bn, we, be, w1, b1, w2, b2 = params
    feat_bnc = jnp.transpose(feat_bcn, (0, 2, 1))
    sq = jnp.sum(feat_bnc * feat_bnc, axis=-1, keepdims=True)
    dist = sq + jnp.swapaxes(sq, 1, 2) - 2.0 * jnp.einsum("bnc,bmc->bnm",
                                                          feat_bnc, feat_bnc)
    _, idx = jax.lax.top_k(-dist, k)
    idx = idx[:, :, ::dilation]
    grouped = jax.vmap(lambda f, i: f[i])(feat_bnc, idx)        # [B, N, k_eff, C]
    edge = grouped - feat_bnc[:, :, None, :]
    leaky = lambda x: jnp.where(x >= 0, x, 0.2 * x)
    h = leaky(grouped @ wn + bn) + leaky(edge @ we + be)
    h = leaky(h @ w1 + b1)
    h = leaky(h @ w2 + b2)
    out = jnp.max(h, axis=2)                                    # [B, N, Cout]
    return jnp.transpose(out, (0, 2, 1))[..., None]             # [B, Cout, N, 1]


if __name__ == "__main__":
    B, in_feat, N = 2, 8, 16
    out_feat, k, dilation = 32, 9, 1

    root = jax.random.PRNGKey(0)
    k_feat, k_params = jax.random.split(root)
    feat = jax.random.normal(k_feat, (B, in_feat, N), jnp.float32)  # PyTorch [B, C, N]
    params = make_params(k_params, in_feat, out_feat)

    ref = edgeconv_reference(feat, params, k=k, dilation=dilation)

    # exact path (f32 MXU operands): tight tolerance vs the f32 reference
    out = jax.block_until_ready(
        edgeconv_forward(feat, params, k=k, dilation=dilation,
                         compute_dtype=jnp.float32))
    assert out.shape == (B, out_feat, N, 1), out.shape
    assert jnp.allclose(out, ref, atol=1e-4, rtol=1e-4), \
        float(jnp.max(jnp.abs(out - ref)))

    # fast path (bf16 MXU operands, f32 accumulation; neighbour selection f32)
    out_fast = jax.block_until_ready(
        edgeconv_forward(feat, params, k=k, dilation=dilation,
                         compute_dtype=jnp.bfloat16))
    assert out_fast.shape == (B, out_feat, N, 1), out_fast.shape
    assert jnp.allclose(out_fast, ref, atol=5e-2, rtol=5e-2), \
        float(jnp.max(jnp.abs(out_fast - ref)))

    print("KERNEL_OK")
</pallas_src>

<mosaic_0001>
module attributes {stable_mosaic.version = 11 : i64} {
  func.func @_edgeconv_kernel(%arg0: i32, %arg1: i32, %arg2: memref<1x16x8xf32, #tpu.memory_space<vmem>>, %arg3: memref<8x16xf32, #tpu.memory_space<vmem>>, %arg4: memref<1x16xf32, #tpu.memory_space<vmem>>, %arg5: memref<8x16xf32, #tpu.memory_space<vmem>>, %arg6: memref<1x16xf32, #tpu.memory_space<vmem>>, %arg7: memref<16x16xf32, #tpu.memory_space<vmem>>, %arg8: memref<1x16xf32, #tpu.memory_space<vmem>>, %arg9: memref<32x16xf32, #tpu.memory_space<vmem>>, %arg10: memref<32x1xf32, #tpu.memory_space<vmem>>, %arg11: memref<1x32x16xf32, #tpu.memory_space<vmem>>, %arg12: memref<16x16xf32, #tpu.memory_space<vmem>>) attributes {dimension_semantics = [#tpu.dimension_semantics<parallel>, #tpu.dimension_semantics<parallel>], iteration_bounds = array<i64: 2, 1>, scalar_prefetch = 0 : i64, scratch_operands = 1 : i64, tpu.core_type = #tpu.core_type<tc>, window_params = [{transform_indices = @transform_0, window_bounds = array<i64: 1, 16, 8>}, {pipeline_mode = #tpu.pipeline_mode<synchronous>, transform_indices = @transform_1, window_bounds = array<i64: 8, 16>}, {pipeline_mode = #tpu.pipeline_mode<synchronous>, transform_indices = @transform_2, window_bounds = array<i64: 1, 16>}, {pipeline_mode = #tpu.pipeline_mode<synchronous>, transform_indices = @transform_3, window_bounds = array<i64: 8, 16>}, {pipeline_mode = #tpu.pipeline_mode<synchronous>, transform_indices = @transform_4, window_bounds = array<i64: 1, 16>}, {pipeline_mode = #tpu.pipeline_mode<synchronous>, transform_indices = @transform_5, window_bounds = array<i64: 16, 16>}, {pipeline_mode = #tpu.pipeline_mode<synchronous>, transform_indices = @transform_6, window_bounds = array<i64: 1, 16>}, {pipeline_mode = #tpu.pipeline_mode<synchronous>, transform_indices = @transform_7, window_bounds = array<i64: 32, 16>}, {pipeline_mode = #tpu.pipeline_mode<synchronous>, transform_indices = @transform_8, window_bounds = array<i64: 32, 1>}, {transform_indices = @transform_9, window_bounds = array<i64: 1, 32, 16>}]} {
    %c16_i32 = arith.constant 16 : i32
    %0 = arith.muli %arg1, %c16_i32 : i32
    %1 = tpu.assume_multiple %0, 16 : i32
    %c0 = arith.constant 0 : index
    %c0_0 = arith.constant 0 : index
    %c0_1 = arith.constant 0 : index
    %2 = vector.load %arg2[%c0, %c0_0, %c0_1] : memref<1x16x8xf32, #tpu.memory_space<vmem>>, vector<1x16x8xf32>
    %3 = vector.shape_cast %2 : vector<1x16x8xf32> to vector<16x8xf32>
    %c0_2 = arith.constant 0 : index
    %4 = arith.index_cast %1 : i32 to index
    %c0_3 = arith.constant 0 : index
    %5 = vector.load %arg2[%c0_2, %4, %c0_3] : memref<1x16x8xf32, #tpu.memory_space<vmem>>, vector<1x16x8xf32>
    %6 = vector.shape_cast %5 : vector<1x16x8xf32> to vector<16x8xf32>
    %c0_4 = arith.constant 0 : index
    %c0_5 = arith.constant 0 : index
    %7 = vector.load %arg3[%c0_4, %c0_5] : memref<8x16xf32, #tpu.memory_space<vmem>>, vector<8x16xf32>
    %c0_6 = arith.constant 0 : index
    %c0_7 = arith.constant 0 : index
    %8 = vector.load %arg5[%c0_6, %c0_7] : memref<8x16xf32, #tpu.memory_space<vmem>>, vector<8x16xf32>
    %c0_8 = arith.constant 0 : index
    %c0_9 = arith.constant 0 : index
    %9 = vector.load %arg7[%c0_8, %c0_9] : memref<16x16xf32, #tpu.memory_space<vmem>>, vector<16x16xf32>
    %c0_10 = arith.constant 0 : index
    %c0_11 = arith.constant 0 : index
    %10 = vector.load %arg9[%c0_10, %c0_11] : memref<32x16xf32, #tpu.memory_space<vmem>>, vector<32x16xf32>
    %c0_12 = arith.constant 0 : index
    %c0_13 = arith.constant 0 : index
    %11 = vector.load %arg4[%c0_12, %c0_13] : memref<1x16xf32, #tpu.memory_space<vmem>>, vector<1x16xf32>
    %c0_14 = arith.constant 0 : index
    %c0_15 = arith.constant 0 : index
    %12 = vector.load %arg6[%c0_14, %c0_15] : memref<1x16xf32, #tpu.memory_space<vmem>>, vector<1x16xf32>
    %c0_16 = arith.constant 0 : index
    %c0_17 = arith.constant 0 : index
    %13 = vector.load %arg8[%c0_16, %c0_17] : memref<1x16xf32, #tpu.memory_space<vmem>>, vector<1x16xf32>
    %c0_18 = arith.constant 0 : index
    %c0_19 = arith.constant 0 : index
    %14 = vector.load %arg10[%c0_18, %c0_19] : memref<32x1xf32, #tpu.memory_space<vmem>>, vector<32x1xf32>
    %cst = arith.constant -2.000000e+00 : f32
    %15 = vector.broadcast %cst : f32 to vector<16x8xf32>
    %16 = arith.mulf %6, %15 : vector<16x8xf32>
    %cst_20 = arith.constant 1.000000e+00 : f32
    %17 = vector.broadcast %cst_20 : f32 to vector<16x1xf32>
    %18 = tpu.concatenate %16, %17 in 1 : vector<16x8xf32>, vector<16x1xf32> -> vector<16x9xf32>
    %19 = arith.mulf %3, %3 : vector<16x8xf32>
    %cst_21 = arith.constant dense<0.000000e+00> : vector<16xf32>
    %20 = vector.multi_reduction <add>, %19, %cst_21 [1] : vector<16x8xf32> to vector<16xf32>
    %21 = vector.shape_cast %20 : vector<16xf32> to vector<16x1xf32>
    %22 = tpu.concatenate %3, %21 in 1 : vector<16x8xf32>, vector<16x1xf32> -> vector<16x9xf32>
    %cst_22 = arith.constant dense<0.000000e+00> : vector<16x16xf32>
    %23 = tpu.matmul %18, %22, %cst_22 {dimension_numbers = #tpu.dot_dimension_numbers<[1], [1], [0], [0], [0, 0, 1, 0], [], []>} : vector<16x9xf32>, vector<16x9xf32>, vector<16x16xf32> -> vector<16x16xf32>
    %c0_23 = arith.constant 0 : index
    %c0_24 = arith.constant 0 : index
    %24 = vector.load %arg12[%c0_23, %c0_24] : memref<16x16xf32, #tpu.memory_space<vmem>>, vector<16x16xf32>
    tpu.vector_store %arg12[%c0_23, %c0_24], %23 {strides = array<i32>} : memref<16x16xf32, #tpu.memory_space<vmem>>, vector<16x16xf32>,
    %cst_25 = arith.constant dense<0.000000e+00> : vector<16x16xf32>
    %25 = tpu.matmul %6, %8, %cst_25 {dimension_numbers = #tpu.dot_dimension_numbers<[1], [0], [0], [1], [0, 0, 1, 1], [], []>} : vector<16x8xf32>, vector<8x16xf32>, vector<16x16xf32> -> vector<16x16xf32>
    %26 = tpu.iota {dimensions = array<i32: 1>} : vector<16x16xi32>
    %27 = arith.sitofp %26 : vector<16x16xi32> to vector<16x16xf32>
    %c0_26 = arith.constant 0 : index
    %c0_27 = arith.constant 0 : index
    %28 = vector.load %arg12[%c0_26, %c0_27] : memref<16x16xf32, #tpu.memory_space<vmem>>, vector<16x16xf32>
    %cst_28 = arith.constant dense<0x7F800000> : vector<16xf32>
    %29 = vector.multi_reduction <minimumf>, %28, %cst_28 [1] : vector<16x16xf32> to vector<16xf32>
    %30 = vector.shape_cast %29 : vector<16xf32> to vector<16x1xf32>
    %31 = vector.broadcast %30 : vector<16x1xf32> to vector<16x16xf32>
    %32 = arith.cmpf oeq, %28, %31 : vector<16x16xf32>
    %cst_29 = arith.constant 1.600000e+01 : f32
    %33 = vector.broadcast %cst_29 : f32 to vector<16x16xf32>
    %34 = arith.select %32, %27, %33 : vector<16x16xi1>, vector<16x16xf32>
    %cst_30 = arith.constant dense<0x7F800000> : vector<16xf32>
    %35 = vector.multi_reduction <minimumf>, %34, %cst_30 [1] : vector<16x16xf32> to vector<16xf32>
    %36 = vector.shape_cast %35 : vector<16xf32> to vector<16x1xf32>
    %37 = vector.broadcast %36 : vector<16x1xf32> to vector<16x16xf32>
    %38 = arith.cmpf oeq, %27, %37 : vector<16x16xf32>
    %cst_31 = arith.constant 0x7F800000 : f32
    %39 = vector.broadcast %cst_31 : f32 to vector<16x16xf32>
    %40 = arith.select %38, %39, %28 : vector<16x16xi1>, vector<16x16xf32>
    %c0_32 = arith.constant 0 : index
    %c0_33 = arith.constant 0 : index
    %41 = vector.load %arg12[%c0_32, %c0_33] : memref<16x16xf32, #tpu.memory_space<vmem>>, vector<16x16xf32>
    tpu.vector_store %arg12[%c0_32, %c0_33], %40 {strides = array<i32>} : memref<16x16xf32, #tpu.memory_space<vmem>>, vector<16x16xf32>,
    %cst_34 = arith.constant 1.000000e+00 : f32
    %cst_35 = arith.constant 0.000000e+00 : f32
    %42 = vector.broadcast %cst_34 : f32 to vector<16x16xf32>
    %43 = vector.broadcast %cst_35 : f32 to vector<16x16xf32>
    %44 = arith.select %38, %42, %43 : vector<16x16xi1>, vector<16x16xf32>
    %cst_36 = arith.constant dense<0.000000e+00> : vector<16x8xf32>
    %45 = tpu.matmul %44, %3, %cst_36 {dimension_numbers = #tpu.dot_dimension_numbers<[1], [0], [0], [1], [0, 0, 1, 1], [], []>} : vector<16x16xf32>, vector<16x8xf32>, vector<16x8xf32> -> vector<16x8xf32>
    %cst_37 = arith.constant dense<0.000000e+00> : vector<16x16xf32>
    %46 = tpu.matmul %45, %7, %cst_37 {dimension_numbers = #tpu.dot_dimension_numbers<[1], [0], [0], [1], [0, 0, 1, 1], [], []>} : vector<16x8xf32>, vector<8x16xf32>, vector<16x16xf32> -> vector<16x16xf32>
    %47 = vector.broadcast %11 : vector<1x16xf32> to vector<16x16xf32>
    %48 = arith.addf %46, %47 : vector<16x16xf32>
    %cst_38 = arith.constant 0.000000e+00 : f32
    %49 = vector.broadcast %cst_38 : f32 to vector<16x16xf32>
    %50 = arith.cmpf oge, %48, %49 : vector<16x16xf32>
    %cst_39 = arith.constant 2.000000e-01 : f32
    %51 = vector.broadcast %cst_39 : f32 to vector<16x16xf32>
    %52 = arith.mulf %51, %48 : vector<16x16xf32>
    %53 = arith.select %50, %48, %52 : vector<16x16xi1>, vector<16x16xf32>
    %cst_40 = arith.constant dense<0.000000e+00> : vector<16x16xf32>
    %54 = tpu.matmul %45, %8, %cst_40 {dimension_numbers = #tpu.dot_dimension_numbers<[1], [0], [0], [1], [0, 0, 1, 1], [], []>} : vector<16x8xf32>, vector<8x16xf32>, vector<16x16xf32> -> vector<16x16xf32>
    %55 = arith.subf %54, %25 : vector<16x16xf32>
    %56 = vector.broadcast %12 : vector<1x16xf32> to vector<16x16xf32>
    %57 = arith.addf %55, %56 : vector<16x16xf32>
    %cst_41 = arith.constant 0.000000e+00 : f32
    %58 = vector.broadcast %cst_41 : f32 to vector<16x16xf32>
    %59 = arith.cmpf oge, %57, %58 : vector<16x16xf32>
    %cst_42 = arith.constant 2.000000e-01 : f32
    %60 = vector.broadcast %cst_42 : f32 to vector<16x16xf32>
    %61 = arith.mulf %60, %57 : vector<16x16xf32>
    %62 = arith.select %59, %57, %61 : vector<16x16xi1>, vector<16x16xf32>
    %63 = arith.addf %53, %62 : vector<16x16xf32>
    %cst_43 = arith.constant dense<0.000000e+00> : vector<16x16xf32>
    %64 = tpu.matmul %63, %9, %cst_43 {dimension_numbers = #tpu.dot_dimension_numbers<[1], [0], [0], [1], [0, 0, 1, 1], [], []>} : vector<16x16xf32>, vector<16x16xf32>, vector<16x16xf32> -> vector<16x16xf32>
    %65 = vector.broadcast %13 : vector<1x16xf32> to vector<16x16xf32>
    %66 = arith.addf %64, %65 : vector<16x16xf32>
    %cst_44 = arith.constant 0.000000e+00 : f32
    %67 = vector.broadcast %cst_44 : f32 to vector<16x16xf32>
    %68 = arith.cmpf oge, %66, %67 : vector<16x16xf32>
    %cst_45 = arith.constant 2.000000e-01 : f32
    %69 = vector.broadcast %cst_45 : f32 to vector<16x16xf32>
    %70 = arith.mulf %69, %66 : vector<16x16xf32>
    %71 = arith.select %68, %66, %70 : vector<16x16xi1>, vector<16x16xf32>
    %cst_46 = arith.constant dense<0.000000e+00> : vector<32x16xf32>
    %72 = tpu.matmul %10, %71, %cst_46 {dimension_numbers = #tpu.dot_dimension_numbers<[1], [1], [0], [0], [0, 0, 1, 0], [], []>} : vector<32x16xf32>, vector<16x16xf32>, vector<32x16xf32> -> vector<32x16xf32>
    %73 = vector.broadcast %14 : vector<32x1xf32> to vector<32x16xf32>
    %74 = arith.addf %72, %73 : vector<32x16xf32>
    %cst_47 = arith.constant 0.000000e+00 : f32
    %75 = vector.broadcast %cst_47 : f32 to vector<32x16xf32>
    %76 = arith.cmpf oge, %74, %75 : vector<32x16xf32>
    %cst_48 = arith.constant 2.000000e-01 : f32
    %77 = vector.broadcast %cst_48 : f32 to vector<32x16xf32>
    %78 = arith.mulf %77, %74 : vector<32x16xf32>
    %79 = arith.select %76, %74, %78 : vector<32x16xi1>, vector<32x16xf32>
    %c0_49 = arith.constant 0 : index
    %c0_50 = arith.constant 0 : index
    %80 = vector.load %arg12[%c0_49, %c0_50] : memref<16x16xf32, #tpu.memory_space<vmem>>, vector<16x16xf32>
    %cst_51 = arith.constant dense<0x7F800000> : vector<16xf32>
    %81 = vector.multi_reduction <minimumf>, %80, %cst_51 [1] : vector<16x16xf32> to vector<16xf32>
    %82 = vector.shape_cast %81 : vector<16xf32> to vector<16x1xf32>
    %83 = vector.broadcast %82 : vector<16x1xf32> to vector<16x16xf32>
    %84 = arith.cmpf oeq, %80, %83 : vector<16x16xf32>
    %cst_52 = arith.constant 1.600000e+01 : f32
    %85 = vector.broadcast %cst_52 : f32 to vector<16x16xf32>
    %86 = arith.select %84, %27, %85 : vector<16x16xi1>, vector<16x16xf32>
    %cst_53 = arith.constant dense<0x7F800000> : vector<16xf32>
    %87 = vector.multi_reduction <minimumf>, %86, %cst_53 [1] : vector<16x16xf32> to vector<16xf32>
    %88 = vector.shape_cast %87 : vector<16xf32> to vector<16x1xf32>
    %89 = vector.broadcast %88 : vector<16x1xf32> to vector<16x16xf32>
    %90 = arith.cmpf oeq, %27, %89 : vector<16x16xf32>
    %cst_54 = arith.constant 0x7F800000 : f32
    %91 = vector.broadcast %cst_54 : f32 to vector<16x16xf32>
    %92 = arith.select %90, %91, %80 : vector<16x16xi1>, vector<16x16xf32>
    %c0_55 = arith.constant 0 : index
    %c0_56 = arith.constant 0 : index
    %93 = vector.load %arg12[%c0_55, %c0_56] : memref<16x16xf32, #tpu.memory_space<vmem>>, vector<16x16xf32>
    tpu.vector_store %arg12[%c0_55, %c0_56], %92 {strides = array<i32>} : memref<16x16xf32, #tpu.memory_space<vmem>>, vector<16x16xf32>,
    %cst_57 = arith.constant 1.000000e+00 : f32
    %cst_58 = arith.constant 0.000000e+00 : f32
    %94 = vector.broadcast %cst_57 : f32 to vector<16x16xf32>
    %95 = vector.broadcast %cst_58 : f32 to vector<16x16xf32>
    %96 = arith.select %90, %94, %95 : vector<16x16xi1>, vector<16x16xf32>
    %cst_59 = arith.constant dense<0.000000e+00> : vector<16x8xf32>
    %97 = tpu.matmul %96, %3, %cst_59 {dimension_numbers = #tpu.dot_dimension_numbers<[1], [0], [0], [1], [0, 0, 1, 1], [], []>} : vector<16x16xf32>, vector<16x8xf32>, vector<16x8xf32> -> vector<16x8xf32>
    %cst_60 = arith.constant dense<0.000000e+00> : vector<16x16xf32>
    %98 = tpu.matmul %97, %7, %cst_60 {dimension_numbers = #tpu.dot_dimension_numbers<[1], [0], [0], [1], [0, 0, 1, 1], [], []>} : vector<16x8xf32>, vector<8x16xf32>, vector<16x16xf32> -> vector<16x16xf32>
    %99 = vector.broadcast %11 : vector<1x16xf32> to vector<16x16xf32>
    %100 = arith.addf %98, %99 : vector<16x16xf32>
    %cst_61 = arith.constant 0.000000e+00 : f32
    %101 = vector.broadcast %cst_61 : f32 to vector<16x16xf32>
    %102 = arith.cmpf oge, %100, %101 : vector<16x16xf32>
    %cst_62 = arith.constant 2.000000e-01 : f32
    %103 = vector.broadcast %cst_62 : f32 to vector<16x16xf32>
    %104 = arith.mulf %103, %100 : vector<16x16xf32>
    %105 = arith.select %102, %100, %104 : vector<16x16xi1>, vector<16x16xf32>
    %cst_63 = arith.constant dense<0.000000e+00> : vector<16x16xf32>
    %106 = tpu.matmul %97, %8, %cst_63 {dimension_numbers = #tpu.dot_dimension_numbers<[1], [0], [0], [1], [0, 0, 1, 1], [], []>} : vector<16x8xf32>, vector<8x16xf32>, vector<16x16xf32> -> vector<16x16xf32>
    %107 = arith.subf %106, %25 : vector<16x16xf32>
    %108 = vector.broadcast %12 : vector<1x16xf32> to vector<16x16xf32>
    %109 = arith.addf %107, %108 : vector<16x16xf32>
    %cst_64 = arith.constant 0.000000e+00 : f32
    %110 = vector.broadcast %cst_64 : f32 to vector<16x16xf32>
    %111 = arith.cmpf oge, %109, %110 : vector<16x16xf32>
    %cst_65 = arith.constant 2.000000e-01 : f32
    %112 = vector.broadcast %cst_65 : f32 to vector<16x16xf32>
    %113 = arith.mulf %112, %109 : vector<16x16xf32>
    %114 = arith.select %111, %109, %113 : vector<16x16xi1>, vector<16x16xf32>
    %115 = arith.addf %105, %114 : vector<16x16xf32>
    %cst_66 = arith.constant dense<0.000000e+00> : vector<16x16xf32>
    %116 = tpu.matmul %115, %9, %cst_66 {dimension_numbers = #tpu.dot_dimension_numbers<[1], [0], [0], [1], [0, 0, 1, 1], [], []>} : vector<16x16xf32>, vector<16x16xf32>, vector<16x16xf32> -> vector<16x16xf32>
    %117 = vector.broadcast %13 : vector<1x16xf32> to vector<16x16xf32>
    %118 = arith.addf %116, %117 : vector<16x16xf32>
    %cst_67 = arith.constant 0.000000e+00 : f32
    %119 = vector.broadcast %cst_67 : f32 to vector<16x16xf32>
    %120 = arith.cmpf oge, %118, %119 : vector<16x16xf32>
    %cst_68 = arith.constant 2.000000e-01 : f32
    %121 = vector.broadcast %cst_68 : f32 to vector<16x16xf32>
    %122 = arith.mulf %121, %118 : vector<16x16xf32>
    %123 = arith.select %120, %118, %122 : vector<16x16xi1>, vector<16x16xf32>
    %cst_69 = arith.constant dense<0.000000e+00> : vector<32x16xf32>
    %124 = tpu.matmul %10, %123, %cst_69 {dimension_numbers = #tpu.dot_dimension_numbers<[1], [1], [0], [0], [0, 0, 1, 0], [], []>} : vector<32x16xf32>, vector<16x16xf32>, vector<32x16xf32> -> vector<32x16xf32>
    %125 = vector.broadcast %14 : vector<32x1xf32> to vector<32x16xf32>
    %126 = arith.addf %124, %125 : vector<32x16xf32>
    %cst_70 = arith.constant 0.000000e+00 : f32
    %127 = vector.broadcast %cst_70 : f32 to vector<32x16xf32>
    %128 = arith.cmpf oge, %126, %127 : vector<32x16xf32>
    %cst_71 = arith.constant 2.000000e-01 : f32
    %129 = vector.broadcast %cst_71 : f32 to vector<32x16xf32>
    %130 = arith.mulf %129, %126 : vector<32x16xf32>
    %131 = arith.select %128, %126, %130 : vector<32x16xi1>, vector<32x16xf32>
    %132 = arith.maximumf %79, %131 : vector<32x16xf32>
    %c0_72 = arith.constant 0 : index
    %c0_73 = arith.constant 0 : index
    %133 = vector.load %arg12[%c0_72, %c0_73] : memref<16x16xf32, #tpu.memory_space<vmem>>, vector<16x16xf32>
    %cst_74 = arith.constant dense<0x7F800000> : vector<16xf32>
    %134 = vector.multi_reduction <minimumf>, %133, %cst_74 [1] : vector<16x16xf32> to vector<16xf32>
    %135 = vector.shape_cast %134 : vector<16xf32> to vector<16x1xf32>
    %136 = vector.broadcast %135 : vector<16x1xf32> to vector<16x16xf32>
    %137 = arith.cmpf oeq, %133, %136 : vector<16x16xf32>
    %cst_75 = arith.constant 1.600000e+01 : f32
    %138 = vector.broadcast %cst_75 : f32 to vector<16x16xf32>
    %139 = arith.select %137, %27, %138 : vector<16x16xi1>, vector<16x16xf32>
    %cst_76 = arith.constant dense<0x7F800000> : vector<16xf32>
    %140 = vector.multi_reduction <minimumf>, %139, %cst_76 [1] : vector<16x16xf32> to vector<16xf32>
    %141 = vector.shape_cast %140 : vector<16xf32> to vector<16x1xf32>
    %142 = vector.broadcast %141 : vector<16x1xf32> to vector<16x16xf32>
    %143 = arith.cmpf oeq, %27, %142 : vector<16x16xf32>
    %cst_77 = arith.constant 0x7F800000 : f32
    %144 = vector.broadcast %cst_77 : f32 to vector<16x16xf32>
    %145 = arith.select %143, %144, %133 : vector<16x16xi1>, vector<16x16xf32>
    %c0_78 = arith.constant 0 : index
    %c0_79 = arith.constant 0 : index
    %146 = vector.load %arg12[%c0_78, %c0_79] : memref<16x16xf32, #tpu.memory_space<vmem>>, vector<16x16xf32>
    tpu.vector_store %arg12[%c0_78, %c0_79], %145 {strides = array<i32>} : memref<16x16xf32, #tpu.memory_space<vmem>>, vector<16x16xf32>,
    %cst_80 = arith.constant 1.000000e+00 : f32
    %cst_81 = arith.constant 0.000000e+00 : f32
    %147 = vector.broadcast %cst_80 : f32 to vector<16x16xf32>
    %148 = vector.broadcast %cst_81 : f32 to vector<16x16xf32>
    %149 = arith.select %143, %147, %148 : vector<16x16xi1>, vector<16x16xf32>
    %cst_82 = arith.constant dense<0.000000e+00> : vector<16x8xf32>
    %150 = tpu.matmul %149, %3, %cst_82 {dimension_numbers = #tpu.dot_dimension_numbers<[1], [0], [0], [1], [0, 0, 1, 1], [], []>} : vector<16x16xf32>, vector<16x8xf32>, vector<16x8xf32> -> vector<16x8xf32>
    %cst_83 = arith.constant dense<0.000000e+00> : vector<16x16xf32>
    %151 = tpu.matmul %150, %7, %cst_83 {dimension_numbers = #tpu.dot_dimension_numbers<[1], [0], [0], [1], [0, 0, 1, 1], [], []>} : vector<16x8xf32>, vector<8x16xf32>, vector<16x16xf32> -> vector<16x16xf32>
    %152 = vector.broadcast %11 : vector<1x16xf32> to vector<16x16xf32>
    %153 = arith.addf %151, %152 : vector<16x16xf32>
    %cst_84 = arith.constant 0.000000e+00 : f32
    %154 = vector.broadcast %cst_84 : f32 to vector<16x16xf32>
    %155 = arith.cmpf oge, %153, %154 : vector<16x16xf32>
    %cst_85 = arith.constant 2.000000e-01 : f32
    %156 = vector.broadcast %cst_85 : f32 to vector<16x16xf32>
    %157 = arith.mulf %156, %153 : vector<16x16xf32>
    %158 = arith.select %155, %153, %157 : vector<16x16xi1>, vector<16x16xf32>
    %cst_86 = arith.constant dense<0.000000e+00> : vector<16x16xf32>
    %159 = tpu.matmul %150, %8, %cst_86 {dimension_numbers = #tpu.dot_dimension_numbers<[1], [0], [0], [1], [0, 0, 1, 1], [], []>} : vector<16x8xf32>, vector<8x16xf32>, vector<16x16xf32> -> vector<16x16xf32>
    %160 = arith.subf %159, %25 : vector<16x16xf32>
    %161 = vector.broadcast %12 : vector<1x16xf32> to vector<16x16xf32>
    %162 = arith.addf %160, %161 : vector<16x16xf32>
    %cst_87 = arith.constant 0.000000e+00 : f32
    %163 = vector.broadcast %cst_87 : f32 to vector<16x16xf32>
    %164 = arith.cmpf oge, %162, %163 : vector<16x16xf32>
    %cst_88 = arith.constant 2.000000e-01 : f32
    %165 = vector.broadcast %cst_88 : f32 to vector<16x16xf32>
    %166 = arith.mulf %165, %162 : vector<16x16xf32>
    %167 = arith.select %164, %162, %166 : vector<16x16xi1>, vector<16x16xf32>
    %168 = arith.addf %158, %167 : vector<16x16xf32>
    %cst_89 = arith.constant dense<0.000000e+00> : vector<16x16xf32>
    %169 = tpu.matmul %168, %9, %cst_89 {dimension_numbers = #tpu.dot_dimension_numbers<[1], [0], [0], [1], [0, 0, 1, 1], [], []>} : vector<16x16xf32>, vector<16x16xf32>, vector<16x16xf32> -> vector<16x16xf32>
    %170 = vector.broadcast %13 : vector<1x16xf32> to vector<16x16xf32>
    %171 = arith.addf %169, %170 : vector<16x16xf32>
    %cst_90 = arith.constant 0.000000e+00 : f32
    %172 = vector.broadcast %cst_90 : f32 to vector<16x16xf32>
    %173 = arith.cmpf oge, %171, %172 : vector<16x16xf32>
    %cst_91 = arith.constant 2.000000e-01 : f32
    %174 = vector.broadcast %cst_91 : f32 to vector<16x16xf32>
    %175 = arith.mulf %174, %171 : vector<16x16xf32>
    %176 = arith.select %173, %171, %175 : vector<16x16xi1>, vector<16x16xf32>
    %cst_92 = arith.constant dense<0.000000e+00> : vector<32x16xf32>
    %177 = tpu.matmul %10, %176, %cst_92 {dimension_numbers = #tpu.dot_dimension_numbers<[1], [1], [0], [0], [0, 0, 1, 0], [], []>} : vector<32x16xf32>, vector<16x16xf32>, vector<32x16xf32> -> vector<32x16xf32>
    %178 = vector.broadcast %14 : vector<32x1xf32> to vector<32x16xf32>
    %179 = arith.addf %177, %178 : vector<32x16xf32>
    %cst_93 = arith.constant 0.000000e+00 : f32
    %180 = vector.broadcast %cst_93 : f32 to vector<32x16xf32>
    %181 = arith.cmpf oge, %179, %180 : vector<32x16xf32>
    %cst_94 = arith.constant 2.000000e-01 : f32
    %182 = vector.broadcast %cst_94 : f32 to vector<32x16xf32>
    %183 = arith.mulf %182, %179 : vector<32x16xf32>
    %184 = arith.select %181, %179, %183 : vector<32x16xi1>, vector<32x16xf32>
    %185 = arith.maximumf %132, %184 : vector<32x16xf32>
    %c0_95 = arith.constant 0 : index
    %c0_96 = arith.constant 0 : index
    %186 = vector.load %arg12[%c0_95, %c0_96] : memref<16x16xf32, #tpu.memory_space<vmem>>, vector<16x16xf32>
    %cst_97 = arith.constant dense<0x7F800000> : vector<16xf32>
    %187 = vector.multi_reduction <minimumf>, %186, %cst_97 [1] : vector<16x16xf32> to vector<16xf32>
    %188 = vector.shape_cast %187 : vector<16xf32> to vector<16x1xf32>
    %189 = vector.broadcast %188 : vector<16x1xf32> to vector<16x16xf32>
    %190 = arith.cmpf oeq, %186, %189 : vector<16x16xf32>
    %cst_98 = arith.constant 1.600000e+01 : f32
    %191 = vector.broadcast %cst_98 : f32 to vector<16x16xf32>
    %192 = arith.select %190, %27, %191 : vector<16x16xi1>, vector<16x16xf32>
    %cst_99 = arith.constant dense<0x7F800000> : vector<16xf32>
    %193 = vector.multi_reduction <minimumf>, %192, %cst_99 [1] : vector<16x16xf32> to vector<16xf32>
    %194 = vector.shape_cast %193 : vector<16xf32> to vector<16x1xf32>
    %195 = vector.broadcast %194 : vector<16x1xf32> to vector<16x16xf32>
    %196 = arith.cmpf oeq, %27, %195 : vector<16x16xf32>
    %cst_100 = arith.constant 0x7F800000 : f32
    %197 = vector.broadcast %cst_100 : f32 to vector<16x16xf32>
    %198 = arith.select %196, %197, %186 : vector<16x16xi1>, vector<16x16xf32>
    %c0_101 = arith.constant 0 : index
    %c0_102 = arith.constant 0 : index
    %199 = vector.load %arg12[%c0_101, %c0_102] : memref<16x16xf32, #tpu.memory_space<vmem>>, vector<16x16xf32>
    tpu.vector_store %arg12[%c0_101, %c0_102], %198 {strides = array<i32>} : memref<16x16xf32, #tpu.memory_space<vmem>>, vector<16x16xf32>,
    %cst_103 = arith.constant 1.000000e+00 : f32
    %cst_104 = arith.constant 0.000000e+00 : f32
    %200 = vector.broadcast %cst_103 : f32 to vector<16x16xf32>
    %201 = vector.broadcast %cst_104 : f32 to vector<16x16xf32>
    %202 = arith.select %196, %200, %201 : vector<16x16xi1>, vector<16x16xf32>
    %cst_105 = arith.constant dense<0.000000e+00> : vector<16x8xf32>
    %203 = tpu.matmul %202, %3, %cst_105 {dimension_numbers = #tpu.dot_dimension_numbers<[1], [0], [0], [1], [0, 0, 1, 1], [], []>} : vector<16x16xf32>, vector<16x8xf32>, vector<16x8xf32> -> vector<16x8xf32>
    %cst_106 = arith.constant dense<0.000000e+00> : vector<16x16xf32>
    %204 = tpu.matmul %203, %7, %cst_106 {dimension_numbers = #tpu.dot_dimension_numbers<[1], [0], [0], [1], [0, 0, 1, 1], [], []>} : vector<16x8xf32>, vector<8x16xf32>, vector<16x16xf32> -> vector<16x16xf32>
    %205 = vector.broadcast %11 : vector<1x16xf32> to vector<16x16xf32>
    %206 = arith.addf %204, %205 : vector<16x16xf32>
    %cst_107 = arith.constant 0.000000e+00 : f32
    %207 = vector.broadcast %cst_107 : f32 to vector<16x16xf32>
    %208 = arith.cmpf oge, %206, %207 : vector<16x16xf32>
    %cst_108 = arith.constant 2.000000e-01 : f32
    %209 = vector.broadcast %cst_108 : f32 to vector<16x16xf32>
    %210 = arith.mulf %209, %206 : vector<16x16xf32>
    %211 = arith.select %208, %206, %210 : vector<16x16xi1>, vector<16x16xf32>
    %cst_109 = arith.constant dense<0.000000e+00> : vector<16x16xf32>
    %212 = tpu.matmul %203, %8, %cst_109 {dimension_numbers = #tpu.dot_dimension_numbers<[1], [0], [0], [1], [0, 0, 1, 1], [], []>} : vector<16x8xf32>, vector<8x16xf32>, vector<16x16xf32> -> vector<16x16xf32>
    %213 = arith.subf %212, %25 : vector<16x16xf32>
    %214 = vector.broadcast %12 : vector<1x16xf32> to vector<16x16xf32>
    %215 = arith.addf %213, %214 : vector<16x16xf32>
    %cst_110 = arith.constant 0.000000e+00 : f32
    %216 = vector.broadcast %cst_110 : f32 to vector<16x16xf32>
    %217 = arith.cmpf oge, %215, %216 : vector<16x16xf32>
    %cst_111 = arith.constant 2.000000e-01 : f32
    %218 = vector.broadcast %cst_111 : f32 to vector<16x16xf32>
    %219 = arith.mulf %218, %215 : vector<16x16xf32>
    %220 = arith.select %217, %215, %219 : vector<16x16xi1>, vector<16x16xf32>
    %221 = arith.addf %211, %220 : vector<16x16xf32>
    %cst_112 = arith.constant dense<0.000000e+00> : vector<16x16xf32>
    %222 = tpu.matmul %221, %9, %cst_112 {dimension_numbers = #tpu.dot_dimension_numbers<[1], [0], [0], [1], [0, 0, 1, 1], [], []>} : vector<16x16xf32>, vector<16x16xf32>, vector<16x16xf32> -> vector<16x16xf32>
    %223 = vector.broadcast %13 : vector<1x16xf32> to vector<16x16xf32>
    %224 = arith.addf %222, %223 : vector<16x16xf32>
    %cst_113 = arith.constant 0.000000e+00 : f32
    %225 = vector.broadcast %cst_113 : f32 to vector<16x16xf32>
    %226 = arith.cmpf oge, %224, %225 : vector<16x16xf32>
    %cst_114 = arith.constant 2.000000e-01 : f32
    %227 = vector.broadcast %cst_114 : f32 to vector<16x16xf32>
    %228 = arith.mulf %227, %224 : vector<16x16xf32>
    %229 = arith.select %226, %224, %228 : vector<16x16xi1>, vector<16x16xf32>
    %cst_115 = arith.constant dense<0.000000e+00> : vector<32x16xf32>
    %230 = tpu.matmul %10, %229, %cst_115 {dimension_numbers = #tpu.dot_dimension_numbers<[1], [1], [0], [0], [0, 0, 1, 0], [], []>} : vector<32x16xf32>, vector<16x16xf32>, vector<32x16xf32> -> vector<32x16xf32>
    %231 = vector.broadcast %14 : vector<32x1xf32> to vector<32x16xf32>
    %232 = arith.addf %230, %231 : vector<32x16xf32>
    %cst_116 = arith.constant 0.000000e+00 : f32
    %233 = vector.broadcast %cst_116 : f32 to vector<32x16xf32>
    %234 = arith.cmpf oge, %232, %233 : vector<32x16xf32>
    %cst_117 = arith.constant 2.000000e-01 : f32
    %235 = vector.broadcast %cst_117 : f32 to vector<32x16xf32>
    %236 = arith.mulf %235, %232 : vector<32x16xf32>
    %237 = arith.select %234, %232, %236 : vector<32x16xi1>, vector<32x16xf32>
    %238 = arith.maximumf %185, %237 : vector<32x16xf32>
    %c0_118 = arith.constant 0 : index
    %c0_119 = arith.constant 0 : index
    %239 = vector.load %arg12[%c0_118, %c0_119] : memref<16x16xf32, #tpu.memory_space<vmem>>, vector<16x16xf32>
    %cst_120 = arith.constant dense<0x7F800000> : vector<16xf32>
    %240 = vector.multi_reduction <minimumf>, %239, %cst_120 [1] : vector<16x16xf32> to vector<16xf32>
    %241 = vector.shape_cast %240 : vector<16xf32> to vector<16x1xf32>
    %242 = vector.broadcast %241 : vector<16x1xf32> to vector<16x16xf32>
    %243 = arith.cmpf oeq, %239, %242 : vector<16x16xf32>
    %cst_121 = arith.constant 1.600000e+01 : f32
    %244 = vector.broadcast %cst_121 : f32 to vector<16x16xf32>
    %245 = arith.select %243, %27, %244 : vector<16x16xi1>, vector<16x16xf32>
    %cst_122 = arith.constant dense<0x7F800000> : vector<16xf32>
    %246 = vector.multi_reduction <minimumf>, %245, %cst_122 [1] : vector<16x16xf32> to vector<16xf32>
    %247 = vector.shape_cast %246 : vector<16xf32> to vector<16x1xf32>
    %248 = vector.broadcast %247 : vector<16x1xf32> to vector<16x16xf32>
    %249 = arith.cmpf oeq, %27, %248 : vector<16x16xf32>
    %cst_123 = arith.constant 0x7F800000 : f32
    %250 = vector.broadcast %cst_123 : f32 to vector<16x16xf32>
    %251 = arith.select %249, %250, %239 : vector<16x16xi1>, vector<16x16xf32>
    %c0_124 = arith.constant 0 : index
    %c0_125 = arith.constant 0 : index
    %252 = vector.load %arg12[%c0_124, %c0_125] : memref<16x16xf32, #tpu.memory_space<vmem>>, vector<16x16xf32>
    tpu.vector_store %arg12[%c0_124, %c0_125], %251 {strides = array<i32>} : memref<16x16xf32, #tpu.memory_space<vmem>>, vector<16x16xf32>,
    %cst_126 = arith.constant 1.000000e+00 : f32
    %cst_127 = arith.constant 0.000000e+00 : f32
    %253 = vector.broadcast %cst_126 : f32 to vector<16x16xf32>
    %254 = vector.broadcast %cst_127 : f32 to vector<16x16xf32>
    %255 = arith.select %249, %253, %254 : vector<16x16xi1>, vector<16x16xf32>
    %cst_128 = arith.constant dense<0.000000e+00> : vector<16x8xf32>
    %256 = tpu.matmul %255, %3, %cst_128 {dimension_numbers = #tpu.dot_dimension_numbers<[1], [0], [0], [1], [0, 0, 1, 1], [], []>} : vector<16x16xf32>, vector<16x8xf32>, vector<16x8xf32> -> vector<16x8xf32>
    %cst_129 = arith.constant dense<0.000000e+00> : vector<16x16xf32>
    %257 = tpu.matmul %256, %7, %cst_129 {dimension_numbers = #tpu.dot_dimension_numbers<[1], [0], [0], [1], [0, 0, 1, 1], [], []>} : vector<16x8xf32>, vector<8x16xf32>, vector<16x16xf32> -> vector<16x16xf32>
    %258 = vector.broadcast %11 : vector<1x16xf32> to vector<16x16xf32>
    %259 = arith.addf %257, %258 : vector<16x16xf32>
    %cst_130 = arith.constant 0.000000e+00 : f32
    %260 = vector.broadcast %cst_130 : f32 to vector<16x16xf32>
    %261 = arith.cmpf oge, %259, %260 : vector<16x16xf32>
    %cst_131 = arith.constant 2.000000e-01 : f32
    %262 = vector.broadcast %cst_131 : f32 to vector<16x16xf32>
    %263 = arith.mulf %262, %259 : vector<16x16xf32>
    %264 = arith.select %261, %259, %263 : vector<16x16xi1>, vector<16x16xf32>
    %cst_132 = arith.constant dense<0.000000e+00> : vector<16x16xf32>
    %265 = tpu.matmul %256, %8, %cst_132 {dimension_numbers = #tpu.dot_dimension_numbers<[1], [0], [0], [1], [0, 0, 1, 1], [], []>} : vector<16x8xf32>, vector<8x16xf32>, vector<16x16xf32> -> vector<16x16xf32>
    %266 = arith.subf %265, %25 : vector<16x16xf32>
    %267 = vector.broadcast %12 : vector<1x16xf32> to vector<16x16xf32>
    %268 = arith.addf %266, %267 : vector<16x16xf32>
    %cst_133 = arith.constant 0.000000e+00 : f32
    %269 = vector.broadcast %cst_133 : f32 to vector<16x16xf32>
    %270 = arith.cmpf oge, %268, %269 : vector<16x16xf32>
    %cst_134 = arith.constant 2.000000e-01 : f32
    %271 = vector.broadcast %cst_134 : f32 to vector<16x16xf32>
    %272 = arith.mulf %271, %268 : vector<16x16xf32>
    %273 = arith.select %270, %268, %272 : vector<16x16xi1>, vector<16x16xf32>
    %274 = arith.addf %264, %273 : vector<16x16xf32>
    %cst_135 = arith.constant dense<0.000000e+00> : vector<16x16xf32>
    %275 = tpu.matmul %274, %9, %cst_135 {dimension_numbers = #tpu.dot_dimension_numbers<[1], [0], [0], [1], [0, 0, 1, 1], [], []>} : vector<16x16xf32>, vector<16x16xf32>, vector<16x16xf32> -> vector<16x16xf32>
    %276 = vector.broadcast %13 : vector<1x16xf32> to vector<16x16xf32>
    %277 = arith.addf %275, %276 : vector<16x16xf32>
    %cst_136 = arith.constant 0.000000e+00 : f32
    %278 = vector.broadcast %cst_136 : f32 to vector<16x16xf32>
    %279 = arith.cmpf oge, %277, %278 : vector<16x16xf32>
    %cst_137 = arith.constant 2.000000e-01 : f32
    %280 = vector.broadcast %cst_137 : f32 to vector<16x16xf32>
    %281 = arith.mulf %280, %277 : vector<16x16xf32>
    %282 = arith.select %279, %277, %281 : vector<16x16xi1>, vector<16x16xf32>
    %cst_138 = arith.constant dense<0.000000e+00> : vector<32x16xf32>
    %283 = tpu.matmul %10, %282, %cst_138 {dimension_numbers = #tpu.dot_dimension_numbers<[1], [1], [0], [0], [0, 0, 1, 0], [], []>} : vector<32x16xf32>, vector<16x16xf32>, vector<32x16xf32> -> vector<32x16xf32>
    %284 = vector.broadcast %14 : vector<32x1xf32> to vector<32x16xf32>
    %285 = arith.addf %283, %284 : vector<32x16xf32>
    %cst_139 = arith.constant 0.000000e+00 : f32
    %286 = vector.broadcast %cst_139 : f32 to vector<32x16xf32>
    %287 = arith.cmpf oge, %285, %286 : vector<32x16xf32>
    %cst_140 = arith.constant 2.000000e-01 : f32
    %288 = vector.broadcast %cst_140 : f32 to vector<32x16xf32>
    %289 = arith.mulf %288, %285 : vector<32x16xf32>
    %290 = arith.select %287, %285, %289 : vector<32x16xi1>, vector<32x16xf32>
    %291 = arith.maximumf %238, %290 : vector<32x16xf32>
    %c0_141 = arith.constant 0 : index
    %c0_142 = arith.constant 0 : index
    %292 = vector.load %arg12[%c0_141, %c0_142] : memref<16x16xf32, #tpu.memory_space<vmem>>, vector<16x16xf32>
    %cst_143 = arith.constant dense<0x7F800000> : vector<16xf32>
    %293 = vector.multi_reduction <minimumf>, %292, %cst_143 [1] : vector<16x16xf32> to vector<16xf32>
    %294 = vector.shape_cast %293 : vector<16xf32> to vector<16x1xf32>
    %295 = vector.broadcast %294 : vector<16x1xf32> to vector<16x16xf32>
    %296 = arith.cmpf oeq, %292, %295 : vector<16x16xf32>
    %cst_144 = arith.constant 1.600000e+01 : f32
    %297 = vector.broadcast %cst_144 : f32 to vector<16x16xf32>
    %298 = arith.select %296, %27, %297 : vector<16x16xi1>, vector<16x16xf32>
    %cst_145 = arith.constant dense<0x7F800000> : vector<16xf32>
    %299 = vector.multi_reduction <minimumf>, %298, %cst_145 [1] : vector<16x16xf32> to vector<16xf32>
    %300 = vector.shape_cast %299 : vector<16xf32> to vector<16x1xf32>
    %301 = vector.broadcast %300 : vector<16x1xf32> to vector<16x16xf32>
    %302 = arith.cmpf oeq, %27, %301 : vector<16x16xf32>
    %cst_146 = arith.constant 0x7F800000 : f32
    %303 = vector.broadcast %cst_146 : f32 to vector<16x16xf32>
    %304 = arith.select %302, %303, %292 : vector<16x16xi1>, vector<16x16xf32>
    %c0_147 = arith.constant 0 : index
    %c0_148 = arith.constant 0 : index
    %305 = vector.load %arg12[%c0_147, %c0_148] : memref<16x16xf32, #tpu.memory_space<vmem>>, vector<16x16xf32>
    tpu.vector_store %arg12[%c0_147, %c0_148], %304 {strides = array<i32>} : memref<16x16xf32, #tpu.memory_space<vmem>>, vector<16x16xf32>,
    %cst_149 = arith.constant 1.000000e+00 : f32
    %cst_150 = arith.constant 0.000000e+00 : f32
    %306 = vector.broadcast %cst_149 : f32 to vector<16x16xf32>
    %307 = vector.broadcast %cst_150 : f32 to vector<16x16xf32>
    %308 = arith.select %302, %306, %307 : vector<16x16xi1>, vector<16x16xf32>
    %cst_151 = arith.constant dense<0.000000e+00> : vector<16x8xf32>
    %309 = tpu.matmul %308, %3, %cst_151 {dimension_numbers = #tpu.dot_dimension_numbers<[1], [0], [0], [1], [0, 0, 1, 1], [], []>} : vector<16x16xf32>, vector<16x8xf32>, vector<16x8xf32> -> vector<16x8xf32>
    %cst_152 = arith.constant dense<0.000000e+00> : vector<16x16xf32>
    %310 = tpu.matmul %309, %7, %cst_152 {dimension_numbers = #tpu.dot_dimension_numbers<[1], [0], [0], [1], [0, 0, 1, 1], [], []>} : vector<16x8xf32>, vector<8x16xf32>, vector<16x16xf32> -> vector<16x16xf32>
    %311 = vector.broadcast %11 : vector<1x16xf32> to vector<16x16xf32>
    %312 = arith.addf %310, %311 : vector<16x16xf32>
    %cst_153 = arith.constant 0.000000e+00 : f32
    %313 = vector.broadcast %cst_153 : f32 to vector<16x16xf32>
    %314 = arith.cmpf oge, %312, %313 : vector<16x16xf32>
    %cst_154 = arith.constant 2.000000e-01 : f32
    %315 = vector.broadcast %cst_154 : f32 to vector<16x16xf32>
    %316 = arith.mulf %315, %312 : vector<16x16xf32>
    %317 = arith.select %314, %312, %316 : vector<16x16xi1>, vector<16x16xf32>
    %cst_155 = arith.constant dense<0.000000e+00> : vector<16x16xf32>
    %318 = tpu.matmul %309, %8, %cst_155 {dimension_numbers = #tpu.dot_dimension_numbers<[1], [0], [0], [1], [0, 0, 1, 1], [], []>} : vector<16x8xf32>, vector<8x16xf32>, vector<16x16xf32> -> vector<16x16xf32>
    %319 = arith.subf %318, %25 : vector<16x16xf32>
    %320 = vector.broadcast %12 : vector<1x16xf32> to vector<16x16xf32>
    %321 = arith.addf %319, %320 : vector<16x16xf32>
    %cst_156 = arith.constant 0.000000e+00 : f32
    %322 = vector.broadcast %cst_156 : f32 to vector<16x16xf32>
    %323 = arith.cmpf oge, %321, %322 : vector<16x16xf32>
    %cst_157 = arith.constant 2.000000e-01 : f32
    %324 = vector.broadcast %cst_157 : f32 to vector<16x16xf32>
    %325 = arith.mulf %324, %321 : vector<16x16xf32>
    %326 = arith.select %323, %321, %325 : vector<16x16xi1>, vector<16x16xf32>
    %327 = arith.addf %317, %326 : vector<16x16xf32>
    %cst_158 = arith.constant dense<0.000000e+00> : vector<16x16xf32>
    %328 = tpu.matmul %327, %9, %cst_158 {dimension_numbers = #tpu.dot_dimension_numbers<[1], [0], [0], [1], [0, 0, 1, 1], [], []>} : vector<16x16xf32>, vector<16x16xf32>, vector<16x16xf32> -> vector<16x16xf32>
    %329 = vector.broadcast %13 : vector<1x16xf32> to vector<16x16xf32>
    %330 = arith.addf %328, %329 : vector<16x16xf32>
    %cst_159 = arith.constant 0.000000e+00 : f32
    %331 = vector.broadcast %cst_159 : f32 to vector<16x16xf32>
    %332 = arith.cmpf oge, %330, %331 : vector<16x16xf32>
    %cst_160 = arith.constant 2.000000e-01 : f32
    %333 = vector.broadcast %cst_160 : f32 to vector<16x16xf32>
    %334 = arith.mulf %333, %330 : vector<16x16xf32>
    %335 = arith.select %332, %330, %334 : vector<16x16xi1>, vector<16x16xf32>
    %cst_161 = arith.constant dense<0.000000e+00> : vector<32x16xf32>
    %336 = tpu.matmul %10, %335, %cst_161 {dimension_numbers = #tpu.dot_dimension_numbers<[1], [1], [0], [0], [0, 0, 1, 0], [], []>} : vector<32x16xf32>, vector<16x16xf32>, vector<32x16xf32> -> vector<32x16xf32>
    %337 = vector.broadcast %14 : vector<32x1xf32> to vector<32x16xf32>
    %338 = arith.addf %336, %337 : vector<32x16xf32>
    %cst_162 = arith.constant 0.000000e+00 : f32
    %339 = vector.broadcast %cst_162 : f32 to vector<32x16xf32>
    %340 = arith.cmpf oge, %338, %339 : vector<32x16xf32>
    %cst_163 = arith.constant 2.000000e-01 : f32
    %341 = vector.broadcast %cst_163 : f32 to vector<32x16xf32>
    %342 = arith.mulf %341, %338 : vector<32x16xf32>
    %343 = arith.select %340, %338, %342 : vector<32x16xi1>, vector<32x16xf32>
    %344 = arith.maximumf %291, %343 : vector<32x16xf32>
    %c0_164 = arith.constant 0 : index
    %c0_165 = arith.constant 0 : index
    %345 = vector.load %arg12[%c0_164, %c0_165] : memref<16x16xf32, #tpu.memory_space<vmem>>, vector<16x16xf32>
    %cst_166 = arith.constant dense<0x7F800000> : vector<16xf32>
    %346 = vector.multi_reduction <minimumf>, %345, %cst_166 [1] : vector<16x16xf32> to vector<16xf32>
    %347 = vector.shape_cast %346 : vector<16xf32> to vector<16x1xf32>
    %348 = vector.broadcast %347 : vector<16x1xf32> to vector<16x16xf32>
    %349 = arith.cmpf oeq, %345, %348 : vector<16x16xf32>
    %cst_167 = arith.constant 1.600000e+01 : f32
    %350 = vector.broadcast %cst_167 : f32 to vector<16x16xf32>
    %351 = arith.select %349, %27, %350 : vector<16x16xi1>, vector<16x16xf32>
    %cst_168 = arith.constant dense<0x7F800000> : vector<16xf32>
    %352 = vector.multi_reduction <minimumf>, %351, %cst_168 [1] : vector<16x16xf32> to vector<16xf32>
    %353 = vector.shape_cast %352 : vector<16xf32> to vector<16x1xf32>
    %354 = vector.broadcast %353 : vector<16x1xf32> to vector<16x16xf32>
    %355 = arith.cmpf oeq, %27, %354 : vector<16x16xf32>
    %cst_169 = arith.constant 0x7F800000 : f32
    %356 = vector.broadcast %cst_169 : f32 to vector<16x16xf32>
    %357 = arith.select %355, %356, %345 : vector<16x16xi1>, vector<16x16xf32>
    %c0_170 = arith.constant 0 : index
    %c0_171 = arith.constant 0 : index
    %358 = vector.load %arg12[%c0_170, %c0_171] : memref<16x16xf32, #tpu.memory_space<vmem>>, vector<16x16xf32>
    tpu.vector_store %arg12[%c0_170, %c0_171], %357 {strides = array<i32>} : memref<16x16xf32, #tpu.memory_space<vmem>>, vector<16x16xf32>,
    %cst_172 = arith.constant 1.000000e+00 : f32
    %cst_173 = arith.constant 0.000000e+00 : f32
    %359 = vector.broadcast %cst_172 : f32 to vector<16x16xf32>
    %360 = vector.broadcast %cst_173 : f32 to vector<16x16xf32>
    %361 = arith.select %355, %359, %360 : vector<16x16xi1>, vector<16x16xf32>
    %cst_174 = arith.constant dense<0.000000e+00> : vector<16x8xf32>
    %362 = tpu.matmul %361, %3, %cst_174 {dimension_numbers = #tpu.dot_dimension_numbers<[1], [0], [0], [1], [0, 0, 1, 1], [], []>} : vector<16x16xf32>, vector<16x8xf32>, vector<16x8xf32> -> vector<16x8xf32>
    %cst_175 = arith.constant dense<0.000000e+00> : vector<16x16xf32>
    %363 = tpu.matmul %362, %7, %cst_175 {dimension_numbers = #tpu.dot_dimension_numbers<[1], [0], [0], [1], [0, 0, 1, 1], [], []>} : vector<16x8xf32>, vector<8x16xf32>, vector<16x16xf32> -> vector<16x16xf32>
    %364 = vector.broadcast %11 : vector<1x16xf32> to vector<16x16xf32>
    %365 = arith.addf %363, %364 : vector<16x16xf32>
    %cst_176 = arith.constant 0.000000e+00 : f32
    %366 = vector.broadcast %cst_176 : f32 to vector<16x16xf32>
    %367 = arith.cmpf oge, %365, %366 : vector<16x16xf32>
    %cst_177 = arith.constant 2.000000e-01 : f32
    %368 = vector.broadcast %cst_177 : f32 to vector<16x16xf32>
    %369 = arith.mulf %368, %365 : vector<16x16xf32>
    %370 = arith.select %367, %365, %369 : vector<16x16xi1>, vector<16x16xf32>
    %cst_178 = arith.constant dense<0.000000e+00> : vector<16x16xf32>
    %371 = tpu.matmul %362, %8, %cst_178 {dimension_numbers = #tpu.dot_dimension_numbers<[1], [0], [0], [1], [0, 0, 1, 1], [], []>} : vector<16x8xf32>, vector<8x16xf32>, vector<16x16xf32> -> vector<16x16xf32>
    %372 = arith.subf %371, %25 : vector<16x16xf32>
    %373 = vector.broadcast %12 : vector<1x16xf32> to vector<16x16xf32>
    %374 = arith.addf %372, %373 : vector<16x16xf32>
    %cst_179 = arith.constant 0.000000e+00 : f32
    %375 = vector.broadcast %cst_179 : f32 to vector<16x16xf32>
    %376 = arith.cmpf oge, %374, %375 : vector<16x16xf32>
    %cst_180 = arith.constant 2.000000e-01 : f32
    %377 = vector.broadcast %cst_180 : f32 to vector<16x16xf32>
    %378 = arith.mulf %377, %374 : vector<16x16xf32>
    %379 = arith.select %376, %374, %378 : vector<16x16xi1>, vector<16x16xf32>
    %380 = arith.addf %370, %379 : vector<16x16xf32>
    %cst_181 = arith.constant dense<0.000000e+00> : vector<16x16xf32>
    %381 = tpu.matmul %380, %9, %cst_181 {dimension_numbers = #tpu.dot_dimension_numbers<[1], [0], [0], [1], [0, 0, 1, 1], [], []>} : vector<16x16xf32>, vector<16x16xf32>, vector<16x16xf32> -> vector<16x16xf32>
    %382 = vector.broadcast %13 : vector<1x16xf32> to vector<16x16xf32>
    %383 = arith.addf %381, %382 : vector<16x16xf32>
    %cst_182 = arith.constant 0.000000e+00 : f32
    %384 = vector.broadcast %cst_182 : f32 to vector<16x16xf32>
    %385 = arith.cmpf oge, %383, %384 : vector<16x16xf32>
    %cst_183 = arith.constant 2.000000e-01 : f32
    %386 = vector.broadcast %cst_183 : f32 to vector<16x16xf32>
    %387 = arith.mulf %386, %383 : vector<16x16xf32>
    %388 = arith.select %385, %383, %387 : vector<16x16xi1>, vector<16x16xf32>
    %cst_184 = arith.constant dense<0.000000e+00> : vector<32x16xf32>
    %389 = tpu.matmul %10, %388, %cst_184 {dimension_numbers = #tpu.dot_dimension_numbers<[1], [1], [0], [0], [0, 0, 1, 0], [], []>} : vector<32x16xf32>, vector<16x16xf32>, vector<32x16xf32> -> vector<32x16xf32>
    %390 = vector.broadcast %14 : vector<32x1xf32> to vector<32x16xf32>
    %391 = arith.addf %389, %390 : vector<32x16xf32>
    %cst_185 = arith.constant 0.000000e+00 : f32
    %392 = vector.broadcast %cst_185 : f32 to vector<32x16xf32>
    %393 = arith.cmpf oge, %391, %392 : vector<32x16xf32>
    %cst_186 = arith.constant 2.000000e-01 : f32
    %394 = vector.broadcast %cst_186 : f32 to vector<32x16xf32>
    %395 = arith.mulf %394, %391 : vector<32x16xf32>
    %396 = arith.select %393, %391, %395 : vector<32x16xi1>, vector<32x16xf32>
    %397 = arith.maximumf %344, %396 : vector<32x16xf32>
    %c0_187 = arith.constant 0 : index
    %c0_188 = arith.constant 0 : index
    %398 = vector.load %arg12[%c0_187, %c0_188] : memref<16x16xf32, #tpu.memory_space<vmem>>, vector<16x16xf32>
    %cst_189 = arith.constant dense<0x7F800000> : vector<16xf32>
    %399 = vector.multi_reduction <minimumf>, %398, %cst_189 [1] : vector<16x16xf32> to vector<16xf32>
    %400 = vector.shape_cast %399 : vector<16xf32> to vector<16x1xf32>
    %401 = vector.broadcast %400 : vector<16x1xf32> to vector<16x16xf32>
    %402 = arith.cmpf oeq, %398, %401 : vector<16x16xf32>
    %cst_190 = arith.constant 1.600000e+01 : f32
    %403 = vector.broadcast %cst_190 : f32 to vector<16x16xf32>
    %404 = arith.select %402, %27, %403 : vector<16x16xi1>, vector<16x16xf32>
    %cst_191 = arith.constant dense<0x7F800000> : vector<16xf32>
    %405 = vector.multi_reduction <minimumf>, %404, %cst_191 [1] : vector<16x16xf32> to vector<16xf32>
    %406 = vector.shape_cast %405 : vector<16xf32> to vector<16x1xf32>
    %407 = vector.broadcast %406 : vector<16x1xf32> to vector<16x16xf32>
    %408 = arith.cmpf oeq, %27, %407 : vector<16x16xf32>
    %cst_192 = arith.constant 0x7F800000 : f32
    %409 = vector.broadcast %cst_192 : f32 to vector<16x16xf32>
    %410 = arith.select %408, %409, %398 : vector<16x16xi1>, vector<16x16xf32>
    %c0_193 = arith.constant 0 : index
    %c0_194 = arith.constant 0 : index
    %411 = vector.load %arg12[%c0_193, %c0_194] : memref<16x16xf32, #tpu.memory_space<vmem>>, vector<16x16xf32>
    tpu.vector_store %arg12[%c0_193, %c0_194], %410 {strides = array<i32>} : memref<16x16xf32, #tpu.memory_space<vmem>>, vector<16x16xf32>,
    %cst_195 = arith.constant 1.000000e+00 : f32
    %cst_196 = arith.constant 0.000000e+00 : f32
    %412 = vector.broadcast %cst_195 : f32 to vector<16x16xf32>
    %413 = vector.broadcast %cst_196 : f32 to vector<16x16xf32>
    %414 = arith.select %408, %412, %413 : vector<16x16xi1>, vector<16x16xf32>
    %cst_197 = arith.constant dense<0.000000e+00> : vector<16x8xf32>
    %415 = tpu.matmul %414, %3, %cst_197 {dimension_numbers = #tpu.dot_dimension_numbers<[1], [0], [0], [1], [0, 0, 1, 1], [], []>} : vector<16x16xf32>, vector<16x8xf32>, vector<16x8xf32> -> vector<16x8xf32>
    %cst_198 = arith.constant dense<0.000000e+00> : vector<16x16xf32>
    %416 = tpu.matmul %415, %7, %cst_198 {dimension_numbers = #tpu.dot_dimension_numbers<[1], [0], [0], [1], [0, 0, 1, 1], [], []>} : vector<16x8xf32>, vector<8x16xf32>, vector<16x16xf32> -> vector<16x16xf32>
    %417 = vector.broadcast %11 : vector<1x16xf32> to vector<16x16xf32>
    %418 = arith.addf %416, %417 : vector<16x16xf32>
    %cst_199 = arith.constant 0.000000e+00 : f32
    %419 = vector.broadcast %cst_199 : f32 to vector<16x16xf32>
    %420 = arith.cmpf oge, %418, %419 : vector<16x16xf32>
    %cst_200 = arith.constant 2.000000e-01 : f32
    %421 = vector.broadcast %cst_200 : f32 to vector<16x16xf32>
    %422 = arith.mulf %421, %418 : vector<16x16xf32>
    %423 = arith.select %420, %418, %422 : vector<16x16xi1>, vector<16x16xf32>
    %cst_201 = arith.constant dense<0.000000e+00> : vector<16x16xf32>
    %424 = tpu.matmul %415, %8, %cst_201 {dimension_numbers = #tpu.dot_dimension_numbers<[1], [0], [0], [1], [0, 0, 1, 1], [], []>} : vector<16x8xf32>, vector<8x16xf32>, vector<16x16xf32> -> vector<16x16xf32>
    %425 = arith.subf %424, %25 : vector<16x16xf32>
    %426 = vector.broadcast %12 : vector<1x16xf32> to vector<16x16xf32>
    %427 = arith.addf %425, %426 : vector<16x16xf32>
    %cst_202 = arith.constant 0.000000e+00 : f32
    %428 = vector.broadcast %cst_202 : f32 to vector<16x16xf32>
    %429 = arith.cmpf oge, %427, %428 : vector<16x16xf32>
    %cst_203 = arith.constant 2.000000e-01 : f32
    %430 = vector.broadcast %cst_203 : f32 to vector<16x16xf32>
    %431 = arith.mulf %430, %427 : vector<16x16xf32>
    %432 = arith.select %429, %427, %431 : vector<16x16xi1>, vector<16x16xf32>
    %433 = arith.addf %423, %432 : vector<16x16xf32>
    %cst_204 = arith.constant dense<0.000000e+00> : vector<16x16xf32>
    %434 = tpu.matmul %433, %9, %cst_204 {dimension_numbers = #tpu.dot_dimension_numbers<[1], [0], [0], [1], [0, 0, 1, 1], [], []>} : vector<16x16xf32>, vector<16x16xf32>, vector<16x16xf32> -> vector<16x16xf32>
    %435 = vector.broadcast %13 : vector<1x16xf32> to vector<16x16xf32>
    %436 = arith.addf %434, %435 : vector<16x16xf32>
    %cst_205 = arith.constant 0.000000e+00 : f32
    %437 = vector.broadcast %cst_205 : f32 to vector<16x16xf32>
    %438 = arith.cmpf oge, %436, %437 : vector<16x16xf32>
    %cst_206 = arith.constant 2.000000e-01 : f32
    %439 = vector.broadcast %cst_206 : f32 to vector<16x16xf32>
    %440 = arith.mulf %439, %436 : vector<16x16xf32>
    %441 = arith.select %438, %436, %440 : vector<16x16xi1>, vector<16x16xf32>
    %cst_207 = arith.constant dense<0.000000e+00> : vector<32x16xf32>
    %442 = tpu.matmul %10, %441, %cst_207 {dimension_numbers = #tpu.dot_dimension_numbers<[1], [1], [0], [0], [0, 0, 1, 0], [], []>} : vector<32x16xf32>, vector<16x16xf32>, vector<32x16xf32> -> vector<32x16xf32>
    %443 = vector.broadcast %14 : vector<32x1xf32> to vector<32x16xf32>
    %444 = arith.addf %442, %443 : vector<32x16xf32>
    %cst_208 = arith.constant 0.000000e+00 : f32
    %445 = vector.broadcast %cst_208 : f32 to vector<32x16xf32>
    %446 = arith.cmpf oge, %444, %445 : vector<32x16xf32>
    %cst_209 = arith.constant 2.000000e-01 : f32
    %447 = vector.broadcast %cst_209 : f32 to vector<32x16xf32>
    %448 = arith.mulf %447, %444 : vector<32x16xf32>
    %449 = arith.select %446, %444, %448 : vector<32x16xi1>, vector<32x16xf32>
    %450 = arith.maximumf %397, %449 : vector<32x16xf32>
    %c0_210 = arith.constant 0 : index
    %c0_211 = arith.constant 0 : index
    %451 = vector.load %arg12[%c0_210, %c0_211] : memref<16x16xf32, #tpu.memory_space<vmem>>, vector<16x16xf32>
    %cst_212 = arith.constant dense<0x7F800000> : vector<16xf32>
    %452 = vector.multi_reduction <minimumf>, %451, %cst_212 [1] : vector<16x16xf32> to vector<16xf32>
    %453 = vector.shape_cast %452 : vector<16xf32> to vector<16x1xf32>
    %454 = vector.broadcast %453 : vector<16x1xf32> to vector<16x16xf32>
    %455 = arith.cmpf oeq, %451, %454 : vector<16x16xf32>
    %cst_213 = arith.constant 1.600000e+01 : f32
    %456 = vector.broadcast %cst_213 : f32 to vector<16x16xf32>
    %457 = arith.select %455, %27, %456 : vector<16x16xi1>, vector<16x16xf32>
    %cst_214 = arith.constant dense<0x7F800000> : vector<16xf32>
    %458 = vector.multi_reduction <minimumf>, %457, %cst_214 [1] : vector<16x16xf32> to vector<16xf32>
    %459 = vector.shape_cast %458 : vector<16xf32> to vector<16x1xf32>
    %460 = vector.broadcast %459 : vector<16x1xf32> to vector<16x16xf32>
    %461 = arith.cmpf oeq, %27, %460 : vector<16x16xf32>
    %cst_215 = arith.constant 0x7F800000 : f32
    %462 = vector.broadcast %cst_215 : f32 to vector<16x16xf32>
    %463 = arith.select %461, %462, %451 : vector<16x16xi1>, vector<16x16xf32>
    %c0_216 = arith.constant 0 : index
    %c0_217 = arith.constant 0 : index
    %464 = vector.load %arg12[%c0_216, %c0_217] : memref<16x16xf32, #tpu.memory_space<vmem>>, vector<16x16xf32>
    tpu.vector_store %arg12[%c0_216, %c0_217], %463 {strides = array<i32>} : memref<16x16xf32, #tpu.memory_space<vmem>>, vector<16x16xf32>,
    %cst_218 = arith.constant 1.000000e+00 : f32
    %cst_219 = arith.constant 0.000000e+00 : f32
    %465 = vector.broadcast %cst_218 : f32 to vector<16x16xf32>
    %466 = vector.broadcast %cst_219 : f32 to vector<16x16xf32>
    %467 = arith.select %461, %465, %466 : vector<16x16xi1>, vector<16x16xf32>
    %cst_220 = arith.constant dense<0.000000e+00> : vector<16x8xf32>
    %468 = tpu.matmul %467, %3, %cst_220 {dimension_numbers = #tpu.dot_dimension_numbers<[1], [0], [0], [1], [0, 0, 1, 1], [], []>} : vector<16x16xf32>, vector<16x8xf32>, vector<16x8xf32> -> vector<16x8xf32>
    %cst_221 = arith.constant dense<0.000000e+00> : vector<16x16xf32>
    %469 = tpu.matmul %468, %7, %cst_221 {dimension_numbers = #tpu.dot_dimension_numbers<[1], [0], [0], [1], [0, 0, 1, 1], [], []>} : vector<16x8xf32>, vector<8x16xf32>, vector<16x16xf32> -> vector<16x16xf32>
    %470 = vector.broadcast %11 : vector<1x16xf32> to vector<16x16xf32>
    %471 = arith.addf %469, %470 : vector<16x16xf32>
    %cst_222 = arith.constant 0.000000e+00 : f32
    %472 = vector.broadcast %cst_222 : f32 to vector<16x16xf32>
    %473 = arith.cmpf oge, %471, %472 : vector<16x16xf32>
    %cst_223 = arith.constant 2.000000e-01 : f32
    %474 = vector.broadcast %cst_223 : f32 to vector<16x16xf32>
    %475 = arith.mulf %474, %471 : vector<16x16xf32>
    %476 = arith.select %473, %471, %475 : vector<16x16xi1>, vector<16x16xf32>
    %cst_224 = arith.constant dense<0.000000e+00> : vector<16x16xf32>
    %477 = tpu.matmul %468, %8, %cst_224 {dimension_numbers = #tpu.dot_dimension_numbers<[1], [0], [0], [1], [0, 0, 1, 1], [], []>} : vector<16x8xf32>, vector<8x16xf32>, vector<16x16xf32> -> vector<16x16xf32>
    %478 = arith.subf %477, %25 : vector<16x16xf32>
    %479 = vector.broadcast %12 : vector<1x16xf32> to vector<16x16xf32>
    %480 = arith.addf %478, %479 : vector<16x16xf32>
    %cst_225 = arith.constant 0.000000e+00 : f32
    %481 = vector.broadcast %cst_225 : f32 to vector<16x16xf32>
    %482 = arith.cmpf oge, %480, %481 : vector<16x16xf32>
    %cst_226 = arith.constant 2.000000e-01 : f32
    %483 = vector.broadcast %cst_226 : f32 to vector<16x16xf32>
    %484 = arith.mulf %483, %480 : vector<16x16xf32>
    %485 = arith.select %482, %480, %484 : vector<16x16xi1>, vector<16x16xf32>
    %486 = arith.addf %476, %485 : vector<16x16xf32>
    %cst_227 = arith.constant dense<0.000000e+00> : vector<16x16xf32>
    %487 = tpu.matmul %486, %9, %cst_227 {dimension_numbers = #tpu.dot_dimension_numbers<[1], [0], [0], [1], [0, 0, 1, 1], [], []>} : vector<16x16xf32>, vector<16x16xf32>, vector<16x16xf32> -> vector<16x16xf32>
    %488 = vector.broadcast %13 : vector<1x16xf32> to vector<16x16xf32>
    %489 = arith.addf %487, %488 : vector<16x16xf32>
    %cst_228 = arith.constant 0.000000e+00 : f32
    %490 = vector.broadcast %cst_228 : f32 to vector<16x16xf32>
    %491 = arith.cmpf oge, %489, %490 : vector<16x16xf32>
    %cst_229 = arith.constant 2.000000e-01 : f32
    %492 = vector.broadcast %cst_229 : f32 to vector<16x16xf32>
    %493 = arith.mulf %492, %489 : vector<16x16xf32>
    %494 = arith.select %491, %489, %493 : vector<16x16xi1>, vector<16x16xf32>
    %cst_230 = arith.constant dense<0.000000e+00> : vector<32x16xf32>
    %495 = tpu.matmul %10, %494, %cst_230 {dimension_numbers = #tpu.dot_dimension_numbers<[1], [1], [0], [0], [0, 0, 1, 0], [], []>} : vector<32x16xf32>, vector<16x16xf32>, vector<32x16xf32> -> vector<32x16xf32>
    %496 = vector.broadcast %14 : vector<32x1xf32> to vector<32x16xf32>
    %497 = arith.addf %495, %496 : vector<32x16xf32>
    %cst_231 = arith.constant 0.000000e+00 : f32
    %498 = vector.broadcast %cst_231 : f32 to vector<32x16xf32>
    %499 = arith.cmpf oge, %497, %498 : vector<32x16xf32>
    %cst_232 = arith.constant 2.000000e-01 : f32
    %500 = vector.broadcast %cst_232 : f32 to vector<32x16xf32>
    %501 = arith.mulf %500, %497 : vector<32x16xf32>
    %502 = arith.select %499, %497, %501 : vector<32x16xi1>, vector<32x16xf32>
    %503 = arith.maximumf %450, %502 : vector<32x16xf32>
    %c0_233 = arith.constant 0 : index
    %c0_234 = arith.constant 0 : index
    %c0_235 = arith.constant 0 : index
    %504 = vector.load %arg11[%c0_233, %c0_234, %c0_235] : memref<1x32x16xf32, #tpu.memory_space<vmem>>, vector<1x32x16xf32>
    %505 = vector.shape_cast %504 : vector<1x32x16xf32> to vector<32x16xf32>
    %506 = vector.shape_cast %503 : vector<32x16xf32> to vector<1x32x16xf32>
    tpu.vector_store %arg11[%c0_233, %c0_234, %c0_235], %506 {strides = array<i32>} : memref<1x32x16xf32, #tpu.memory_space<vmem>>, vector<1x32x16xf32>,
    return
  }
  func.func @transform_0(%arg0: i32, %arg1: i32) -> (i32, i32, i32) {
    %c0_i32 = arith.constant 0 : i32
    %c0_i32_0 = arith.constant 0 : i32
    %c0_i32_1 = arith.constant 0 : i32
    return %arg0, %c0_i32, %c0_i32_0 : i32, i32, i32
  }
  func.func @transform_1(%arg0: i32, %arg1: i32) -> (i32, i32) {
    %c0_i32 = arith.constant 0 : i32
    %c0_i32_0 = arith.constant 0 : i32
    %c0_i32_1 = arith.constant 0 : i32
    return %c0_i32, %c0_i32_0 : i32, i32
  }
  func.func @transform_2(%arg0: i32, %arg1: i32) -> (i32, i32) {
    %c0_i32 = arith.constant 0 : i32
    %c0_i32_0 = arith.constant 0 : i32
    %c0_i32_1 = arith.constant 0 : i32
    return %c0_i32, %c0_i32_0 : i32, i32
  }
  func.func @transform_3(%arg0: i32, %arg1: i32) -> (i32, i32) {
    %c0_i32 = arith.constant 0 : i32
    %c0_i32_0 = arith.constant 0 : i32
    %c0_i32_1 = arith.constant 0 : i32
    return %c0_i32, %c0_i32_0 : i32, i32
  }
  func.func @transform_4(%arg0: i32, %arg1: i32) -> (i32, i32) {
    %c0_i32 = arith.constant 0 : i32
    %c0_i32_0 = arith.constant 0 : i32
    %c0_i32_1 = arith.constant 0 : i32
    return %c0_i32, %c0_i32_0 : i32, i32
  }
  func.func @transform_5(%arg0: i32, %arg1: i32) -> (i32, i32) {
    %c0_i32 = arith.constant 0 : i32
    %c0_i32_0 = arith.constant 0 : i32
    %c0_i32_1 = arith.constant 0 : i32
    return %c0_i32, %c0_i32_0 : i32, i32
  }
  func.func @transform_6(%arg0: i32, %arg1: i32) -> (i32, i32) {
    %c0_i32 = arith.constant 0 : i32
    %c0_i32_0 = arith.constant 0 : i32
    %c0_i32_1 = arith.constant 0 : i32
    return %c0_i32, %c0_i32_0 : i32, i32
  }
  func.func @transform_7(%arg0: i32, %arg1: i32) -> (i32, i32) {
    %c0_i32 = arith.constant 0 : i32
    %c0_i32_0 = arith.constant 0 : i32
    %c0_i32_1 = arith.constant 0 : i32
    return %c0_i32, %c0_i32_0 : i32, i32
  }
  func.func @transform_8(%arg0: i32, %arg1: i32) -> (i32, i32) {
    %c0_i32 = arith.constant 0 : i32
    %c0_i32_0 = arith.constant 0 : i32
    %c0_i32_1 = arith.constant 0 : i32
    return %c0_i32, %c0_i32_0 : i32, i32
  }
  func.func @transform_9(%arg0: i32, %arg1: i32) -> (i32, i32, i32) {
    %c0_i32 = arith.constant 0 : i32
    %c0_i32_0 = arith.constant 0 : i32
    return %arg0, %c0_i32, %arg1 : i32, i32, i32
  }
}

</mosaic_0001>

<bundles_post_ra>
// kernel: edgeconv_forward.1
= control target key start
LH: loop header
LB: loop body
LE: loop exit
PB: predicated region body
PF: predicated region fallthrough
CT: control target
= control target key end

     0   :  { %s7789_s0 = inlined_call_operand.hbm [shape: f32[2,16,8], index: 0, kind: input, shape index: {}]   ;;  %s7790_s1 = inlined_call_operand.hbm [shape: f32[8,16], index: 1, kind: input, shape index: {}]   ;;  %s7791_s2 = inlined_call_operand.hbm [shape: f32[1,16], index: 2, kind: input, shape index: {}]   ;;  %s7792_s3 = inlined_call_operand.hbm [shape: f32[8,16], index: 3, kind: input, shape index: {}]   ;;  %s7793_s4 = inlined_call_operand.hbm [shape: f32[1,16], index: 4, kind: input, shape index: {}]   ;;  %s7794_s5 = inlined_call_operand.hbm [shape: f32[16,16], index: 5, kind: input, shape index: {}]   ;;  %s7795_s6 = inlined_call_operand.hbm [shape: f32[1,16], index: 6, kind: input, shape index: {}]   ;;  %s7796_s7 = inlined_call_operand.hbm [shape: f32[32,16], index: 7, kind: input, shape index: {}]   ;;  %s7797_s8 = inlined_call_operand.hbm [shape: f32[32,1], index: 8, kind: input, shape index: {}]   ;;  %s7798_s9 = inlined_call_operand.hbm [shape: f32[2,32,16], index: 9, kind: output, shape index: {}]  }
   0x1   :  { %7807 = sst [smem:[#allocation27_spill]] %s7790_s1 }
   0x2   :  { %7808 = sst [smem:[#allocation28_spill]] %s7792_s3 }
   0x3   :  { %7809 = sst [smem:[#allocation29_spill]] %s7798_s9 }
   0x4   :  { %14 = vsyncpa [#allocation4], 0 }
   0x5   :  { %16 = vsyncpa [#allocation4 + $0x1], 0 }
   0x6   :  { %17 = vsyncpa [#allocation7], 0 }
   0x7   :  { %18 = vsyncpa [#allocation10], 0 }
   0x8   :  { %19 = vsyncpa [#allocation13], 0 }
   0x9   :  { %20 = vsyncpa [#allocation16], 0 }
   0xa   :  { %21 = vsyncpa [#allocation5], 0 }
   0xb   :  { %23 = vsyncpa [#allocation5 + $0x1], 0  ;;  %s6568_s30 = smov 0   ;;  %s6570_s10 = smov 0  }
   0xc   :  { %s6572_s11 = smov 0   ;;  %s6574_s12 = smov 0  }
   0xd   :  { %s6576_s13 = smov 0   ;;  %s6578_s14 = smov 0  }
   0xe LB: > { %7810 = sst [smem:[#allocation25_spill]] %s6492_s12  ;;  %s7802_s15 = sadd.s32 4294967295, %s6500_s14   ;;  %s6500_s14 = sphi %s6578_s14, %s29_s14   ;;  %s6496_s13 = sphi %s6576_s13, %s7840_s13   ;;  %s6492_s12 = sphi %s6574_s12, %s7839_s12   ;;  %s6488_s11 = sphi %s6572_s11, %s7838_s11   ;;  %s6484_s10 = sphi %s6570_s10, %s7837_s10   ;;  %s6480_s30 = sphi %s6568_s30, %s7836_s30  }
   0xf   : > { %p5185_p0 = scmp.ge.s32.totalorder %s6500_s14, 1  ;;  %p6602_p1 = scmp.eq.s32.totalorder %s7802_s15, 0 }
  0x10   : > { %p268_p2 = scmp.lt.s32.totalorder %s6500_s14, 3  ;;  %s6502_s18 = smov [#allocation6]  }
  0x11   : > { %s7811_s16 = scalar_select %p6602_p1, 1, 0 }
  0x12   : > { %p6607_p3 = pnand %p5185_p0, %p268_p2  ;;  %s281_s19 = sshll.u32 %s6502_s18, 4  ;;  %s282_s19 = int_to_ptr.vmem [resolvable:$true] %s281_s19 }
  0x13   : > { %s6503_s20 = smov [#allocation9]   ;;  %s6504_s23 = smov [#allocation12]  }
  0x14   : > { %s7812_s17 = scalar_select %p6607_p3, 1, 0 }
  0x15   : > { %p6024_p5 = pneg %p6607_p3  ;;  %s303_s21 = sshll.u32 %s6503_s20, 4  ;;  %s6620_s21 = int_to_ptr.vmem [resolvable:$true] %s303_s21 }
  0x16   : > { %7813 = sst [smem:[#allocation26_spill]] %s7812_s17  ;;  %s324_s24 = sshll.u32 %s6504_s23, 4  ;;  %s6622_s24 = int_to_ptr.vmem [resolvable:$true] %s324_s24 }
  0x17   : > { %p6616_p6 = pnand %p6024_p5, %p6602_p1  ;;  %s7815_s1 = sld [smem:[#allocation27_spill]] }
  0x19   : > { %p6632_p8 = pneg %p6616_p6 }
  0x1d   : > { %s6148_s27 = scalar_lea.hbm %s7815_s1, 128 }
  0x1e   : > { %p6149_p7 = scmp.ne.s32.totalorder %s7815_s1, %s6148_s27  ;;  %p6155_p11 = scmp.lt.u32.totalorder %s6148_s27, %s7815_s1 }
  0x20   : > { %p6151_p9 = pnand %p6632_p8, %p6149_p7 }
  0x22   : > { %p6152_p10 = pneg %p6151_p9 }
  0x24   : > { %p6157_p12 = pnand %p6155_p11, %p6152_p10 }
  0x26   : > { %6160 = shalt.err (!%p6157_p12)
}
  0x27   : > { %s6161_s25 = scalar_lea.vmem %s282_s19, 128  ;;  %p6169_p5 = scmp.lt.s32.totalorder %s282_s19, %s282_s19 }
  0x28   : > { %p6162_p13 = scmp.ne.s32.totalorder %s282_s19, %s6161_s25  ;;  %p6170_p4 = scmp.lt.s32.totalorder %s6161_s25, %s6161_s25 }
  0x2a   : > { %p6164_p0 = pnand %p6162_p13, %p6632_p8  ;;  %p6171_p3 = por %p6170_p4, %p6169_p5 }
  0x2c   : > { %p6165_p2 = pneg %p6164_p0 }
  0x2e   : > { %p6172_p1 = pnand %p6171_p3, %p6165_p2 }
  0x30   : > { %6175 = shalt.err (!%p6172_p1)
}
  0x31   : > { %6027 = dma.hbm_to_vmem [thread:$0]  (!%p6616_p6), %s7815_s1, 128, %s282_s19, [#allocation7]  }
  0x32   : > { %s7817_s3 = sld [smem:[#allocation28_spill]] }
  0x38   : > { %s6176_s20 = scalar_lea.hbm %s7817_s3, 128 }
  0x39   : > { %p6177_p7 = scmp.ne.s32.totalorder %s7817_s3, %s6176_s20  ;;  %p6183_p1 = scmp.lt.u32.totalorder %s6176_s20, %s7817_s3 }
  0x3b   : > { %p6179_p9 = pnand %p6177_p7, %p6632_p8 }
  0x3d   : > { %p6180_p4 = pneg %p6179_p9 }
  0x3f   : > { %p6185_p3 = pnand %p6183_p1, %p6180_p4 }
  0x41   : > { %6188 = shalt.err (!%p6185_p3)
}
  0x42   : > { %s6189_s19 = scalar_lea.vmem %s6620_s21, 128  ;;  %p6197_p13 = scmp.lt.s32.totalorder %s6620_s21, %s6620_s21 }
  0x43   : > { %p6190_p10 = scmp.ne.s32.totalorder %s6620_s21, %s6189_s19  ;;  %p6198_p0 = scmp.lt.s32.totalorder %s6189_s19, %s6189_s19 }
  0x45   : > { %p6192_p11 = pnand %p6190_p10, %p6632_p8  ;;  %p6199_p2 = por %p6198_p0, %p6197_p13 }
  0x47   : > { %p6193_p12 = pneg %p6192_p11 }
  0x49   : > { %p6200_p5 = pnand %p6199_p2, %p6193_p12 }
  0x4b   : > { %6203 = shalt.err (!%p6200_p5)
}
  0x4c   : > { %6033 = dma.hbm_to_vmem [thread:$0]  (!%p6616_p6), %s7817_s3, 128, %s6620_s21, [#allocation10]  }
  0x4d   : > { %s6204_s27 = scalar_lea.hbm %s7794_s5, 256 }
  0x4e   : > { %p6205_p7 = scmp.ne.s32.totalorder %s7794_s5, %s6204_s27  ;;  %p6211_p1 = scmp.lt.u32.totalorder %s6204_s27, %s7794_s5 }
  0x50   : > { %p6207_p9 = pnand %p6205_p7, %p6632_p8 }
  0x52   : > { %p6208_p4 = pneg %p6207_p9 }
  0x54   : > { %p6213_p3 = pnand %p6211_p1, %p6208_p4 }
  0x56   : > { %6216 = shalt.err (!%p6213_p3)
}
  0x57   : > { %s6217_s21 = scalar_lea.vmem %s6622_s24, 256  ;;  %p6225_p13 = scmp.lt.s32.totalorder %s6622_s24, %s6622_s24 }
  0x58   : > { %p6218_p10 = scmp.ne.s32.totalorder %s6622_s24, %s6217_s21  ;;  %p6226_p0 = scmp.lt.s32.totalorder %s6217_s21, %s6217_s21 }
  0x5a   : > { %p6220_p11 = pnand %p6218_p10, %p6632_p8  ;;  %p6227_p2 = por %p6226_p0, %p6225_p13 }
  0x5c   : > { %p6221_p12 = pneg %p6220_p11 }
  0x5e   : > { %p6228_p5 = pnand %p6227_p2, %p6221_p12 }
  0x60   : > { %6231 = shalt.err (!%p6228_p5)
}
  0x61   : > { %s6505_s19 = smov 128   ;;  %s6506_s9 = smov 8  }
  0x62   : > { %6039 = dma.hbm_to_vmem [thread:$0]  (!%p6616_p6), %s7794_s5, 256, %s6622_s24, [#allocation13], %s6505_s19, %s6505_s19, %s6506_s9  }
  0x63   : > { %s6507_s28 = smov [#allocation15]   ;;  %s6508_s29 = smov [#allocation8]  }
  0x64   : > { %s348_s27 = sshll.u32 %s6507_s28, 4  ;;  %s292_s20 = sshll.u32 %s6508_s29, 4  ;;  %s349_s27 = int_to_ptr.vmem [resolvable:$true] %s348_s27  ;;  %s293_s20 = int_to_ptr.vmem [resolvable:$true] %s292_s20 }
  0x65   : > { %s6232_s21 = scalar_lea.hbm %s7796_s7, 512 }
  0x66   : > { %p6233_p7 = scmp.ne.s32.totalorder %s7796_s7, %s6232_s21  ;;  %p6239_p1 = scmp.lt.u32.totalorder %s6232_s21, %s7796_s7 }
  0x68   : > { %p6235_p9 = pnand %p6233_p7, %p6632_p8 }
  0x6a   : > { %p6236_p4 = pneg %p6235_p9 }
  0x6c   : > { %p6241_p3 = pnand %p6239_p1, %p6236_p4 }
  0x6e   : > { %6244 = shalt.err (!%p6241_p3)
}
  0x6f   : > { %s6245_s24 = scalar_lea.vmem %s349_s27, 512  ;;  %p6253_p13 = scmp.lt.s32.totalorder %s349_s27, %s349_s27 }
  0x70   : > { %p6246_p10 = scmp.ne.s32.totalorder %s349_s27, %s6245_s24  ;;  %p6254_p0 = scmp.lt.s32.totalorder %s6245_s24, %s6245_s24 }
  0x72   : > { %p6248_p11 = pnand %p6246_p10, %p6632_p8  ;;  %p6255_p2 = por %p6254_p0, %p6253_p13 }
  0x74   : > { %p6249_p12 = pneg %p6248_p11 }
  0x76   : > { %p6256_p5 = pnand %p6255_p2, %p6249_p12 }
  0x78   : > { %6259 = shalt.err (!%p6256_p5)
}
  0x79   : > { %6045 = dma.hbm_to_vmem [thread:$0]  (!%p6616_p6), %s7796_s7, 512, %s349_s27, [#allocation16], %s6505_s19, %s6505_s19, %s6506_s9  }
  0x7a   : > { %s6260_s15 = scalar_lea.hbm %s7791_s2, 16 }
  0x7b   : > { %p6261_p7 = scmp.ne.s32.totalorder %s7791_s2, %s6260_s15  ;;  %p6267_p1 = scmp.lt.u32.totalorder %s6260_s15, %s7791_s2 }
  0x7d   : > { %p6263_p9 = pnand %p6261_p7, %p6632_p8 }
  0x7f   : > { %p6264_p4 = pneg %p6263_p9 }
  0x81   : > { %p6269_p3 = pnand %p6267_p1, %p6264_p4 }
  0x83   : > { %6272 = shalt.err (!%p6269_p3)
}
  0x84   : > { %s6273_s25 = scalar_lea.vmem %s293_s20, 16  ;;  %s6280_s27 = scalar_lea.vmem %s293_s20, 32 }
  0x85   : > { %p6274_p10 = scmp.ne.s32.totalorder %s293_s20, %s6273_s25  ;;  %p6281_p13 = scmp.lt.s32.totalorder %s293_s20, %s293_s20 }
  0x86   : > { %p6282_p0 = scmp.lt.s32.totalorder %s6280_s27, %s6273_s25 }
  0x87   : > { %p6276_p11 = pnand %p6274_p10, %p6632_p8 }
  0x88   : > { %p6283_p2 = por %p6282_p0, %p6281_p13 }
  0x89   : > { %p6277_p12 = pneg %p6276_p11 }
  0x8b   : > { %p6284_p5 = pnand %p6283_p2, %p6277_p12 }
  0x8d   : > { %6287 = shalt.err (!%p6284_p5)
}
  0x8e   : > { %6030 = dma.hbm_to_vmem [thread:$0]  (!%p6616_p6), %s7791_s2, 16, %s293_s20, [#allocation7]  }
  0x8f   : > { %s6509_s1 = smov [#allocation11]   ;;  %s6510_s12 = smov [#allocation14]  }
  0x90   : > { %s314_s3 = sshll.u32 %s6509_s1, 4  ;;  %s338_s17 = sshll.u32 %s6510_s12, 4  ;;  %s315_s3 = int_to_ptr.vmem [resolvable:$true] %s314_s3  ;;  %s339_s17 = int_to_ptr.vmem [resolvable:$true] %s338_s17 }
  0x91   : > { %s6288_s28 = scalar_lea.hbm %s7793_s4, 16 }
  0x92   : > { %p6289_p7 = scmp.ne.s32.totalorder %s7793_s4, %s6288_s28  ;;  %p6295_p1 = scmp.lt.u32.totalorder %s6288_s28, %s7793_s4 }
  0x94   : > { %p6291_p9 = pnand %p6289_p7, %p6632_p8 }
  0x96   : > { %p6292_p4 = pneg %p6291_p9 }
  0x98   : > { %p6297_p3 = pnand %p6295_p1, %p6292_p4 }
  0x9a   : > { %6300 = shalt.err (!%p6297_p3)
}
  0x9b   : > { %s6301_s20 = scalar_lea.vmem %s315_s3, 16  ;;  %s6308_s21 = scalar_lea.vmem %s315_s3, 32 }
  0x9c   : > { %p6302_p10 = scmp.ne.s32.totalorder %s315_s3, %s6301_s20  ;;  %p6309_p13 = scmp.lt.s32.totalorder %s315_s3, %s315_s3 }
  0x9d   : > { %p6310_p0 = scmp.lt.s32.totalorder %s6308_s21, %s6301_s20 }
  0x9e   : > { %p6304_p11 = pnand %p6302_p10, %p6632_p8 }
  0x9f   : > { %p6311_p2 = por %p6310_p0, %p6309_p13 }
  0xa0   : > { %p6305_p12 = pneg %p6304_p11 }
  0xa2   : > { %p6312_p5 = pnand %p6311_p2, %p6305_p12 }
  0xa4   : > { %6315 = shalt.err (!%p6312_p5)
}
  0xa5   : > { %6036 = dma.hbm_to_vmem [thread:$0]  (!%p6616_p6), %s7793_s4, 16, %s315_s3, [#allocation10]  }
  0xa6   : > { %s6316_s26 = scalar_lea.hbm %s7795_s6, 16 }
  0xa7   : > { %p6317_p7 = scmp.ne.s32.totalorder %s7795_s6, %s6316_s26  ;;  %p6323_p1 = scmp.lt.u32.totalorder %s6316_s26, %s7795_s6 }
  0xa9   : > { %p6319_p9 = pnand %p6317_p7, %p6632_p8 }
  0xab   : > { %p6320_p4 = pneg %p6319_p9 }
  0xad   : > { %p6325_p3 = pnand %p6323_p1, %p6320_p4 }
  0xaf   : > { %6328 = shalt.err (!%p6325_p3)
}
  0xb0   : > { %s6329_s27 = scalar_lea.vmem %s339_s17, 16  ;;  %s6336_s3 = scalar_lea.vmem %s339_s17, 32 }
  0xb1   : > { %p6330_p10 = scmp.ne.s32.totalorder %s339_s17, %s6329_s27  ;;  %p6337_p13 = scmp.lt.s32.totalorder %s339_s17, %s339_s17 }
  0xb2   : > { %p6338_p0 = scmp.lt.s32.totalorder %s6336_s3, %s6329_s27 }
  0xb3   : > { %p6332_p11 = pnand %p6330_p10, %p6632_p8 }
  0xb4   : > { %p6339_p2 = por %p6338_p0, %p6337_p13 }
  0xb5   : > { %p6333_p12 = pneg %p6332_p11 }
  0xb7   : > { %p6340_p5 = pnand %p6339_p2, %p6333_p12 }
  0xb9   : > { %6343 = shalt.err (!%p6340_p5)
}
  0xba   : > { %6042 = dma.hbm_to_vmem [thread:$0]  (!%p6616_p6), %s7795_s6, 16, %s339_s17, [#allocation13]  }
  0xbb   : > { %s6511_s24 = smov [#allocation17]   ;;  %s6344_s26 = scalar_lea.hbm %s7797_s8, 512 }
  0xbc   : > { %s361_s1 = sshll.u32 %s6511_s24, 4  ;;  %p6345_p7 = scmp.ne.s32.totalorder %s7797_s8, %s6344_s26  ;;  %s362_s1 = int_to_ptr.vmem [resolvable:$true] %s361_s1 }
  0xbd   : > { %p6351_p1 = scmp.lt.u32.totalorder %s6344_s26, %s7797_s8 }
  0xbe   : > { %p6347_p9 = pnand %p6345_p7, %p6632_p8 }
  0xc0   : > { %p6348_p4 = pneg %p6347_p9 }
  0xc2   : > { %p6353_p3 = pnand %p6351_p1, %p6348_p4 }
  0xc4   : > { %6356 = shalt.err (!%p6353_p3)
}
  0xc5   : > { %s6357_s17 = scalar_lea.vmem %s362_s1, 512  ;;  %p6365_p13 = scmp.lt.s32.totalorder %s362_s1, %s362_s1 }
  0xc6   : > { %p6358_p10 = scmp.ne.s32.totalorder %s362_s1, %s6357_s17  ;;  %p6366_p0 = scmp.lt.s32.totalorder %s6357_s17, %s6357_s17 }
  0xc8   : > { %p6360_p11 = pnand %p6358_p10, %p6632_p8  ;;  %p6367_p2 = por %p6366_p0, %p6365_p13 }
  0xca   : > { %p6361_p12 = pneg %p6360_p11 }
  0xcc   : > { %p6368_p5 = pnand %p6367_p2, %p6361_p12 }
  0xce   : > { %6371 = shalt.err (!%p6368_p5)
}
  0xcf   : > { %6048 = dma.hbm_to_vmem [thread:$0]  (!%p6616_p6), %s7797_s8, 512, %s362_s1, [#allocation16], %s6505_s19, %s6505_s19, %s6506_s9  }
  0xd0   : > { %s5184_s22 = sadd.s32 4294967294, %s6500_s14   ;;  %s41_s18 = sadd.s32 1, %s6496_s13 }
  0xd1   : > { %p43_p8 = scmp.ge.s32.totalorder %s41_s18, 2  ;;  %s48_s20 = sadd.s32 1, %s6488_s11 }
  0xd2   : > { %p55_p7 = scmp.ne.s32.totalorder %s6488_s11, %s6484_s10  ;;  %p56_p9 = scmp.eq.s32.totalorder %s6500_s14, 0 }
  0xd3   : > { %s7842_s18 = smov (%p43_p8, %s41_s18), 0  ;;  %p61_p1 = scmp.ne.s32.totalorder %s6484_s10, %s6480_s30 }
  0xd4   : > { %p6801_p4 = por %p56_p9, %p55_p7  ;;  %s45_s24 = ssub.s32 %s6496_s13, %s7842_s18 }
  0xd5   : > { %s7819_s1 = sadd.s32 4294967295, %s6500_s14   ;;  %p46_p3 = scmp.eq.s32.totalorder %s45_s24, 0 }
  0xd6   : > { %p255_p6 = scmp.eq.s32.totalorder %s7819_s1, 1  ;;  %p7820_p10 = scmp.ne.s32.totalorder %s7811_s16, 0 }
  0xd7   : > { %p261_p13 = scmp.eq.s32.totalorder %s5184_s22, 1  ;;  %p6065_p2 = scmp.lt.s32.totalorder %s6500_s14, 2 }
  0xd8   : > { %p6813_p11 = por %p7820_p10, %p61_p1  ;;  %p6817_p12 = por %p255_p6, %p55_p7 }
  0xd9   : > { %s6822_s26 = scalar_select %p46_p3, %s6488_s11, %s48_s20  }
  0xda   : > { %s7822_s15 = scalar_select %p6817_p12, 1, 0 }
  0xdb   : > { %p6824_p0 = por %p261_p13, %p61_p1  ;;  %s375_s29 = sand.u32 1, %s6488_s11  }
  0xdc   : > { %s5349_s23 = sshll.u32 %s6496_s13, 8  ;;  %s5195_s25 = sshll.u32 %s375_s29, 4 }
  0xdd   : > { %s7823_s28 = scalar_select %p6824_p0, 1, 0 }
  0xde   : > { %s6834_s3 = scalar_lea.hbm %s7789_s0, %s5349_s23  ;;  %s379_s22 = scalar_lea.vmem [#allocation3], %s5195_s25 }
  0xdf   : > { %s386_s20 = sshll.u32 %s379_s22, 4  ;;  %p6838_p5 = pnand %p6065_p2, %p6801_p4  ;;  %s6842_s20 = int_to_ptr.vmem [resolvable:$true] %s386_s20 }
  0xe0   : > { %s6844_s1 = scalar_lea.sflag [#allocation4], %s375_s29  ;;  %s6372_s17 = scalar_lea.hbm %s6834_s3, 256 }
  0xe1   : > { %p6373_p8 = scmp.ne.s32.totalorder %s6834_s3, %s6372_s17  ;;  %p6374_p7 = pneg %p6838_p5 }
  0xe2   : > { %s6377_s25 = scalar_lea.hbm %s7789_s0, 512  ;;  %p6378_p4 = scmp.lt.u32.totalorder %s6834_s3, %s7789_s0 }
  0xe3   : > { %p6375_p9 = pnand %p6374_p7, %p6373_p8  ;;  %p6379_p6 = scmp.lt.u32.totalorder %s6377_s25, %s6372_s17 }
  0xe4   : > { %p6381_p10 = scmp.lt.u32.totalorder %s6372_s17, %s6834_s3 }
  0xe5   : > { %p6376_p1 = pneg %p6375_p9  ;;  %p6380_p3 = por %p6379_p6, %p6378_p4 }
  0xe7   : > { %p6382_p13 = por %p6381_p10, %p6380_p3 }
  0xe9   : > { %p6383_p2 = pnand %p6382_p13, %p6376_p1 }
  0xeb   : > { %6386 = shalt.err (!%p6383_p2)
}
  0xec   : > { %s6387_s29 = scalar_lea.vmem %s6842_s20, 256  ;;  %s6512_s23 = smov [#allocation3]  }
  0xed   : > { %p6388_p8 = scmp.ne.s32.totalorder %s6842_s20, %s6387_s29  ;;  %s6392_s21 = sshll.u32 %s6512_s23, 4  ;;  %s6393_s21 = int_to_ptr.vmem [resolvable:$false] %s6392_s21 }
  0xee   : > { %s6394_s27 = scalar_lea.vmem %s6393_s21, 512  ;;  %p6395_p12 = scmp.lt.s32.totalorder %s6842_s20, %s6393_s21 }
  0xef   : > { %p6390_p9 = pnand %p6388_p8, %p6374_p7  ;;  %p6396_p4 = scmp.lt.s32.totalorder %s6394_s27, %s6387_s29 }
  0xf1   : > { %p6391_p0 = pneg %p6390_p9  ;;  %p6397_p6 = por %p6396_p4, %p6395_p12 }
  0xf3   : > { %p6398_p3 = pnand %p6397_p6, %p6391_p0 }
  0xf5   : > { %6401 = shalt.err (!%p6398_p3)
}
  0xf6   : > { %6052 = dma.hbm_to_vmem [thread:$0]  (!%p6838_p5), %s6834_s3, 256, %s6842_s20, %s6844_s1, %s6505_s19, %s6505_s19, %s6506_s9  }
  0xf7   : > { %s7825_s17 = sld [smem:[#allocation26_spill]] }
  0xfd   : > { %p7826_p7 = scmp.ne.s32.totalorder %s7825_s17, 0 }
  0xfe   : > { %s6878_s25 = sand.u32 (!%p7826_p7), 1, %s6484_s10  }
  0xff   : > { %398 = sbr.rel (%p7826_p7) target bundleno = 5416 (0x1528), region = 56  ;;  %s5199_s22 = sshll.u32 (!%p7826_p7), %s6878_s25, 4 }
 0x100   : > { %s401_s29 = scalar_lea.sflag (!%p7826_p7), [#allocation4], %s6878_s25  ;;  %s404_s23 = scalar_lea.vmem (!%p7826_p7), [#allocation3], %s5199_s22 }
 0x106   : > { %6455 = dma.done.wait (%p6813_p11), %s401_s29, 256  }
 0x107   : > { %6457 = vsyncadd (%p6813_p11), %s401_s29, 4294967040  ;;  %p7827_p12 = scmp.ne.s32.totalorder %s7811_s16, 0 }
 0x109   : > { %6459 = dma.done.wait (%p7827_p12), [#allocation7], 144  }
 0x10a   : > { %6461 = vsyncadd (%p7827_p12), [#allocation7], 4294967152 }
 0x10b   : > { %6463 = dma.done.wait (%p7827_p12), [#allocation10], 144  }
 0x10c   : > { %6465 = vsyncadd (%p7827_p12), [#allocation10], 4294967152 }
 0x10d   : > { %6467 = dma.done.wait (%p7827_p12), [#allocation13], 272  }
 0x10e   : > { %6469 = vsyncadd (%p7827_p12), [#allocation13], 4294967024 }
 0x10f   : > { %6471 = dma.done.wait (%p7827_p12), [#allocation16], 1024  }
 0x110   : > { %6473 = vsyncadd (%p7827_p12), [#allocation16], 4294966272  ;;  %v472_v0 = vld [vmem:[%s404_s23] sm:$0xff]  ;;  %vm494_vm0 = vcmask 64512   ;;  %v473_v1 = vld [vmem:[%s404_s23 + $0x8] sm:$0xff]  ;;  %vm507_vm1 = vcmask 72704   ;;  %v679_v23 = vlaneseq }
 0x111   : > { %v497_v2 = vmul.f32 %v472_v0, %v472_v0  ;;  %v498_v3 = vmul.f32 %v473_v1, %v473_v1  ;;  %5547 = vmatprep.mubr.msk.f32.mxu1 %vm494_vm0, %v472_v0  ;;  %v492_v6 = vmul.f32 -2.0, %v472_v0  ;;  %vm5857_vm2 = vmpackc.low %vm507_vm1, %vm507_vm1  ;;  %v493_v13 = vmul.f32 -2.0, %v473_v1  ;;  %v6915_v22 = vld [vmem:[#allocation9] sm:$0xff]  ;;  %v6940_v44 = vld [vmem:[#allocation6] sm:$0xff]  ;;  %s5208_s16 = sshll.u32 %s6878_s25, 5  ;;  %s7831_s19 = sld [smem:[#allocation25_spill]] }
 0x112   : > { %vm595_vm3 = vcmask 130048   ;;  %v6913_v21 = vpack.c.bf16 %v473_v1, %v472_v0  ;;  %5545 = vmatprep.subr.mxu1 %v6915_v22  ;;  %v680_v24 = vand.u32 127, %v679_v23  ;;  %v6513_v34 = vmov 0.0   ;;  %v479_v62 = vld [vmem:[#allocation12] sm:$0xff]  ;;  %v480_v63 = vld [vmem:[#allocation12 + $0x8] sm:$0xff]  ;;  %s470_s12 = scalar_lea.vmem [#allocation18], %s5208_s16 }
 0x113   : > { %v499_v4 = vsel %vm494_vm0, %v497_v2, 0.0  ;;  %v502_v5 = vsel %vm494_vm0, %v498_v3, 0.0  ;;  %v495_v7 = vsel %vm494_vm0, %v492_v6, 1.0  ;;  %v496_v14 = vsel %vm494_vm0, %v493_v13, 1.0  ;;  %5546 = vmatpush3.msra.mxu1 %v6915_v22  ;;  %v6971_v2 = vld [vmem:[#allocation8] ss:$0 sm:$0xff] }
 0x114   : > { %500 = vadd.xlane.f32.xlu0 %v499_v4  ;;  %5542 = vmatprep.mubr.msk.f32.mxu0 %vm507_vm1, %v495_v7  ;;  %v6922_v25 = vcvt.s32.f32 %v680_v24  ;;  %v6975_v6 = vld [vmem:[#allocation11] ss:$0 sm:$0xff]  ;;  %s5022_s3 = sshll.u32 %s470_s12, 4  ;;  %s7832_s1 = sld [smem:[#allocation29_spill]]  ;;  %s7738_s3 = int_to_ptr.vmem [resolvable:$true] %s5022_s3 }
 0x115   : > { %5548 = vmatmul.mubr.msk.f32.vlgmr.msra.gmra.mrb[0].mxu1 %vm494_vm0, %v473_v1  ;;  %5863 = vmatprep.subr.bf16.mxu1 %v6913_v21  ;;  %s5008_s27 = scalar_lea.sflag [#allocation5], %s6878_s25  ;;  %s6402_s17 = scalar_lea.vmem %s7738_s3, 512 }
 0x116   : > { %5865 = vmatpush3.bf16.msra.mxu1 %v6913_v21  ;;  %p6403_p11 = scmp.ne.s32.totalorder %s7738_s3, %s6402_s17  ;;  %p7833_p0 = scmp.ne.s32.totalorder %s7822_s15, 0 }
 0x117   : > { %5557 = vmatprep.subr.mxu1 %v6940_v44  ;;  %s5350_s9 = sshll.u32 %s7831_s19, 9  ;;  %s6515_s22 = smov [#allocation18]  }
 0x118   : > { %503 = vadd.xlane.f32.xlu0 %v502_v5  ;;  %p6404_p5 = pnand %p6403_p11, %p7833_p0  ;;  %s6406_s29 = sshll.u32 %s6515_s22, 4  ;;  %s6407_s29 = int_to_ptr.vmem [resolvable:$false] %s6406_s29 }
 0x119   : > { %s6408_s23 = scalar_lea.vmem %s6407_s29, 1024  ;;  %p6409_p10 = scmp.lt.s32.totalorder %s7738_s3, %s6407_s29 }
 0x11a   : > { %s7736_s21 = scalar_lea.hbm %s7832_s1, %s5350_s9  ;;  %p6405_p1 = pneg %p6404_p5 }
 0x11b   : > { %p6410_p13 = scmp.lt.s32.totalorder %s6408_s23, %s6402_s17 }
 0x11d   : > { %p6411_p2 = por %p6410_p13, %p6409_p10 }
 0x11f   : > { %p6412_p8 = pnand %p6411_p2, %p6405_p1 }
 0x1a1   : > { %v501_v8 = vpop.xlane.xlu0 %500 }
 0x1a2   : > { %v505_v10 = vsel %vm494_vm0, %v472_v0, %v501_v8  ;;  %v6966_v0 = vpack.c.bf16 %v480_v63, %v479_v62  ;;  %v7047_v63 = vld [vmem:[#allocation15] sm:$0xff] }
 0x1a5   : > { %v504_v9 = vpop.xlane.xlu0 %503 }
 0x1a6   : > { %v506_v11 = vsel %vm494_vm0, %v473_v1, %v504_v9 }
 0x1a7   : > { %v5856_v12 = vpack.c.bf16 %v506_v11, %v505_v10 }
 0x1a9   : > { %5858 = vmatprep.subr.msk.bf16.mxu0 %vm5857_vm2, %v5856_v12 }
 0x1aa   : > { %5861 = vmatpush3.bf16.xpose.msk.msra.mxu0 %vm5857_vm2, %v5856_v12 }
 0x1b1   : > { %5543 = vmatmul.mubr.msk.f32.vlgmr.msra.gmra.mrb[0].mxu0 %vm507_vm1, %v496_v14 }
 0x1b2   : > { %5578 = vmatprep.mubr.msk.f32.mxu0 %vm595_vm3, %v7047_v63 }
 0x1e8   : > { %v6938_v43 = vpop.f32.mrb[0].mxu1 }
 0x1e9   : > { %v6942_v45 = vpop.f32.mrb[1].mxu1 }
 0x284   : > { %v5544_v15 = vpop.f32.mrb[0].mxu0 }
 0x285   : > { %597 = vst.msk [vmem:[#allocation2 + $0x8] sm:$0xff] %vm595_vm3, %v5544_v15  ;;  %v586_v16 = vpop.f32.mrb[1].mxu0 }
 0x286   : > { %596 = vst.msk [vmem:[#allocation2] sm:$0xff] %vm595_vm3, %v586_v16 }
 0x28c   : > { %v683_v19 = vld [vmem:[#allocation2 + $0x8] sm:$0xff] }
 0x28d   : > { %v682_v17 = vld [vmem:[#allocation2] sm:$0xff]  ;;  %v687_v20 = vsel %vm595_vm3, %v683_v19, inf }
 0x28e   : > { %v684_v18 = vsel %vm595_vm3, %v682_v17, inf }
 0x28f   : > { %685 = vmin.xlane.f32.xlu1 %v684_v18 }
 0x293   : > { %688 = vmin.xlane.f32.xlu1 %v687_v20 }
 0x31c   : > { %v686_v26 = vpop.xlane.xlu1 %685 }
 0x31d   : > { %vm690_vm4 = vcmp.eq.f32.partialorder %v682_v17, %v686_v26 }
 0x31e   : > { %v692_v27 = vsel %vm690_vm4, %v6922_v25, 16.0 }
 0x31f   : > { %v694_v28 = vsel %vm595_vm3, %v692_v27, inf }
 0x320   : > { %695 = vmin.xlane.f32.xlu0 %v694_v28  ;;  %v689_v29 = vpop.xlane.xlu1 %688 }
 0x321   : > { %vm691_vm5 = vcmp.eq.f32.partialorder %v683_v19, %v689_v29 }
 0x322   : > { %v693_v30 = vsel %vm691_vm5, %v6922_v25, 16.0 }
 0x323   : > { %v697_v31 = vsel %vm595_vm3, %v693_v30, inf }
 0x324   : > { %698 = vmin.xlane.f32.xlu1 %v697_v31 }
 0x3ad   : > { %v696_v32 = vpop.xlane.xlu0 %695 }
 0x3ae   : > { %vm700_vm6 = vcmp.eq.f32.partialorder %v6922_v25, %v696_v32 }
 0x3af   : > { %v702_v33 = vsel %vm700_vm6, inf, %v682_v17  ;;  %v706_v35 = vsel %vm700_vm6, 1.0, %v6513_v34 }
 0x3b0   : > { %704 = vst.msk [vmem:[#allocation2] sm:$0xff] %vm595_vm3, %v702_v33  ;;  %5554 = vmatprep.mubr.msk.f32.mxu1 %vm595_vm3, %v706_v35 }
 0x3b1   : > { %v699_v36 = vpop.xlane.xlu1 %698 }
 0x3b2   : > { %vm701_vm7 = vcmp.eq.f32.partialorder %v6922_v25, %v699_v36 }
 0x3b3   : > { %v703_v37 = vsel %vm701_vm7, inf, %v683_v19  ;;  %v707_v38 = vsel %vm701_vm7, 1.0, %v6513_v34 }
 0x3b4   : > { %705 = vst.msk [vmem:[#allocation2 + $0x8] sm:$0xff] %vm595_vm3, %v703_v37  ;;  %5555 = vmatmul.mubr.msk.f32.vlgmr.msra.gmra.mrb[2].mxu1 %vm595_vm3, %v707_v38 }
 0x3b5   : > { %5558 = vmatpush3.msra.mxu1 %v6940_v44 }
 0x3b6   : > { %5562 = vmatprep.subr.mxu1 %v6915_v22 }
 0x3b7   : > { %v1203_v39 = vld [vmem:[#allocation2] sm:$0xff] }
 0x3b8   : > { %v1205_v40 = vsel %vm595_vm3, %v1203_v39, inf }
 0x3b9   : > { %1206 = vmin.xlane.f32.xlu0 %v1205_v40 }
 0x3bb   : > { %v1204_v41 = vld [vmem:[#allocation2 + $0x8] sm:$0xff] }
 0x3bc   : > { %v1208_v42 = vsel %vm595_vm3, %v1204_v41, inf }
 0x3bd   : > { %1209 = vmin.xlane.f32.xlu1 %v1208_v42 }
 0x446   : > { %v1207_v46 = vpop.xlane.xlu0 %1206 }
 0x447   : > { %vm1211_vm8 = vcmp.eq.f32.partialorder %v1203_v39, %v1207_v46  ;;  %v7023_v46 = vld [vmem:[#allocation14] ss:$0 sm:$0xff] }
 0x448   : > { %v1213_v47 = vsel %vm1211_vm8, %v6922_v25, 16.0  ;;  %vm7030_vm8 = vmpackc.low %vm595_vm3, %vm595_vm3 }
 0x449   : > { %v1215_v48 = vsel %vm595_vm3, %v1213_v47, inf }
 0x44a   : > { %1216 = vmin.xlane.f32.xlu0 %v1215_v48  ;;  %v1210_v49 = vpop.xlane.xlu1 %1209 }
 0x44b   : > { %vm1212_vm9 = vcmp.eq.f32.partialorder %v1204_v41, %v1210_v49 }
 0x44c   : > { %v1214_v50 = vsel %vm1212_vm9, %v6922_v25, 16.0 }
 0x44d   : > { %v1218_v51 = vsel %vm595_vm3, %v1214_v50, inf }
 0x44e   : > { %1219 = vmin.xlane.f32.xlu1 %v1218_v51 }
 0x487   : > { %v5556_v52 = vpop.f32.mrb[2].mxu1 }
 0x488   : > { %v780_v53 = vpop.f32.mrb[3].mxu1 }
 0x489   : > { %5559 = vmatprep.mubr.msk.f32.mxu1 %vm494_vm0, %v780_v53 }
 0x48a   : > { %5560 = vmatmul.mubr.msk.f32.vlgmr.msra.gmra.mrb[4].mxu1 %vm494_vm0, %v5556_v52 }
 0x48b   : > { %5563 = vmatpush3.msra.mxu1 %v6915_v22  ;;  %5564 = vmatprep.mubr.msk.f32.mxu1 %vm494_vm0, %v780_v53 }
 0x48c   : > { %5867 = vmatprep.subr.bf16.mxu1 %v6966_v0 }
 0x48e   : > { %5565 = vmatmul.mubr.msk.f32.vlgmr.msra.gmra.mrb[6].mxu1 %vm494_vm0, %v5556_v52 }
 0x48f   : > { %5869 = vmatpush3.bf16.msra.mxu1 %v6966_v0 }
 0x490   : > { %5877 = vmatprep.subr.bf16.mxu1 %v6913_v21 }
 0x4d7   : > { %v1217_v54 = vpop.xlane.xlu0 %1216 }
 0x4d8   : > { %vm1221_vm10 = vcmp.eq.f32.partialorder %v6922_v25, %v1217_v54 }
 0x4d9   : > { %v1223_v55 = vsel %vm1221_vm10, inf, %v1203_v39  ;;  %v1227_v26 = vsel %vm1221_vm10, 1.0, %v6513_v34 }
 0x4da   : > { %1225 = vst.msk [vmem:[#allocation2] sm:$0xff] %vm595_vm3, %v1223_v55 }
 0x4db   : > { %v1220_v56 = vpop.xlane.xlu1 %1219 }
 0x4dc   : > { %vm1222_vm11 = vcmp.eq.f32.partialorder %v6922_v25, %v1220_v56 }
 0x4dd   : > { %v1224_v57 = vsel %vm1222_vm11, inf, %v1204_v41  ;;  %v1228_v27 = vsel %vm1222_vm11, 1.0, %v6513_v34 }
 0x4de   : > { %1226 = vst.msk [vmem:[#allocation2 + $0x8] sm:$0xff] %vm595_vm3, %v1224_v57 }
 0x4e1   : > { %v1678_v58 = vld [vmem:[#allocation2] sm:$0xff] }
 0x4e2   : > { %v1680_v59 = vsel %vm595_vm3, %v1678_v58, inf }
 0x4e3   : > { %1681 = vmin.xlane.f32.xlu0 %v1680_v59 }
 0x4e5   : > { %v1679_v60 = vld [vmem:[#allocation2 + $0x8] sm:$0xff] }
 0x4e6   : > { %v1683_v61 = vsel %vm595_vm3, %v1679_v60, inf }
 0x4e7   : > { %1684 = vmin.xlane.f32.xlu1 %v1683_v61 }
 0x55d   : > { %v5561_v1 = vpop.f32.mrb[4].mxu1 }
 0x55e   : > { %v867_v3 = vpop.f32.mrb[5].mxu1  ;;  %v873_v4 = vadd.f32 %v5561_v1, %v6971_v2 }
 0x55f   : > { %v868_v5 = vadd.f32 %v6971_v2, %v867_v3  ;;  %v7052_v3 = vld [vmem:[#allocation15 + $0x8] sm:$0xff] }
 0x560   : > { %v879_v11 = vmul.f32 0.2, %v873_v4  ;;  %vm877_vm12 = vcmp.ge.f32.partialorder %v873_v4, 0.0 }
 0x561   : > { %v5566_v7 = vpop.f32.mrb[6].mxu1  ;;  %v878_v13 = vmul.f32 0.2, %v868_v5  ;;  %vm876_vm13 = vcmp.ge.f32.partialorder %v868_v5, 0.0 }
 0x562   : > { %v958_v8 = vsub.f32 %v5566_v7, %v6938_v43  ;;  %v948_v9 = vpop.f32.mrb[7].mxu1  ;;  %v881_v17 = vsel %vm877_vm12, %v873_v4, %v879_v11  ;;  %v7065_v7 = vld [vmem:[#allocation15 + $0x18] sm:$0xff] }
 0x563   : > { %v957_v10 = vsub.f32 %v948_v9, %v6942_v45  ;;  %v880_v19 = vsel %vm876_vm13, %v868_v5, %v878_v13  ;;  %v7060_v5 = vld [vmem:[#allocation15 + $0x10] sm:$0xff] }
 0x564   : > { %v966_v12 = vadd.f32 %v6975_v6, %v958_v8 }
 0x565   : > { %v965_v14 = vadd.f32 %v6975_v6, %v957_v10 }
 0x566   : > { %vm968_vm14 = vcmp.ge.f32.partialorder %v966_v12, 0.0  ;;  %v970_v15 = vmul.f32 0.2, %v966_v12 }
 0x567   : > { %vm967_vm15 = vcmp.ge.f32.partialorder %v965_v14, 0.0  ;;  %v969_v16 = vmul.f32 0.2, %v965_v14 }
 0x568   : > { %v972_v18 = vsel %vm968_vm14, %v966_v12, %v970_v15 }
 0x569   : > { %v974_v20 = vadd.f32 %v972_v18, %v881_v17  ;;  %v971_v23 = vsel %vm967_vm15, %v965_v14, %v969_v16 }
 0x56a   : > { %v973_v24 = vadd.f32 %v971_v23, %v880_v19 }
 0x56c   : > { %5571 = vmatprep.mubr.msk.f32.mxu1 %vm595_vm3, %v973_v24 }
 0x56d   : > { %5572 = vmatmul.mubr.msk.f32.vlgmr.msra.gmra.mrb[8].mxu1 %vm595_vm3, %v974_v20 }
 0x56e   : > { %5879 = vmatpush3.bf16.msra.mxu1 %v6913_v21  ;;  %5588 = vmatprep.mubr.msk.f32.mxu1 %vm595_vm3, %v1227_v26 }
 0x56f   : > { %5591 = vmatprep.subr.mxu1 %v6940_v44 }
 0x570   : > { %v1682_v28 = vpop.xlane.xlu0 %1681 }
 0x571   : > { %vm1686_vm1 = vcmp.eq.f32.partialorder %v1678_v58, %v1682_v28  ;;  %5589 = vmatmul.mubr.msk.f32.vlgmr.msra.gmra.mrb[10].mxu1 %vm595_vm3, %v1228_v27 }
 0x572   : > { %v1688_v29 = vsel %vm1686_vm1, %v6922_v25, 16.0  ;;  %5592 = vmatpush3.msra.mxu1 %v6940_v44 }
 0x573   : > { %v1690_v30 = vsel %vm595_vm3, %v1688_v29, inf  ;;  %5596 = vmatprep.subr.mxu1 %v6915_v22 }
 0x574   : > { %1691 = vmin.xlane.f32.xlu0 %v1690_v30  ;;  %v1685_v31 = vpop.xlane.xlu1 %1684 }
 0x575   : > { %vm1687_vm2 = vcmp.eq.f32.partialorder %v1679_v60, %v1685_v31 }
 0x576   : > { %v1689_v32 = vsel %vm1687_vm2, %v6922_v25, 16.0 }
 0x577   : > { %v1693_v33 = vsel %vm595_vm3, %v1689_v32, inf }
 0x578   : > { %1694 = vmin.xlane.f32.xlu1 %v1693_v33 }
 0x601   : > { %v6999_v35 = vpop.xlane.xlu0 %1691 }
 0x602   : > { %vm1696_vm4 = vcmp.eq.f32.partialorder %v6922_v25, %v6999_v35 }
 0x603   : > { %v1698_v36 = vsel %vm1696_vm4, inf, %v1678_v58  ;;  %v1702_v31 = vsel %vm1696_vm4, 1.0, %v6513_v34 }
 0x604   : > { %1700 = vst.msk [vmem:[#allocation2] sm:$0xff] %vm595_vm3, %v1698_v36 }
 0x605   : > { %v7007_v37 = vpop.xlane.xlu1 %1694 }
 0x606   : > { %vm1697_vm5 = vcmp.eq.f32.partialorder %v6922_v25, %v7007_v37 }
 0x607   : > { %v1699_v38 = vsel %vm1697_vm5, inf, %v1679_v60  ;;  %v1703_v33 = vsel %vm1697_vm5, 1.0, %v6513_v34 }
 0x608   : > { %1701 = vst.msk [vmem:[#allocation2 + $0x8] sm:$0xff] %vm595_vm3, %v1699_v38 }
 0x60b   : > { %v7015_v39 = vld [vmem:[#allocation2] sm:$0xff] }
 0x60c   : > { %v2155_v40 = vsel %vm595_vm3, %v7015_v39, inf }
 0x60d   : > { %2156 = vmin.xlane.f32.xlu0 %v2155_v40 }
 0x60f   : > { %v7019_v41 = vld [vmem:[#allocation2 + $0x8] sm:$0xff] }
 0x610   : > { %v2158_v42 = vsel %vm595_vm3, %v7019_v41, inf }
 0x611   : > { %2159 = vmin.xlane.f32.xlu1 %v2158_v42 }
 0x640   : > { %v5573_v47 = vpop.f32.mrb[8].mxu1 }
 0x641   : > { %v1059_v48 = vadd.f32 %v5573_v47, %v7023_v46  ;;  %v1053_v49 = vpop.f32.mrb[9].mxu1 }
 0x642   : > { %v1054_v50 = vadd.f32 %v7023_v46, %v1053_v49 }
 0x643   : > { %vm1063_vm6 = vcmp.ge.f32.partialorder %v1059_v48, 0.0  ;;  %v1065_v51 = vmul.f32 0.2, %v1059_v48 }
 0x644   : > { %vm1062_vm7 = vcmp.ge.f32.partialorder %v1054_v50, 0.0  ;;  %v1064_v52 = vmul.f32 0.2, %v1054_v50  ;;  %v5590_v53 = vpop.f32.mrb[10].mxu1 }
 0x645   : > { %v1067_v54 = vsel %vm1063_vm6, %v1059_v48, %v1065_v51  ;;  %v1301_v55 = vpop.f32.mrb[11].mxu1 }
 0x646   : > { %v1066_v56 = vsel %vm1062_vm7, %v1054_v50, %v1064_v52  ;;  %5593 = vmatprep.mubr.msk.f32.mxu1 %vm494_vm0, %v1301_v55 }
 0x647   : > { %v5870_v58 = vpack.c.bf16 %v1067_v54, %v1066_v56  ;;  %5594 = vmatmul.mubr.msk.f32.vlgmr.msra.gmra.mrb[12].mxu1 %vm494_vm0, %v5590_v53 }
 0x648   : > { %5597 = vmatpush3.msra.mxu1 %v6915_v22  ;;  %5598 = vmatprep.mubr.msk.f32.mxu1 %vm494_vm0, %v1301_v55 }
 0x649   : > { %5872 = vmatprep.subr.msk.bf16.mxu0 %vm7030_vm8, %v5870_v58 }
 0x64a   : > { %5875 = vmatpush3.bf16.xpose.msk.msra.mxu0 %vm7030_vm8, %v5870_v58 }
 0x64b   : > { %5599 = vmatmul.mubr.msk.f32.vlgmr.msra.gmra.mrb[14].mxu1 %vm494_vm0, %v5590_v53  ;;  %5881 = vmatprep.subr.bf16.mxu0 %v6966_v0 }
 0x64c   : > { %5612 = vmatprep.mubr.msk.f32.mxu1 %vm595_vm3, %v7047_v63 }
 0x651   : > { %5579 = vmatmul.mubr.msk.f32.vlgmr.msra.gmra.mrb[2].mxu0 %vm595_vm3, %v7052_v3 }
 0x652   : > { %5883 = vmatpush3.bf16.msra.mxu0 %v6966_v0  ;;  %5581 = vmatprep.mubr.msk.f32.mxu0 %vm595_vm3, %v7060_v5 }
 0x653   : > { %5891 = vmatprep.subr.bf16.mxu0 %v6913_v21 }
 0x655   : > { %5582 = vmatmul.mubr.msk.f32.gmra.mrb[4].mxu0 %vm595_vm3, %v7065_v7 }
 0x69a   : > { %v2157_v59 = vpop.xlane.xlu0 %2156 }
 0x69b   : > { %vm2161_vm9 = vcmp.eq.f32.partialorder %v7015_v39, %v2157_v59 }
 0x69c   : > { %v2163_v60 = vsel %vm2161_vm9, %v6922_v25, 16.0 }
 0x69d   : > { %v2165_v61 = vsel %vm595_vm3, %v2163_v60, inf }
 0x69e   : > { %2166 = vmin.xlane.f32.xlu0 %v2165_v61  ;;  %v2160_v62 = vpop.xlane.xlu1 %2159 }
 0x69f   : > { %vm2162_vm10 = vcmp.eq.f32.partialorder %v7019_v41, %v2160_v62 }
 0x6a0   : > { %v2164_v1 = vsel %vm2162_vm10, %v6922_v25, 16.0 }
 0x6a1   : > { %v2168_v4 = vsel %vm595_vm3, %v2164_v1, inf }
 0x6a2   : > { %2169 = vmin.xlane.f32.xlu1 %v2168_v4 }
 0x71a   : > { %v5595_v8 = vpop.f32.mrb[12].mxu1 }
 0x71b   : > { %v1382_v9 = vpop.f32.mrb[13].mxu1  ;;  %v1388_v10 = vadd.f32 %v5595_v8, %v6971_v2 }
 0x71c   : > { %v1383_v11 = vadd.f32 %v6971_v2, %v1382_v9 }
 0x71d   : > { %v1394_v16 = vmul.f32 0.2, %v1388_v10  ;;  %vm1392_vm11 = vcmp.ge.f32.partialorder %v1388_v10, 0.0 }
 0x71e   : > { %v5600_v12 = vpop.f32.mrb[14].mxu1  ;;  %v1393_v18 = vmul.f32 0.2, %v1383_v11  ;;  %vm1391_vm12 = vcmp.ge.f32.partialorder %v1383_v11, 0.0 }
 0x71f   : > { %v1473_v13 = vsub.f32 %v5600_v12, %v6938_v43  ;;  %v1463_v14 = vpop.f32.mrb[15].mxu1  ;;  %v1396_v24 = vsel %vm1392_vm11, %v1388_v10, %v1394_v16 }
 0x720   : > { %v1472_v15 = vsub.f32 %v1463_v14, %v6942_v45  ;;  %v1395_v27 = vsel %vm1391_vm12, %v1383_v11, %v1393_v18 }
 0x721   : > { %v1475_v17 = vadd.f32 %v6975_v6, %v1473_v13 }
 0x722   : > { %v1474_v19 = vadd.f32 %v6975_v6, %v1472_v15 }
 0x723   : > { %vm1477_vm13 = vcmp.ge.f32.partialorder %v1475_v17, 0.0  ;;  %v1479_v20 = vmul.f32 0.2, %v1475_v17 }
 0x724   : > { %vm1476_vm14 = vcmp.ge.f32.partialorder %v1474_v19, 0.0  ;;  %v1478_v23 = vmul.f32 0.2, %v1474_v19  ;;  %v7111_v47 = vpop.f32.mrb[2].mxu0 }
 0x725   : > { %v1481_v26 = vsel %vm1477_vm13, %v1475_v17, %v1479_v20  ;;  %v7113_v48 = vpop.f32.mrb[3].mxu0 }
 0x726   : > { %v1483_v28 = vadd.f32 %v1481_v26, %v1396_v24  ;;  %v1480_v29 = vsel %vm1476_vm14, %v1474_v19, %v1478_v23 }
 0x727   : > { %v1482_v30 = vadd.f32 %v1480_v29, %v1395_v27 }
 0x728   : > { %v7115_v49 = vpop.f32.mrb[4].mxu0 }
 0x729   : > { %5605 = vmatprep.mubr.msk.f32.mxu0 %vm595_vm3, %v1482_v30  ;;  %v7117_v50 = vpop.f32.mrb[5].mxu0 }
 0x72a   : > { %5606 = vmatmul.mubr.msk.f32.vlgmr.msra.gmra.mrb[6].mxu0 %vm595_vm3, %v1483_v28 }
 0x72b   : > { %5893 = vmatpush3.bf16.msra.mxu0 %v6913_v21  ;;  %v7082_v32 = vpop.xlane.xlu0 %2166  ;;  %5622 = vmatprep.mubr.msk.f32.mxu0 %vm595_vm3, %v1702_v31 }
 0x72c   : > { %vm2171_vm15 = vcmp.eq.f32.partialorder %v6922_v25, %v7082_v32  ;;  %5625 = vmatprep.subr.mxu0 %v6940_v44 }
 0x72d   : > { %v2173_v35 = vsel %vm2171_vm15, inf, %v7015_v39 }
 0x72e   : > { %2175 = vst.msk [vmem:[#allocation2] sm:$0xff] %vm595_vm3, %v2173_v35  ;;  %5623 = vmatmul.mubr.msk.f32.vlgmr.msra.gmra.mrb[8].mxu0 %vm595_vm3, %v1703_v33 }
 0x72f   : > { %v7098_v36 = vpop.xlane.xlu1 %2169  ;;  %5626 = vmatpush3.msra.mxu0 %v6940_v44 }
 0x730   : > { %vm2172_vm1 = vcmp.eq.f32.partialorder %v6922_v25, %v7098_v36  ;;  %5630 = vmatprep.subr.mxu0 %v6915_v22 }
 0x731   : > { %v2174_v37 = vsel %vm2172_vm1, inf, %v7019_v41 }
 0x732   : > { %2176 = vst.msk [vmem:[#allocation2 + $0x8] sm:$0xff] %vm595_vm3, %v2174_v37 }
 0x735   : > { %v2628_v38 = vld [vmem:[#allocation2] sm:$0xff] }
 0x736   : > { %v2630_v39 = vsel %vm595_vm3, %v2628_v38, inf }
 0x737   : > { %2631 = vmin.xlane.f32.xlu0 %v2630_v39 }
 0x739   : > { %v2629_v40 = vld [vmem:[#allocation2 + $0x8] sm:$0xff] }
 0x73a   : > { %v2633_v42 = vsel %vm595_vm3, %v2629_v40, inf }
 0x73b   : > { %2634 = vmin.xlane.f32.xlu1 %v2633_v42 }
 0x7c4   : > { %v2632_v51 = vpop.xlane.xlu0 %2631 }
 0x7c5   : > { %vm2636_vm2 = vcmp.eq.f32.partialorder %v2628_v38, %v2632_v51 }
 0x7c6   : > { %v2638_v41 = vsel %vm2636_vm2, %v6922_v25, 16.0 }
 0x7c7   : > { %v2640_v52 = vsel %vm595_vm3, %v2638_v41, inf }
 0x7c8   : > { %2641 = vmin.xlane.f32.xlu0 %v2640_v52  ;;  %v2635_v53 = vpop.xlane.xlu1 %2634 }
 0x7c9   : > { %vm2637_vm4 = vcmp.eq.f32.partialorder %v2629_v40, %v2635_v53  ;;  %v2177_v53 = vsel %vm2171_vm15, 1.0, %v6513_v34 }
 0x7ca   : > { %v2639_v54 = vsel %vm2637_vm4, %v6922_v25, 16.0 }
 0x7cb   : > { %v2643_v55 = vsel %vm595_vm3, %v2639_v54, inf  ;;  %v2178_v54 = vsel %vm2172_vm1, 1.0, %v6513_v34 }
 0x7cc   : > { %2644 = vmin.xlane.f32.xlu1 %v2643_v55 }
 0x7fd   : > { %v5607_v56 = vpop.f32.mrb[6].mxu0 }
 0x7fe   : > { %v1562_v58 = vadd.f32 %v5607_v56, %v7023_v46  ;;  %v1556_v59 = vpop.f32.mrb[7].mxu0 }
 0x7ff   : > { %v1557_v60 = vadd.f32 %v7023_v46, %v1556_v59 }
 0x800   : > { %vm1566_vm5 = vcmp.ge.f32.partialorder %v1562_v58, 0.0  ;;  %v1568_v61 = vmul.f32 0.2, %v1562_v58 }
 0x801   : > { %vm1565_vm6 = vcmp.ge.f32.partialorder %v1557_v60, 0.0  ;;  %v1567_v62 = vmul.f32 0.2, %v1557_v60  ;;  %v5624_v1 = vpop.f32.mrb[8].mxu0 }
 0x802   : > { %v1570_v4 = vsel %vm1566_vm5, %v1562_v58, %v1568_v61  ;;  %v1776_v8 = vpop.f32.mrb[9].mxu0 }
 0x803   : > { %v1569_v9 = vsel %vm1565_vm6, %v1557_v60, %v1567_v62  ;;  %5627 = vmatprep.mubr.msk.f32.mxu0 %vm494_vm0, %v1776_v8 }
 0x804   : > { %v5884_v10 = vpack.c.bf16 %v1570_v4, %v1569_v9  ;;  %5628 = vmatmul.mubr.msk.f32.vlgmr.msra.gmra.mrb[10].mxu0 %vm494_vm0, %v5624_v1 }
 0x805   : > { %5631 = vmatpush3.msra.mxu0 %v6915_v22  ;;  %5632 = vmatprep.mubr.msk.f32.mxu0 %vm494_vm0, %v1776_v8 }
 0x806   : > { %5886 = vmatprep.subr.msk.bf16.mxu1 %vm7030_vm8, %v5884_v10 }
 0x807   : > { %5889 = vmatpush3.bf16.xpose.msk.msra.mxu1 %vm7030_vm8, %v5884_v10 }
 0x808   : > { %5633 = vmatmul.mubr.msk.f32.vlgmr.msra.gmra.mrb[12].mxu0 %vm494_vm0, %v5624_v1  ;;  %5895 = vmatprep.subr.bf16.mxu1 %v6966_v0 }
 0x809   : > { %5646 = vmatprep.mubr.msk.f32.mxu0 %vm595_vm3, %v7047_v63 }
 0x80e   : > { %5613 = vmatmul.mubr.msk.f32.vlgmr.msra.gmra.mrb[16].mxu1 %vm595_vm3, %v7052_v3 }
 0x80f   : > { %5897 = vmatpush3.bf16.msra.mxu1 %v6966_v0  ;;  %5615 = vmatprep.mubr.msk.f32.mxu1 %vm595_vm3, %v7060_v5 }
 0x810   : > { %5905 = vmatprep.subr.bf16.mxu1 %v6913_v21 }
 0x812   : > { %5616 = vmatmul.mubr.msk.f32.gmra.mrb[18].mxu1 %vm595_vm3, %v7065_v7 }
 0x855   : > { %v7145_v11 = vpop.xlane.xlu0 %2641 }
 0x856   : > { %vm2646_vm7 = vcmp.eq.f32.partialorder %v6922_v25, %v7145_v11 }
 0x857   : > { %v2648_v12 = vsel %vm2646_vm7, inf, %v2628_v38 }
 0x858   : > { %2650 = vst.msk [vmem:[#allocation2] sm:$0xff] %vm595_vm3, %v2648_v12 }
 0x859   : > { %v7153_v13 = vpop.xlane.xlu1 %2644 }
 0x85a   : > { %vm2647_vm9 = vcmp.eq.f32.partialorder %v6922_v25, %v7153_v13 }
 0x85b   : > { %v2649_v14 = vsel %vm2647_vm9, inf, %v2629_v40 }
 0x85c   : > { %2651 = vst.msk [vmem:[#allocation2 + $0x8] sm:$0xff] %vm595_vm3, %v2649_v14 }
 0x85f   : > { %v3103_v15 = vld [vmem:[#allocation2] sm:$0xff] }
 0x860   : > { %v3105_v16 = vsel %vm595_vm3, %v3103_v15, inf }
 0x861   : > { %3106 = vmin.xlane.f32.xlu0 %v3105_v16 }
 0x863   : > { %v3104_v17 = vld [vmem:[#allocation2 + $0x8] sm:$0xff] }
 0x864   : > { %v3108_v18 = vsel %vm595_vm3, %v3104_v17, inf }
 0x865   : > { %3109 = vmin.xlane.f32.xlu1 %v3108_v18 }
 0x8d7   : > { %v5629_v19 = vpop.f32.mrb[10].mxu0 }
 0x8d8   : > { %v1857_v20 = vpop.f32.mrb[11].mxu0  ;;  %v1863_v23 = vadd.f32 %v5629_v19, %v6971_v2 }
 0x8d9   : > { %v1858_v24 = vadd.f32 %v6971_v2, %v1857_v20 }
 0x8da   : > { %v1869_v30 = vmul.f32 0.2, %v1863_v23  ;;  %vm1867_vm10 = vcmp.ge.f32.partialorder %v1863_v23, 0.0 }
 0x8db   : > { %v5634_v26 = vpop.f32.mrb[12].mxu0  ;;  %v1868_v33 = vmul.f32 0.2, %v1858_v24  ;;  %vm1866_vm11 = vcmp.ge.f32.partialorder %v1858_v24, 0.0 }
 0x8dc   : > { %v1948_v27 = vsub.f32 %v5634_v26, %v6938_v43  ;;  %v1938_v28 = vpop.f32.mrb[13].mxu0  ;;  %v1871_v39 = vsel %vm1867_vm10, %v1863_v23, %v1869_v30 }
 0x8dd   : > { %v1947_v29 = vsub.f32 %v1938_v28, %v6942_v45  ;;  %v1870_v42 = vsel %vm1866_vm11, %v1858_v24, %v1868_v33 }
 0x8de   : > { %v1950_v31 = vadd.f32 %v6975_v6, %v1948_v27 }
 0x8df   : > { %v1949_v35 = vadd.f32 %v6975_v6, %v1947_v29 }
 0x8e0   : > { %vm1952_vm12 = vcmp.ge.f32.partialorder %v1950_v31, 0.0  ;;  %v1954_v37 = vmul.f32 0.2, %v1950_v31 }
 0x8e1   : > { %vm1951_vm13 = vcmp.ge.f32.partialorder %v1949_v35, 0.0  ;;  %v1953_v38 = vmul.f32 0.2, %v1949_v35  ;;  %v7189_v60 = vpop.f32.mrb[16].mxu1 }
 0x8e2   : > { %v1956_v40 = vsel %vm1952_vm12, %v1950_v31, %v1954_v37  ;;  %v7191_v61 = vpop.f32.mrb[17].mxu1 }
 0x8e3   : > { %v1958_v51 = vadd.f32 %v1956_v40, %v1871_v39  ;;  %v1955_v41 = vsel %vm1951_vm13, %v1949_v35, %v1953_v38 }
 0x8e4   : > { %v1957_v52 = vadd.f32 %v1955_v41, %v1870_v42 }
 0x8e5   : > { %v7193_v62 = vpop.f32.mrb[18].mxu1 }
 0x8e6   : > { %5639 = vmatprep.mubr.msk.f32.mxu1 %vm595_vm3, %v1957_v52  ;;  %v7195_v1 = vpop.f32.mrb[19].mxu1 }
 0x8e7   : > { %5640 = vmatmul.mubr.msk.f32.vlgmr.msra.gmra.mrb[20].mxu1 %vm595_vm3, %v1958_v51 }
 0x8e8   : > { %5907 = vmatpush3.bf16.msra.mxu1 %v6913_v21  ;;  %5656 = vmatprep.mubr.msk.f32.mxu1 %vm595_vm3, %v2177_v53 }
 0x8e9   : > { %5659 = vmatprep.subr.mxu1 %v6940_v44 }
 0x8eb   : > { %5657 = vmatmul.mubr.msk.f32.vlgmr.msra.gmra.mrb[22].mxu1 %vm595_vm3, %v2178_v54 }
 0x8ec   : > { %5660 = vmatpush3.msra.mxu1 %v6940_v44 }
 0x8ed   : > { %5664 = vmatprep.subr.mxu1 %v6915_v22 }
 0x8ee   : > { %v3107_v32 = vpop.xlane.xlu0 %3106 }
 0x8ef   : > { %vm3111_vm14 = vcmp.eq.f32.partialorder %v3103_v15, %v3107_v32 }
 0x8f0   : > { %v3113_v55 = vsel %vm3111_vm14, %v6922_v25, 16.0 }
 0x8f1   : > { %v3115_v56 = vsel %vm595_vm3, %v3113_v55, inf }
 0x8f2   : > { %3116 = vmin.xlane.f32.xlu0 %v3115_v56  ;;  %v3110_v58 = vpop.xlane.xlu1 %3109 }
 0x8f3   : > { %vm3112_vm15 = vcmp.eq.f32.partialorder %v3104_v17, %v3110_v58 }
 0x8f4   : > { %v3114_v59 = vsel %vm3112_vm15, %v6922_v25, 16.0 }
 0x8f5   : > { %v3118_v36 = vsel %vm595_vm3, %v3114_v59, inf }
 0x8f6   : > { %3119 = vmin.xlane.f32.xlu1 %v3118_v36 }
 0x97f   : > { %v7197_v4 = vpop.xlane.xlu0 %3116 }
 0x980   : > { %vm3121_vm1 = vcmp.eq.f32.partialorder %v6922_v25, %v7197_v4 }
 0x981   : > { %v3123_v8 = vsel %vm3121_vm1, inf, %v3103_v15 }
 0x982   : > { %3125 = vst.msk [vmem:[#allocation2] sm:$0xff] %vm595_vm3, %v3123_v8 }
 0x983   : > { %v7205_v9 = vpop.xlane.xlu1 %3119 }
 0x984   : > { %vm3122_vm2 = vcmp.eq.f32.partialorder %v6922_v25, %v7205_v9 }
 0x985   : > { %v3124_v10 = vsel %vm3122_vm2, inf, %v3104_v17 }
 0x986   : > { %3126 = vst.msk [vmem:[#allocation2 + $0x8] sm:$0xff] %vm595_vm3, %v3124_v10 }
 0x989   : > { %v7213_v12 = vld [vmem:[#allocation2] sm:$0xff] }
 0x98a   : > { %v3580_v14 = vsel %vm595_vm3, %v7213_v12, inf }
 0x98b   : > { %3581 = vmin.xlane.f32.xlu0 %v3580_v14 }
 0x98d   : > { %v7217_v15 = vld [vmem:[#allocation2 + $0x8] sm:$0xff] }
 0x98e   : > { %v3583_v16 = vsel %vm595_vm3, %v7217_v15, inf }
 0x98f   : > { %3584 = vmin.xlane.f32.xlu1 %v3583_v16 }
 0x9ba   : > { %v5641_v18 = vpop.f32.mrb[20].mxu1 }
 0x9bb   : > { %v2037_v19 = vadd.f32 %v5641_v18, %v7023_v46  ;;  %v2031_v20 = vpop.f32.mrb[21].mxu1 }
 0x9bc   : > { %v2032_v17 = vadd.f32 %v7023_v46, %v2031_v20 }
 0x9bd   : > { %vm2041_vm4 = vcmp.ge.f32.partialorder %v2037_v19, 0.0  ;;  %v2043_v23 = vmul.f32 0.2, %v2037_v19 }
 0x9be   : > { %vm2040_vm5 = vcmp.ge.f32.partialorder %v2032_v17, 0.0  ;;  %v2042_v24 = vmul.f32 0.2, %v2032_v17  ;;  %v5658_v26 = vpop.f32.mrb[22].mxu1 }
 0x9bf   : > { %v2045_v27 = vsel %vm2041_vm4, %v2037_v19, %v2043_v23  ;;  %v2251_v28 = vpop.f32.mrb[23].mxu1  ;;  %v2653_v23 = vsel %vm2647_vm9, 1.0, %v6513_v34 }
 0x9c0   : > { %v2044_v29 = vsel %vm2040_vm5, %v2032_v17, %v2042_v24  ;;  %5661 = vmatprep.mubr.msk.f32.mxu1 %vm494_vm0, %v2251_v28  ;;  %v2652_v17 = vsel %vm2646_vm7, 1.0, %v6513_v34 }
 0x9c1   : > { %v5898_v30 = vpack.c.bf16 %v2045_v27, %v2044_v29  ;;  %5662 = vmatmul.mubr.msk.f32.vlgmr.msra.gmra.mrb[24].mxu1 %vm494_vm0, %v5658_v26 }
 0x9c2   : > { %5665 = vmatpush3.msra.mxu1 %v6915_v22  ;;  %5666 = vmatprep.mubr.msk.f32.mxu1 %vm494_vm0, %v2251_v28 }
 0x9c3   : > { %5900 = vmatprep.subr.msk.bf16.mxu0 %vm7030_vm8, %v5898_v30 }
 0x9c4   : > { %5903 = vmatpush3.bf16.xpose.msk.msra.mxu0 %vm7030_vm8, %v5898_v30 }
 0x9c5   : > { %5667 = vmatmul.mubr.msk.f32.vlgmr.msra.gmra.mrb[26].mxu1 %vm494_vm0, %v5658_v26  ;;  %5909 = vmatprep.subr.bf16.mxu0 %v6966_v0 }
 0x9c6   : > { %5680 = vmatprep.mubr.msk.f32.mxu1 %vm595_vm3, %v7047_v63 }
 0x9cb   : > { %5647 = vmatmul.mubr.msk.f32.vlgmr.msra.gmra.mrb[14].mxu0 %vm595_vm3, %v7052_v3 }
 0x9cc   : > { %5911 = vmatpush3.bf16.msra.mxu0 %v6966_v0  ;;  %5649 = vmatprep.mubr.msk.f32.mxu0 %vm595_vm3, %v7060_v5 }
 0x9cd   : > { %5919 = vmatprep.subr.bf16.mxu0 %v6913_v21 }
 0x9cf   : > { %5650 = vmatmul.mubr.msk.f32.gmra.mrb[16].mxu0 %vm595_vm3, %v7065_v7 }
 0xa18   : > { %v3582_v31 = vpop.xlane.xlu0 %3581 }
 0xa19   : > { %vm3586_vm6 = vcmp.eq.f32.partialorder %v7213_v12, %v3582_v31 }
 0xa1a   : > { %v3588_v33 = vsel %vm3586_vm6, %v6922_v25, 16.0 }
 0xa1b   : > { %v3590_v35 = vsel %vm595_vm3, %v3588_v33, inf }
 0xa1c   : > { %3591 = vmin.xlane.f32.xlu0 %v3590_v35  ;;  %v3585_v37 = vpop.xlane.xlu1 %3584 }
 0xa1d   : > { %vm3587_vm10 = vcmp.eq.f32.partialorder %v7217_v15, %v3585_v37 }
 0xa1e   : > { %v3589_v38 = vsel %vm3587_vm10, %v6922_v25, 16.0 }
 0xa1f   : > { %v3593_v39 = vsel %vm595_vm3, %v3589_v38, inf }
 0xa20   : > { %3594 = vmin.xlane.f32.xlu1 %v3593_v39 }
 0xa94   : > { %v5663_v40 = vpop.f32.mrb[24].mxu1 }
 0xa95   : > { %v2332_v42 = vpop.f32.mrb[25].mxu1  ;;  %v2338_v51 = vadd.f32 %v5663_v40, %v6971_v2 }
 0xa96   : > { %v2333_v41 = vadd.f32 %v6971_v2, %v2332_v42 }
 0xa97   : > { %v2344_v55 = vmul.f32 0.2, %v2338_v51  ;;  %vm2342_vm11 = vcmp.ge.f32.partialorder %v2338_v51, 0.0 }
 0xa98   : > { %v5668_v52 = vpop.f32.mrb[26].mxu1  ;;  %v2343_v58 = vmul.f32 0.2, %v2333_v41  ;;  %vm2341_vm12 = vcmp.ge.f32.partialorder %v2333_v41, 0.0 }
 0xa99   : > { %v2423_v53 = vsub.f32 %v5668_v52, %v6938_v43  ;;  %v2413_v54 = vpop.f32.mrb[27].mxu1  ;;  %v2346_v10 = vsel %vm2342_vm11, %v2338_v51, %v2344_v55 }
 0xa9a   : > { %v2422_v32 = vsub.f32 %v2413_v54, %v6942_v45  ;;  %v2345_v16 = vsel %vm2341_vm12, %v2333_v41, %v2343_v58 }
 0xa9b   : > { %v2425_v56 = vadd.f32 %v6975_v6, %v2423_v53 }
 0xa9c   : > { %v2424_v59 = vadd.f32 %v6975_v6, %v2422_v32 }
 0xa9d   : > { %vm2427_vm13 = vcmp.ge.f32.partialorder %v2425_v56, 0.0  ;;  %v2429_v36 = vmul.f32 0.2, %v2425_v56 }
 0xa9e   : > { %vm2426_vm14 = vcmp.ge.f32.partialorder %v2424_v59, 0.0  ;;  %v2428_v8 = vmul.f32 0.2, %v2424_v59  ;;  %v7291_v30 = vpop.f32.mrb[14].mxu0 }
 0xa9f   : > { %v2431_v14 = vsel %vm2427_vm13, %v2425_v56, %v2429_v36  ;;  %v7293_v31 = vpop.f32.mrb[15].mxu0 }
 0xaa0   : > { %v2433_v18 = vadd.f32 %v2431_v14, %v2346_v10  ;;  %v2430_v19 = vsel %vm2426_vm14, %v2424_v59, %v2428_v8 }
 0xaa1   : > { %v2432_v20 = vadd.f32 %v2430_v19, %v2345_v16 }
 0xaa2   : > { %v7295_v33 = vpop.f32.mrb[16].mxu0 }
 0xaa3   : > { %5673 = vmatprep.mubr.msk.f32.mxu0 %vm595_vm3, %v2432_v20  ;;  %v7297_v35 = vpop.f32.mrb[17].mxu0 }
 0xaa4   : > { %5674 = vmatmul.mubr.msk.f32.vlgmr.msra.gmra.mrb[18].mxu0 %vm595_vm3, %v2433_v18 }
 0xaa5   : > { %5921 = vmatpush3.bf16.msra.mxu0 %v6913_v21  ;;  %5690 = vmatprep.mubr.msk.f32.mxu0 %vm595_vm3, %v2652_v17  ;;  %v6514_v17 = vmov 0  }
 0xaa6   : > { %5693 = vmatprep.subr.mxu0 %v6940_v44  ;;  %6138 = vset.pattern.permute.xlu1 %v6514_v17 }
 0xaa7   : > { %6137 = vset.pattern.permute.xlu0 %v6514_v17  ;;  %v491_v17 = vld [vmem:[#allocation17 + $0x18] sm:$0xff] }
 0xaa8   : > { %5691 = vmatmul.mubr.msk.f32.vlgmr.msra.gmra.mrb[20].mxu0 %vm595_vm3, %v2653_v23 }
 0xaa9   : > { %v7269_v24 = vpop.xlane.xlu0 %3591  ;;  %5694 = vmatpush3.msra.mxu0 %v6940_v44 }
 0xaaa   : > { %vm3596_vm7 = vcmp.eq.f32.partialorder %v6922_v25, %v7269_v24  ;;  %5698 = vmatprep.subr.mxu0 %v6915_v22 }
 0xaab   : > { %v3598_v11 = vsel %vm3596_vm7, inf, %v7213_v12 }
 0xaac   : > { %3600 = vst.msk [vmem:[#allocation2] sm:$0xff] %vm595_vm3, %v3598_v11 }
 0xaad   : > { %v7280_v13 = vpop.xlane.xlu1 %3594 }
 0xaae   : > { %vm3597_vm9 = vcmp.eq.f32.partialorder %v6922_v25, %v7280_v13 }
 0xaaf   : > { %v3599_v26 = vsel %vm3597_vm9, inf, %v7217_v15 }
 0xab0   : > { %3601 = vst.msk [vmem:[#allocation2 + $0x8] sm:$0xff] %vm595_vm3, %v3599_v26 }
 0xab3   : > { %v4053_v27 = vld [vmem:[#allocation2] sm:$0xff] }
 0xab4   : > { %v4055_v28 = vsel %vm595_vm3, %v4053_v27, inf }
 0xab5   : > { %4056 = vmin.xlane.f32.xlu0 %v4055_v28 }
 0xab7   : > { %v4054_v29 = vld [vmem:[#allocation2 + $0x8] sm:$0xff] }
 0xab8   : > { %v4058_v12 = vsel %vm595_vm3, %v4054_v29, inf }
 0xab9   : > { %4059 = vmin.xlane.f32.xlu1 %v4058_v12 }
 0xb42   : > { %v4057_v37 = vpop.xlane.xlu0 %4056 }
 0xb43   : > { %vm4061_vm15 = vcmp.eq.f32.partialorder %v4053_v27, %v4057_v37 }
 0xb44   : > { %v4063_v15 = vsel %vm4061_vm15, %v6922_v25, 16.0 }
 0xb45   : > { %v4065_v38 = vsel %vm595_vm3, %v4063_v15, inf }
 0xb46   : > { %4066 = vmin.xlane.f32.xlu0 %v4065_v38  ;;  %v4060_v39 = vpop.xlane.xlu1 %4059 }
 0xb47   : > { %vm4062_vm4 = vcmp.eq.f32.partialorder %v4054_v29, %v4060_v39 }
 0xb48   : > { %v4064_v40 = vsel %vm4062_vm4, %v6922_v25, 16.0 }
 0xb49   : > { %v4068_v42 = vsel %vm595_vm3, %v4064_v40, inf }
 0xb4a   : > { %4069 = vmin.xlane.f32.xlu1 %v4068_v42 }
 0xb77   : > { %v5675_v51 = vpop.f32.mrb[18].mxu0 }
 0xb78   : > { %v2512_v41 = vadd.f32 %v5675_v51, %v7023_v46  ;;  %v2506_v52 = vpop.f32.mrb[19].mxu0 }
 0xb79   : > { %v2507_v53 = vadd.f32 %v7023_v46, %v2506_v52 }
 0xb7a   : > { %vm2516_vm5 = vcmp.ge.f32.partialorder %v2512_v41, 0.0  ;;  %v2518_v54 = vmul.f32 0.2, %v2512_v41 }
 0xb7b   : > { %vm2515_vm6 = vcmp.ge.f32.partialorder %v2507_v53, 0.0  ;;  %v2517_v32 = vmul.f32 0.2, %v2507_v53  ;;  %v5692_v55 = vpop.f32.mrb[20].mxu0 }
 0xb7c   : > { %v2520_v56 = vsel %vm2516_vm5, %v2512_v41, %v2518_v54  ;;  %v2726_v58 = vpop.f32.mrb[21].mxu0 }
 0xb7d   : > { %v2519_v59 = vsel %vm2515_vm6, %v2507_v53, %v2517_v32  ;;  %5695 = vmatprep.mubr.msk.f32.mxu0 %vm494_vm0, %v2726_v58 }
 0xb7e   : > { %v5912_v36 = vpack.c.bf16 %v2520_v56, %v2519_v59  ;;  %5696 = vmatmul.mubr.msk.f32.vlgmr.msra.gmra.mrb[22].mxu0 %vm494_vm0, %v5692_v55  ;;  %v7370_v56 = vld [vmem:[#allocation9] sm:$0xff] }
 0xb7f   : > { %5699 = vmatpush3.msra.mxu0 %v6915_v22  ;;  %5700 = vmatprep.mubr.msk.f32.mxu0 %vm494_vm0, %v2726_v58 }
 0xb80   : > { %5914 = vmatprep.subr.msk.bf16.mxu1 %vm7030_vm8, %v5912_v36 }
 0xb81   : > { %5917 = vmatpush3.bf16.xpose.msk.msra.mxu1 %vm7030_vm8, %v5912_v36 }
 0xb82   : > { %5701 = vmatmul.mubr.msk.f32.vlgmr.msra.gmra.mrb[24].mxu0 %vm494_vm0, %v5692_v55  ;;  %5923 = vmatprep.subr.bf16.mxu1 %v6966_v0  ;;  %v3127_v55 = vsel %vm3121_vm1, 1.0, %v6513_v34 }
 0xb83   : > { %5714 = vmatprep.mubr.msk.f32.mxu0 %vm595_vm3, %v7047_v63 }
 0xb88   : > { %5681 = vmatmul.mubr.msk.f32.vlgmr.msra.gmra.mrb[28].mxu1 %vm595_vm3, %v7052_v3 }
 0xb89   : > { %5683 = vmatprep.mubr.msk.f32.mxu1 %vm595_vm3, %v7060_v5  ;;  %5925 = vmatpush3.bf16.msra.mxu1 %v6966_v0 }
 0xb8a   : > { %5933 = vmatprep.subr.bf16.mxu1 %v6913_v21 }
 0xb8c   : > { %5684 = vmatmul.mubr.msk.f32.gmra.mrb[30].mxu1 %vm595_vm3, %v7065_v7 }
 0xbd3   : > { %v7325_v22 = vpop.xlane.xlu0 %4066 }
 0xbd4   : > { %vm4071_vm10 = vcmp.eq.f32.partialorder %v6922_v25, %v7325_v22 }
 0xbd5   : > { %v4073_v8 = vsel %vm4071_vm10, inf, %v4053_v27 }
 0xbd6   : > { %4075 = vst.msk [vmem:[#allocation2] sm:$0xff] %vm595_vm3, %v4073_v8 }
 0xbd7   : > { %v7333_v10 = vpop.xlane.xlu1 %4069 }
 0xbd8   : > { %vm4072_vm11 = vcmp.eq.f32.partialorder %v6922_v25, %v7333_v10 }
 0xbd9   : > { %v4074_v14 = vsel %vm4072_vm11, inf, %v4054_v29 }
 0xbda   : > { %4076 = vst.msk [vmem:[#allocation2 + $0x8] sm:$0xff] %vm595_vm3, %v4074_v14  ;;  %v488_v14 = vld [vmem:[#allocation17] sm:$0xff] }
 0xbdd   : > { %v7341_v16 = vld [vmem:[#allocation2] sm:$0xff] }
 0xbde   : > { %v4530_v18 = vsel %vm595_vm3, %v7341_v16, inf }
 0xbdf   : > { %4531 = vmin.xlane.f32.xlu0 %v4530_v18  ;;  %v490_v18 = vld [vmem:[#allocation17 + $0x10] sm:$0xff] }
 0xbe1   : > { %v7345_v19 = vld [vmem:[#allocation2 + $0x8] sm:$0xff] }
 0xbe2   : > { %v4533_v20 = vsel %vm595_vm3, %v7345_v19, inf }
 0xbe3   : > { %4534 = vmin.xlane.f32.xlu1 %v4533_v20 }
 0xc51   : > { %v5697_v23 = vpop.f32.mrb[22].mxu0 }
 0xc52   : > { %v2807_v11 = vpop.f32.mrb[23].mxu0  ;;  %v2813_v26 = vadd.f32 %v5697_v23, %v6971_v2 }
 0xc53   : > { %v2808_v27 = vadd.f32 %v6971_v2, %v2807_v11 }
 0xc54   : > { %v2819_v15 = vmul.f32 0.2, %v2813_v26  ;;  %vm2817_vm12 = vcmp.ge.f32.partialorder %v2813_v26, 0.0 }
 0xc55   : > { %v5702_v28 = vpop.f32.mrb[24].mxu0  ;;  %v2818_v39 = vmul.f32 0.2, %v2808_v27  ;;  %vm2816_vm13 = vcmp.ge.f32.partialorder %v2808_v27, 0.0 }
 0xc56   : > { %v2898_v29 = vsub.f32 %v5702_v28, %v6938_v43  ;;  %v2888_v12 = vpop.f32.mrb[25].mxu0  ;;  %v2821_v41 = vsel %vm2817_vm12, %v2813_v26, %v2819_v15 }
 0xc57   : > { %v2897_v37 = vsub.f32 %v2888_v12, %v6942_v45  ;;  %v2820_v52 = vsel %vm2816_vm13, %v2808_v27, %v2818_v39 }
 0xc58   : > { %v2900_v38 = vadd.f32 %v6975_v6, %v2898_v29 }
 0xc59   : > { %v2899_v40 = vadd.f32 %v6975_v6, %v2897_v37  ;;  %v3128_v6 = vsel %vm3122_vm2, 1.0, %v6513_v34 }
 0xc5a   : > { %vm2902_vm14 = vcmp.ge.f32.partialorder %v2900_v38, 0.0  ;;  %v2904_v42 = vmul.f32 0.2, %v2900_v38 }
 0xc5b   : > { %vm2901_vm15 = vcmp.ge.f32.partialorder %v2899_v40, 0.0  ;;  %v2903_v51 = vmul.f32 0.2, %v2899_v40  ;;  %v5682_v20 = vpop.f32.mrb[28].mxu1 }
 0xc5c   : > { %v2906_v2 = vsel %vm2902_vm14, %v2900_v38, %v2904_v42  ;;  %v2593_v23 = vpop.f32.mrb[29].mxu1 }
 0xc5d   : > { %v2908_v53 = vadd.f32 %v2906_v2, %v2821_v41  ;;  %v2905_v54 = vsel %vm2901_vm15, %v2899_v40, %v2903_v51 }
 0xc5e   : > { %v2907_v32 = vadd.f32 %v2905_v54, %v2820_v52 }
 0xc5f   : > { %v7379_v11 = vpop.f32.mrb[30].mxu1 }
 0xc60   : > { %5707 = vmatprep.mubr.msk.f32.mxu1 %vm595_vm3, %v2907_v32  ;;  %v2603_v26 = vpop.f32.mrb[31].mxu1 }
 0xc61   : > { %5708 = vmatmul.mubr.msk.f32.vlgmr.msra.gmra.mrb[32].mxu1 %vm595_vm3, %v2908_v53 }
 0xc62   : > { %5935 = vmatpush3.bf16.msra.mxu1 %v6913_v21  ;;  %5724 = vmatprep.mubr.msk.f32.mxu1 %vm595_vm3, %v3127_v55 }
 0xc63   : > { %5727 = vmatprep.subr.mxu1 %v6940_v44 }
 0xc65   : > { %5725 = vmatmul.mubr.msk.f32.vlgmr.msra.gmra.mrb[34].mxu1 %vm595_vm3, %v3128_v6 }
 0xc66   : > { %5728 = vmatpush3.msra.mxu1 %v6940_v44  ;;  %v489_v44 = vld [vmem:[#allocation17 + $0x8] sm:$0xff] }
 0xc67   : > { %5732 = vmatprep.subr.mxu1 %v7370_v56 }
 0xc6c   : > { %v4532_v4 = vpop.xlane.xlu0 %4531 }
 0xc6d   : > { %vm4536_vm1 = vcmp.eq.f32.partialorder %v7341_v16, %v4532_v4 }
 0xc6e   : > { %v4538_v58 = vsel %vm4536_vm1, %v6922_v25, 16.0 }
 0xc6f   : > { %v4540_v59 = vsel %vm595_vm3, %v4538_v58, inf }
 0xc70   : > { %4541 = vmin.xlane.f32.xlu0 %v4540_v59  ;;  %v4535_v36 = vpop.xlane.xlu1 %4534 }
 0xc71   : > { %vm4537_vm4 = vcmp.eq.f32.partialorder %v7345_v19, %v4535_v36 }
 0xc72   : > { %v4539_v9 = vsel %vm4537_vm4, %v6922_v25, 16.0 }
 0xc73   : > { %v4543_v8 = vsel %vm595_vm3, %v4539_v9, inf }
 0xc74   : > { %4544 = vmin.xlane.f32.xlu1 %v4543_v8 }
 0xc85   : > { %1075 = vperm.xlu1 %6138, %v489_v44  }
 0xc86   : > { %1070 = vperm.xlu0 %6137, %v488_v14  }
 0xc89   : > { %1080 = vperm.xlu1 %6138, %v490_v18  }
 0xc8d   : > { %1085 = vperm.xlu1 %6138, %v491_v17  }
 0xcfd   : > { %v7381_v27 = vpop.xlane.xlu0 %4541 }
 0xcfe   : > { %vm4546_vm2 = vcmp.eq.f32.partialorder %v6922_v25, %v7381_v27 }
 0xcff   : > { %v4548_v28 = vsel %vm4546_vm2, inf, %v7341_v16 }
 0xd00   : > { %4550 = vst.msk [vmem:[#allocation2] sm:$0xff] %vm595_vm3, %v4548_v28 }
 0xd01   : > { %v7390_v29 = vpop.xlane.xlu1 %4544 }
 0xd02   : > { %vm7806_vm5 = vcmp.eq.f32.partialorder %v6922_v25, %v7390_v29 }
 0xd03   : > { %v4549_v12 = vsel %vm7806_vm5, inf, %v7345_v19 }
 0xd04   : > { %4551 = vst.msk [vmem:[#allocation2 + $0x8] sm:$0xff] %vm595_vm3, %v4549_v12 }
 0xd05   : > { %v7399_v37 = vpop.permute.xlu0 %1070  ;;  %v7401_v15 = vpop.permute.xlu1 %1075 }
 0xd06   : > { %v1178_v16 = vadd.f32 %v7111_v47, %v7401_v15  ;;  %v1649_v38 = vadd.f32 %v7189_v60, %v7401_v15  ;;  %v2124_v39 = vadd.f32 %v7291_v30, %v7401_v15  ;;  %v2599_v40 = vadd.f32 %v5682_v20, %v7401_v15 }
 0xd07   : > { %v1173_v19 = vadd.f32 %v7113_v48, %v7399_v37  ;;  %v1644_v42 = vadd.f32 %v7191_v61, %v7399_v37  ;;  %v2119_v51 = vadd.f32 %v7293_v31, %v7399_v37  ;;  %v2594_v41 = vadd.f32 %v2593_v23, %v7399_v37 }
 0xd08   : > { %vm1192_vm6 = vcmp.ge.f32.partialorder %v1178_v16, 0.0  ;;  %v1196_v47 = vmul.f32 0.2, %v1178_v16  ;;  %vm1663_vm12 = vcmp.ge.f32.partialorder %v1649_v38, 0.0  ;;  %v1667_v60 = vmul.f32 0.2, %v1649_v38 }
 0xd09   : > { %vm2138_vm13 = vcmp.ge.f32.partialorder %v2124_v39, 0.0  ;;  %v2142_v2 = vmul.f32 0.2, %v2124_v39  ;;  %vm2613_vm14 = vcmp.ge.f32.partialorder %v2599_v40, 0.0  ;;  %v2617_v30 = vmul.f32 0.2, %v2599_v40  ;;  %v7417_v52 = vpop.permute.xlu1 %1080 }
 0xd0a   : > { %v1200_v53 = vsel %vm1192_vm6, %v1178_v16, %v1196_v47  ;;  %v1671_v48 = vsel %vm1663_vm12, %v1649_v38, %v1667_v60  ;;  %vm1191_vm15 = vcmp.ge.f32.partialorder %v1173_v19, 0.0  ;;  %v1195_v54 = vmul.f32 0.2, %v1173_v19 }
 0xd0b   : > { %v1675_v61 = vmax.f32 %v1200_v53, %v1671_v48  ;;  %v2146_v32 = vsel %vm2138_vm13, %v2124_v39, %v2142_v2  ;;  %v7419_v55 = vsel %vm2613_vm14, %v2599_v40, %v2617_v30  ;;  %vm1662_vm1 = vcmp.ge.f32.partialorder %v1644_v42, 0.0 }
 0xd0c   : > { %v1199_v31 = vsel %vm1191_vm15, %v1173_v19, %v1195_v54  ;;  %v1666_v6 = vmul.f32 0.2, %v1644_v42  ;;  %vm2137_vm4 = vcmp.ge.f32.partialorder %v2119_v51, 0.0  ;;  %v2141_v4 = vmul.f32 0.2, %v2119_v51 }
 0xd0d   : > { %v7421_v58 = vmax.f32 %v1675_v61, %v2146_v32  ;;  %vm2612_vm5 = vcmp.ge.f32.partialorder %v2594_v41, 0.0  ;;  %v2616_v59 = vmul.f32 0.2, %v2594_v41  ;;  %v1183_v36 = vadd.f32 %v7117_v50, %v7417_v52  ;;  %v7429_v18 = vpop.permute.xlu1 %1085 }
 0xd0e   : > { %v1670_v9 = vsel %vm1662_vm1, %v1644_v42, %v1666_v6  ;;  %v2145_v8 = vsel %vm2137_vm4, %v2119_v51, %v2141_v4  ;;  %v1654_v44 = vadd.f32 %v7195_v1, %v7417_v52  ;;  %v2129_v14 = vadd.f32 %v7297_v35, %v7417_v52 }
 0xd0f   : > { %v2625_v20 = vmax.f32 %v7421_v58, %v7419_v55  ;;  %v1674_v17 = vmax.f32 %v1199_v31, %v1670_v9  ;;  %v7433_v23 = vsel %vm2612_vm5, %v2594_v41, %v2616_v59  ;;  %vm1193_vm6 = vcmp.ge.f32.partialorder %v1183_v36, 0.0  ;;  %v7514_v55 = vld [vmem:[#allocation6] sm:$0xff] }
 0xd10   : > { %v1197_v28 = vmul.f32 0.2, %v1183_v36  ;;  %vm1664_vm12 = vcmp.ge.f32.partialorder %v1654_v44, 0.0  ;;  %v1668_v50 = vmul.f32 0.2, %v1654_v44  ;;  %vm2139_vm13 = vcmp.ge.f32.partialorder %v2129_v14, 0.0 }
 0xd11   : > { %v7435_v12 = vmax.f32 %v1674_v17, %v2145_v8  ;;  %v2143_v16 = vmul.f32 0.2, %v2129_v14  ;;  %v2604_v1 = vadd.f32 %v2603_v26, %v7417_v52  ;;  %v1188_v35 = vadd.f32 %v7115_v49, %v7429_v18 }
 0xd12   : > { %v1201_v38 = vsel %vm1193_vm6, %v1183_v36, %v1197_v28  ;;  %v1672_v39 = vsel %vm1664_vm12, %v1654_v44, %v1668_v50  ;;  %v1659_v40 = vadd.f32 %v7193_v62, %v7429_v18  ;;  %v2134_v19 = vadd.f32 %v7295_v33, %v7429_v18 }
 0xd13   : > { %v2624_v42 = vmax.f32 %v7435_v12, %v7433_v23  ;;  %v1676_v51 = vmax.f32 %v1201_v38, %v1672_v39  ;;  %v2147_v41 = vsel %vm2139_vm13, %v2129_v14, %v2143_v16  ;;  %vm2614_vm5 = vcmp.ge.f32.partialorder %v2604_v1, 0.0 }
 0xd14   : > { %v2618_v47 = vmul.f32 0.2, %v2604_v1  ;;  %vm1194_vm14 = vcmp.ge.f32.partialorder %v1188_v35, 0.0  ;;  %v1198_v26 = vmul.f32 0.2, %v1188_v35  ;;  %vm1665_vm15 = vcmp.ge.f32.partialorder %v1659_v40, 0.0 }
 0xd15   : > { %v7446_v60 = vmax.f32 %v1676_v51, %v2147_v41  ;;  %v1669_v49 = vmul.f32 0.2, %v1659_v40  ;;  %v2144_v2 = vmul.f32 0.2, %v2134_v19  ;;  %vm2140_vm1 = vcmp.ge.f32.partialorder %v2134_v19, 0.0 }
 0xd16   : > { %v7448_v30 = vsel %vm2614_vm5, %v2604_v1, %v2618_v47  ;;  %v1202_v62 = vsel %vm1194_vm14, %v1188_v35, %v1198_v26  ;;  %v2609_v33 = vadd.f32 %v7379_v11, %v7429_v18  ;;  %v7482_v35 = vld [vmem:[#allocation8] ss:$0 sm:$0xff]  ;;  %v7488_v51 = vld [vmem:[#allocation11] ss:$0 sm:$0xff]  ;;  %v3603_v58 = vsel %vm3597_vm9, 1.0, %v6513_v34 }
 0xd17   : > { %v2626_v53 = vmax.f32 %v7446_v60, %v7448_v30  ;;  %v1673_v48 = vsel %vm1665_vm15, %v1659_v40, %v1669_v49  ;;  %v2148_v32 = vsel %vm2140_vm1, %v2134_v19, %v2144_v2 }
 0xd18   : > { %v1677_v54 = vmax.f32 %v1202_v62, %v1673_v48  ;;  %vm2615_vm4 = vcmp.ge.f32.partialorder %v2609_v33, 0.0  ;;  %v2619_v61 = vmul.f32 0.2, %v2609_v33 }
 0xd1a   : > { %v7454_v31 = vmax.f32 %v1677_v54, %v2148_v32  ;;  %v7456_v6 = vsel %vm2615_vm4, %v2609_v33, %v2619_v61 }
 0xd1c   : > { %v2627_v4 = vmax.f32 %v7454_v31, %v7456_v6 }
 0xd34   : > { %v5709_v59 = vpop.f32.mrb[32].mxu1 }
 0xd35   : > { %v2987_v36 = vadd.f32 %v5709_v59, %v7023_v46  ;;  %v2981_v9 = vpop.f32.mrb[33].mxu1 }
 0xd36   : > { %v2982_v11 = vadd.f32 %v7023_v46, %v2981_v9 }
 0xd37   : > { %vm2991_vm6 = vcmp.ge.f32.partialorder %v2987_v36, 0.0  ;;  %v2993_v8 = vmul.f32 0.2, %v2987_v36 }
 0xd38   : > { %vm2990_vm12 = vcmp.ge.f32.partialorder %v2982_v11, 0.0  ;;  %v2992_v44 = vmul.f32 0.2, %v2982_v11  ;;  %v5726_v14 = vpop.f32.mrb[34].mxu1 }
 0xd39   : > { %v2995_v17 = vsel %vm2991_vm6, %v2987_v36, %v2993_v8  ;;  %v3201_v28 = vpop.f32.mrb[35].mxu1 }
 0xd3a   : > { %v2994_v50 = vsel %vm2990_vm12, %v2982_v11, %v2992_v44  ;;  %5729 = vmatprep.mubr.msk.f32.mxu1 %vm494_vm0, %v3201_v28 }
 0xd3b   : > { %v5926_v16 = vpack.c.bf16 %v2995_v17, %v2994_v50  ;;  %5730 = vmatmul.mubr.msk.f32.vlgmr.msra.gmra.mrb[36].mxu1 %vm494_vm0, %v5726_v14  ;;  %v3602_v50 = vsel %vm3596_vm7, 1.0, %v6513_v34 }
 0xd3c   : > { %5733 = vmatpush3.msra.mxu1 %v7370_v56  ;;  %5734 = vmatprep.mubr.msk.f32.mxu1 %vm494_vm0, %v3201_v28 }
 0xd3d   : > { %5928 = vmatprep.subr.msk.bf16.mxu0 %vm7030_vm8, %v5926_v16 }
 0xd3e   : > { %5931 = vmatpush3.bf16.xpose.msk.msra.mxu0 %vm7030_vm8, %v5926_v16 }
 0xd3f   : > { %5735 = vmatmul.mubr.msk.f32.vlgmr.msra.gmra.mrb[38].mxu1 %vm494_vm0, %v5726_v14  ;;  %5937 = vmatprep.subr.bf16.mxu0 %v6966_v0 }
 0xd40   : > { %5748 = vmatprep.mubr.msk.f32.mxu1 %vm595_vm3, %v7047_v63 }
 0xd45   : > { %5715 = vmatmul.mubr.msk.f32.vlgmr.msra.gmra.mrb[26].mxu0 %vm595_vm3, %v7052_v3 }
 0xd46   : > { %5717 = vmatprep.mubr.msk.f32.mxu0 %vm595_vm3, %v7060_v5  ;;  %5939 = vmatpush3.bf16.msra.mxu0 %v6966_v0 }
 0xd47   : > { %5947 = vmatprep.subr.bf16.mxu0 %v6913_v21 }
 0xd49   : > { %5718 = vmatmul.mubr.msk.f32.gmra.mrb[28].mxu0 %vm595_vm3, %v7065_v7 }
 0xe0e   : > { %v5731_v46 = vpop.f32.mrb[36].mxu1 }
 0xe0f   : > { %v3282_v1 = vpop.f32.mrb[37].mxu1  ;;  %v3288_v38 = vadd.f32 %v7482_v35, %v5731_v46 }
 0xe10   : > { %v3283_v63 = vadd.f32 %v7482_v35, %v3282_v1 }
 0xe11   : > { %v3294_v19 = vmul.f32 0.2, %v3288_v38  ;;  %vm3292_vm13 = vcmp.ge.f32.partialorder %v3288_v38, 0.0 }
 0xe12   : > { %v5736_v39 = vpop.f32.mrb[38].mxu1  ;;  %v3293_v7 = vmul.f32 0.2, %v3283_v63  ;;  %vm3291_vm5 = vcmp.ge.f32.partialorder %v3283_v63, 0.0 }
 0xe13   : > { %v3373_v3 = vsub.f32 %v5736_v39, %v6938_v43  ;;  %v3363_v40 = vpop.f32.mrb[39].mxu1  ;;  %v3296_v62 = vsel %vm3292_vm13, %v3288_v38, %v3294_v19  ;;  %v7534_v39 = vld [vmem:[#allocation14] ss:$0 sm:$0xff] }
 0xe14   : > { %v3372_v5 = vsub.f32 %v3363_v40, %v6942_v45  ;;  %v3295_v61 = vsel %vm3291_vm5, %v3283_v63, %v3293_v7  ;;  %v7552_v7 = vld [vmem:[#allocation15 + $0x8] sm:$0xff] }
 0xe15   : > { %v3375_v41 = vadd.f32 %v7488_v51, %v3373_v3 }
 0xe16   : > { %v3374_v47 = vadd.f32 %v7488_v51, %v3372_v5 }
 0xe17   : > { %vm3377_vm14 = vcmp.ge.f32.partialorder %v3375_v41, 0.0  ;;  %v3379_v26 = vmul.f32 0.2, %v3375_v41 }
 0xe18   : > { %vm3376_vm15 = vcmp.ge.f32.partialorder %v3374_v47, 0.0  ;;  %v3378_v49 = vmul.f32 0.2, %v3374_v47  ;;  %v5716_v2 = vpop.f32.mrb[26].mxu0 }
 0xe19   : > { %v3381_v33 = vsel %vm3377_vm14, %v3375_v41, %v3379_v26  ;;  %v3074_v48 = vadd.f32 %v5716_v2, %v7401_v15  ;;  %v3068_v54 = vpop.f32.mrb[27].mxu0  ;;  %v7548_v41 = vld [vmem:[#allocation15] sm:$0xff]  ;;  %v7562_v26 = vld [vmem:[#allocation15 + $0x18] sm:$0xff] }
 0xe1a   : > { %v3383_v32 = vadd.f32 %v3381_v33, %v3296_v62  ;;  %v3380_v59 = vsel %vm3376_vm15, %v3374_v47, %v3378_v49  ;;  %v3069_v36 = vadd.f32 %v3068_v54, %v7399_v37  ;;  %v7556_v47 = vld [vmem:[#allocation15 + $0x10] sm:$0xff] }
 0xe1b   : > { %vm3088_vm1 = vcmp.ge.f32.partialorder %v3074_v48, 0.0  ;;  %v3092_v9 = vmul.f32 0.2, %v3074_v48  ;;  %v3382_v11 = vadd.f32 %v3380_v59, %v3295_v61 }
 0xe1c   : > { %vm3087_vm4 = vcmp.ge.f32.partialorder %v3069_v36, 0.0  ;;  %v3091_v8 = vmul.f32 0.2, %v3069_v36  ;;  %v5719_v44 = vpop.f32.mrb[28].mxu0 }
 0xe1d   : > { %v3096_v14 = vsel %vm3088_vm1, %v3074_v48, %v3092_v9  ;;  %v3084_v17 = vadd.f32 %v5719_v44, %v7429_v18  ;;  %v3078_v28 = vpop.f32.mrb[29].mxu0  ;;  %5741 = vmatprep.mubr.msk.f32.mxu0 %vm595_vm3, %v3382_v11 }
 0xe1e   : > { %v7503_v16 = vmax.f32 %v2625_v20, %v3096_v14  ;;  %v3095_v46 = vsel %vm3087_vm4, %v3069_v36, %v3091_v8  ;;  %v3079_v1 = vadd.f32 %v3078_v28, %v7417_v52  ;;  %5742 = vmatmul.mubr.msk.f32.vlgmr.msra.gmra.mrb[30].mxu0 %vm595_vm3, %v3383_v32 }
 0xe1f   : > { %v7510_v38 = vmax.f32 %v2624_v42, %v3095_v46  ;;  %vm3090_vm6 = vcmp.ge.f32.partialorder %v3084_v17, 0.0  ;;  %v3094_v63 = vmul.f32 0.2, %v3084_v17  ;;  %5949 = vmatpush3.bf16.msra.mxu0 %v6913_v21  ;;  %5758 = vmatprep.mubr.msk.f32.mxu0 %vm595_vm3, %v3602_v50 }
 0xe20   : > { %vm3089_vm7 = vcmp.ge.f32.partialorder %v3079_v1, 0.0  ;;  %v3093_v24 = vmul.f32 0.2, %v3079_v1  ;;  %5761 = vmatprep.subr.mxu0 %v7514_v55 }
 0xe21   : > { %v3098_v20 = vsel %vm3090_vm6, %v3084_v17, %v3094_v63 }
 0xe22   : > { %v7524_v23 = vmax.f32 %v2627_v4, %v3098_v20  ;;  %v3097_v12 = vsel %vm3089_vm7, %v3079_v1, %v3093_v24  ;;  %5759 = vmatmul.mubr.msk.f32.vlgmr.msra.gmra.mrb[32].mxu0 %vm595_vm3, %v3603_v58 }
 0xe23   : > { %v7530_v42 = vmax.f32 %v2626_v53, %v3097_v12  ;;  %5762 = vmatpush3.msra.mxu0 %v7514_v55 }
 0xe24   : > { %5766 = vmatprep.subr.mxu0 %v7370_v56 }
 0xef1   : > { %v5743_v13 = vpop.f32.mrb[30].mxu0 }
 0xef2   : > { %v3462_v3 = vadd.f32 %v7534_v39, %v5743_v13  ;;  %v3456_v31 = vpop.f32.mrb[31].mxu0 }
 0xef3   : > { %v3457_v6 = vadd.f32 %v7534_v39, %v3456_v31 }
 0xef4   : > { %vm3466_vm9 = vcmp.ge.f32.partialorder %v3462_v3, 0.0  ;;  %v3468_v4 = vmul.f32 0.2, %v3462_v3 }
 0xef5   : > { %vm3465_vm12 = vcmp.ge.f32.partialorder %v3457_v6, 0.0  ;;  %v3467_v40 = vmul.f32 0.2, %v3457_v6  ;;  %v5760_v5 = vpop.f32.mrb[32].mxu0 }
 0xef6   : > { %v3470_v60 = vsel %vm3466_vm9, %v3462_v3, %v3468_v4  ;;  %v3676_v30 = vpop.f32.mrb[33].mxu0 }
 0xef7   : > { %v3469_v53 = vsel %vm3465_vm12, %v3457_v6, %v3467_v40  ;;  %5763 = vmatprep.mubr.msk.f32.mxu0 %vm494_vm0, %v3676_v30  ;;  %v4077_v40 = vsel %vm4071_vm10, 1.0, %v6513_v34 }
 0xef8   : > { %v5940_v19 = vpack.c.bf16 %v3470_v60, %v3469_v53  ;;  %5764 = vmatmul.mubr.msk.f32.vlgmr.msra.gmra.mrb[34].mxu0 %vm494_vm0, %v5760_v5 }
 0xef9   : > { %5767 = vmatpush3.msra.mxu0 %v7370_v56  ;;  %5768 = vmatprep.mubr.msk.f32.mxu0 %vm494_vm0, %v3676_v30 }
 0xefa   : > { %5942 = vmatprep.subr.msk.bf16.mxu1 %vm7030_vm8, %v5940_v19 }
 0xefb   : > { %5945 = vmatpush3.bf16.xpose.msk.msra.mxu1 %vm7030_vm8, %v5940_v19 }
 0xefc   : > { %5769 = vmatmul.mubr.msk.f32.vlgmr.msra.gmra.mrb[36].mxu0 %vm494_vm0, %v5760_v5  ;;  %5951 = vmatprep.subr.bf16.mxu1 %v6966_v0 }
 0xefd   : > { %5782 = vmatprep.mubr.msk.f32.mxu0 %vm595_vm3, %v7548_v41 }
 0xf02   : > { %5749 = vmatmul.mubr.msk.f32.vlgmr.msra.gmra.mrb[40].mxu1 %vm595_vm3, %v7552_v7 }
 0xf03   : > { %5751 = vmatprep.mubr.msk.f32.mxu1 %vm595_vm3, %v7556_v47  ;;  %5953 = vmatpush3.bf16.msra.mxu1 %v6966_v0 }
 0xf04   : > { %5961 = vmatprep.subr.bf16.mxu1 %v6913_v21 }
 0xf06   : > { %5752 = vmatmul.mubr.msk.f32.gmra.mrb[42].mxu1 %vm595_vm3, %v7562_v26 }
 0xfcb   : > { %v5765_v49 = vpop.f32.mrb[34].mxu0 }
 0xfcc   : > { %v3757_v2 = vpop.f32.mrb[35].mxu0  ;;  %v3763_v62 = vadd.f32 %v7482_v35, %v5765_v49  ;;  %v4078_v49 = vsel %vm4072_vm11, 1.0, %v6513_v34 }
 0xfcd   : > { %v3758_v33 = vadd.f32 %v7482_v35, %v3757_v2 }
 0xfce   : > { %v3769_v59 = vmul.f32 0.2, %v3763_v62  ;;  %vm3767_vm13 = vcmp.ge.f32.partialorder %v3763_v62, 0.0 }
 0xfcf   : > { %v5770_v48 = vpop.f32.mrb[36].mxu0  ;;  %v3768_v9 = vmul.f32 0.2, %v3758_v33  ;;  %vm3766_vm5 = vcmp.ge.f32.partialorder %v3758_v33, 0.0 }
 0xfd0   : > { %v3848_v54 = vsub.f32 %v5770_v48, %v6938_v43  ;;  %v3838_v61 = vpop.f32.mrb[37].mxu0  ;;  %v3771_v17 = vsel %vm3767_vm13, %v3763_v62, %v3769_v59 }
 0xfd1   : > { %v3847_v32 = vsub.f32 %v3838_v61, %v6942_v45  ;;  %v3770_v1 = vsel %vm3766_vm5, %v3758_v33, %v3768_v9 }
 0xfd2   : > { %v3850_v36 = vadd.f32 %v7488_v51, %v3848_v54 }
 0xfd3   : > { %v3849_v11 = vadd.f32 %v7488_v51, %v3847_v32 }
 0xfd4   : > { %vm3852_vm14 = vcmp.ge.f32.partialorder %v3850_v36, 0.0  ;;  %v3854_v8 = vmul.f32 0.2, %v3850_v36 }
 0xfd5   : > { %vm3851_vm15 = vcmp.ge.f32.partialorder %v3849_v11, 0.0  ;;  %v3853_v44 = vmul.f32 0.2, %v3849_v11  ;;  %v5750_v14 = vpop.f32.mrb[40].mxu1 }
 0xfd6   : > { %v3856_v28 = vsel %vm3852_vm14, %v3850_v36, %v3854_v8  ;;  %v3549_v50 = vadd.f32 %v5750_v14, %v7401_v15  ;;  %v3543_v46 = vpop.f32.mrb[41].mxu1 }
 0xfd7   : > { %v3858_v63 = vadd.f32 %v3856_v28, %v3771_v17  ;;  %v3855_v24 = vsel %vm3851_vm15, %v3849_v11, %v3853_v44  ;;  %v3544_v58 = vadd.f32 %v3543_v46, %v7399_v37 }
 0xfd8   : > { %vm3563_vm1 = vcmp.ge.f32.partialorder %v3549_v50, 0.0  ;;  %v3567_v20 = vmul.f32 0.2, %v3549_v50  ;;  %v3857_v12 = vadd.f32 %v3855_v24, %v3770_v1 }
 0xfd9   : > { %vm3562_vm4 = vcmp.ge.f32.partialorder %v3544_v58, 0.0  ;;  %v3566_v13 = vmul.f32 0.2, %v3544_v58  ;;  %v5753_v3 = vpop.f32.mrb[42].mxu1 }
 0xfda   : > { %v7574_v31 = vsel %vm3563_vm1, %v3549_v50, %v3567_v20  ;;  %v3559_v6 = vadd.f32 %v5753_v3, %v7429_v18  ;;  %v3553_v4 = vpop.f32.mrb[43].mxu1  ;;  %5775 = vmatprep.mubr.msk.f32.mxu1 %vm595_vm3, %v3857_v12 }
 0xfdb   : > { %v3575_v5 = vmax.f32 %v7503_v16, %v7574_v31  ;;  %v7584_v60 = vsel %vm3562_vm4, %v3544_v58, %v3566_v13  ;;  %v3554_v30 = vadd.f32 %v3553_v4, %v7417_v52  ;;  %5776 = vmatmul.mubr.msk.f32.vlgmr.msra.gmra.mrb[44].mxu1 %vm595_vm3, %v3858_v63  ;;  %vm7830_vm4 = vcmp.eq.f32.partialorder %v6922_v25, %v7390_v29 }
 0xfdc   : > { %v3574_v53 = vmax.f32 %v7510_v38, %v7584_v60  ;;  %vm3565_vm6 = vcmp.ge.f32.partialorder %v3559_v6, 0.0  ;;  %v3569_v19 = vmul.f32 0.2, %v3559_v6  ;;  %5963 = vmatpush3.bf16.msra.mxu1 %v6913_v21  ;;  %5792 = vmatprep.mubr.msk.f32.mxu1 %vm595_vm3, %v4077_v40  ;;  %v4553_v16 = vsel %vm7830_vm4, 1.0, %v6513_v34 }
 0xfdd   : > { %vm3564_vm7 = vcmp.ge.f32.partialorder %v3554_v30, 0.0  ;;  %v3568_v22 = vmul.f32 0.2, %v3554_v30  ;;  %5795 = vmatprep.subr.mxu1 %v7514_v55 }
 0xfde   : > { %v7597_v2 = vsel %vm3565_vm6, %v3559_v6, %v3569_v19 }
 0xfdf   : > { %v3577_v62 = vmax.f32 %v7524_v23, %v7597_v2  ;;  %v7601_v33 = vsel %vm3564_vm7, %v3554_v30, %v3568_v22  ;;  %5793 = vmatmul.mubr.msk.f32.vlgmr.msra.gmra.mrb[46].mxu1 %vm595_vm3, %v4078_v49 }
 0xfe0   : > { %v3576_v48 = vmax.f32 %v7530_v42, %v7601_v33  ;;  %5796 = vmatpush3.msra.mxu1 %v7514_v55 }
 0xfe1   : > { %5800 = vmatprep.subr.mxu1 %v7370_v56 }
0x10ae   : > { %v5777_v54 = vpop.f32.mrb[44].mxu1 }
0x10af   : > { %v3937_v10 = vadd.f32 %v7534_v39, %v5777_v54  ;;  %v3931_v61 = vpop.f32.mrb[45].mxu1 }
0x10b0   : > { %v3932_v32 = vadd.f32 %v7534_v39, %v3931_v61 }
0x10b1   : > { %vm3941_vm10 = vcmp.ge.f32.partialorder %v3937_v10, 0.0  ;;  %v3943_v59 = vmul.f32 0.2, %v3937_v10 }
0x10b2   : > { %vm3940_vm11 = vcmp.ge.f32.partialorder %v3932_v32, 0.0  ;;  %v3942_v36 = vmul.f32 0.2, %v3932_v32  ;;  %v5794_v9 = vpop.f32.mrb[46].mxu1 }
0x10b3   : > { %v3945_v11 = vsel %vm3941_vm10, %v3937_v10, %v3943_v59  ;;  %v4151_v8 = vpop.f32.mrb[47].mxu1 }
0x10b4   : > { %v3944_v44 = vsel %vm3940_vm11, %v3932_v32, %v3942_v36  ;;  %5797 = vmatprep.mubr.msk.f32.mxu1 %vm494_vm0, %v4151_v8 }
0x10b5   : > { %v5954_v14 = vpack.c.bf16 %v3945_v11, %v3944_v44  ;;  %5798 = vmatmul.mubr.msk.f32.vlgmr.msra.gmra.mrb[48].mxu1 %vm494_vm0, %v5794_v9 }
0x10b6   : > { %5801 = vmatpush3.msra.mxu1 %v7370_v56  ;;  %5802 = vmatprep.mubr.msk.f32.mxu1 %vm494_vm0, %v4151_v8 }
0x10b7   : > { %5956 = vmatprep.subr.msk.bf16.mxu0 %vm7030_vm8, %v5954_v14 }
0x10b8   : > { %5959 = vmatpush3.bf16.xpose.msk.msra.mxu0 %vm7030_vm8, %v5954_v14 }
0x10b9   : > { %5803 = vmatmul.mubr.msk.f32.vlgmr.msra.gmra.mrb[50].mxu1 %vm494_vm0, %v5794_v9  ;;  %5965 = vmatprep.subr.bf16.mxu0 %v6966_v0 }
0x10ba   : > { %5816 = vmatprep.mubr.msk.f32.mxu1 %vm595_vm3, %v7548_v41 }
0x10bf   : > { %5783 = vmatmul.mubr.msk.f32.vlgmr.msra.gmra.mrb[38].mxu0 %vm595_vm3, %v7552_v7 }
0x10c0   : > { %5785 = vmatprep.mubr.msk.f32.mxu0 %vm595_vm3, %v7556_v47  ;;  %5967 = vmatpush3.bf16.msra.mxu0 %v6966_v0 }
0x10c1   : > { %5975 = vmatprep.subr.bf16.mxu0 %v6913_v21 }
0x10c3   : > { %5786 = vmatmul.mubr.msk.f32.gmra.mrb[40].mxu0 %vm595_vm3, %v7562_v26 }
0x1188   : > { %v5799_v17 = vpop.f32.mrb[48].mxu1 }
0x1189   : > { %v4232_v28 = vpop.f32.mrb[49].mxu1  ;;  %v4238_v50 = vadd.f32 %v7482_v35, %v5799_v17  ;;  %v4552_v17 = vsel %vm4546_vm2, 1.0, %v6513_v34 }
0x118a   : > { %v4233_v46 = vadd.f32 %v7482_v35, %v4232_v28 }
0x118b   : > { %v4244_v20 = vmul.f32 0.2, %v4238_v50  ;;  %vm4242_vm9 = vcmp.ge.f32.partialorder %v4238_v50, 0.0 }
0x118c   : > { %v5804_v1 = vpop.f32.mrb[50].mxu1  ;;  %v4243_v13 = vmul.f32 0.2, %v4233_v46  ;;  %vm4241_vm12 = vcmp.ge.f32.partialorder %v4233_v46, 0.0 }
0x118d   : > { %v4323_v63 = vsub.f32 %v5804_v1, %v6938_v43  ;;  %v4313_v24 = vpop.f32.mrb[51].mxu1  ;;  %v4246_v30 = vsel %vm4242_vm9, %v4238_v50, %v4244_v20 }
0x118e   : > { %v4322_v58 = vsub.f32 %v4313_v24, %v6942_v45  ;;  %v4245_v54 = vsel %vm4241_vm12, %v4233_v46, %v4243_v13 }
0x118f   : > { %v4325_v12 = vadd.f32 %v7488_v51, %v4323_v63 }
0x1190   : > { %v4324_v3 = vadd.f32 %v7488_v51, %v4322_v58 }
0x1191   : > { %vm4327_vm13 = vcmp.ge.f32.partialorder %v4325_v12, 0.0  ;;  %v4329_v6 = vmul.f32 0.2, %v4325_v12 }
0x1192   : > { %vm4326_vm5 = vcmp.ge.f32.partialorder %v4324_v3, 0.0  ;;  %v4328_v4 = vmul.f32 0.2, %v4324_v3  ;;  %v5784_v40 = vpop.f32.mrb[38].mxu0 }
0x1193   : > { %v4331_v19 = vsel %vm4327_vm13, %v4325_v12, %v4329_v6  ;;  %v4024_v22 = vadd.f32 %v5784_v40, %v7401_v15  ;;  %v4018_v49 = vpop.f32.mrb[39].mxu0 }
0x1194   : > { %v4333_v10 = vadd.f32 %v4331_v19, %v4246_v30  ;;  %v4330_v61 = vsel %vm4326_vm5, %v4324_v3, %v4328_v4  ;;  %v4019_v32 = vadd.f32 %v4018_v49, %v7399_v37 }
0x1195   : > { %vm4038_vm14 = vcmp.ge.f32.partialorder %v4024_v22, 0.0  ;;  %v4042_v59 = vmul.f32 0.2, %v4024_v22  ;;  %v4332_v36 = vadd.f32 %v4330_v61, %v4245_v54 }
0x1196   : > { %vm4037_vm15 = vcmp.ge.f32.partialorder %v4019_v32, 0.0  ;;  %v4041_v9 = vmul.f32 0.2, %v4019_v32  ;;  %v5787_v11 = vpop.f32.mrb[40].mxu0 }
0x1197   : > { %v4046_v8 = vsel %vm4038_vm14, %v4024_v22, %v4042_v59  ;;  %v4034_v44 = vadd.f32 %v5787_v11, %v7429_v18  ;;  %v4028_v14 = vpop.f32.mrb[41].mxu0  ;;  %5809 = vmatprep.mubr.msk.f32.mxu0 %vm595_vm3, %v4332_v36 }
0x1198   : > { %v7647_v28 = vmax.f32 %v3575_v5, %v4046_v8  ;;  %v4045_v50 = vsel %vm4037_vm15, %v4019_v32, %v4041_v9  ;;  %v4029_v46 = vadd.f32 %v4028_v14, %v7417_v52  ;;  %5810 = vmatmul.mubr.msk.f32.vlgmr.msra.gmra.mrb[42].mxu0 %vm595_vm3, %v4333_v10 }
0x1199   : > { %v7654_v1 = vmax.f32 %v3574_v53, %v4045_v50  ;;  %vm4040_vm1 = vcmp.ge.f32.partialorder %v4034_v44, 0.0  ;;  %v4044_v63 = vmul.f32 0.2, %v4034_v44  ;;  %5977 = vmatpush3.bf16.msra.mxu0 %v6913_v21  ;;  %5826 = vmatprep.mubr.msk.f32.mxu0 %vm595_vm3, %v4552_v17 }
0x119a   : > { %vm4039_vm2 = vcmp.ge.f32.partialorder %v4029_v46, 0.0  ;;  %v4043_v27 = vmul.f32 0.2, %v4029_v46  ;;  %5829 = vmatprep.subr.mxu0 %v7514_v55 }
0x119b   : > { %v4048_v31 = vsel %vm4040_vm1, %v4034_v44, %v4044_v63 }
0x119c   : > { %v7666_v38 = vmax.f32 %v3577_v62, %v4048_v31  ;;  %v4047_v5 = vsel %vm4039_vm2, %v4029_v46, %v4043_v27  ;;  %5827 = vmatmul.mubr.msk.f32.vlgmr.msra.gmra.mrb[44].mxu0 %vm595_vm3, %v4553_v16 }
0x119d   : > { %v7672_v21 = vmax.f32 %v3576_v48, %v4047_v5  ;;  %5830 = vmatpush3.msra.mxu0 %v7514_v55 }
0x119e   : > { %5834 = vmatprep.subr.mxu0 %v7370_v56 }
0x126b   : > { %v5811_v25 = vpop.f32.mrb[42].mxu0 }
0x126c   : > { %v4412_v34 = vadd.f32 %v7534_v39, %v5811_v25  ;;  %v4406_v29 = vpop.f32.mrb[43].mxu0 }
0x126d   : > { %v4407_v23 = vadd.f32 %v7534_v39, %v4406_v29 }
0x126e   : > { %vm4416_vm6 = vcmp.ge.f32.partialorder %v4412_v34, 0.0  ;;  %v4418_v60 = vmul.f32 0.2, %v4412_v34 }
0x126f   : > { %vm4415_vm7 = vcmp.ge.f32.partialorder %v4407_v23, 0.0  ;;  %v4417_v53 = vmul.f32 0.2, %v4407_v23  ;;  %v5828_v2 = vpop.f32.mrb[44].mxu0 }
0x1270   : > { %v4420_v62 = vsel %vm4416_vm6, %v4412_v34, %v4418_v60  ;;  %v4626_v24 = vpop.f32.mrb[45].mxu0 }
0x1271   : > { %v4419_v42 = vsel %vm4415_vm7, %v4407_v23, %v4417_v53  ;;  %5831 = vmatprep.mubr.msk.f32.mxu0 %vm494_vm0, %v4626_v24 }
0x1272   : > { %v5968_v33 = vpack.c.bf16 %v4420_v62, %v4419_v42  ;;  %5832 = vmatmul.mubr.msk.f32.vlgmr.msra.gmra.mrb[46].mxu0 %vm494_vm0, %v5828_v2 }
0x1273   : > { %5835 = vmatpush3.msra.mxu0 %v7370_v56  ;;  %5836 = vmatprep.mubr.msk.f32.mxu0 %vm494_vm0, %v4626_v24 }
0x1274   : > { %5970 = vmatprep.subr.msk.bf16.mxu1 %vm7030_vm8, %v5968_v33 }
0x1275   : > { %5973 = vmatpush3.bf16.xpose.msk.msra.mxu1 %vm7030_vm8, %v5968_v33 }
0x1276   : > { %5837 = vmatmul.mubr.msk.f32.vlgmr.msra.gmra.mrb[48].mxu0 %vm494_vm0, %v5828_v2  ;;  %5979 = vmatprep.subr.bf16.mxu1 %v6966_v0 }
0x1277   : > { %5850 = vmatprep.mubr.msk.f32.mxu0 %vm595_vm3, %v7548_v41 }
0x127c   : > { %5817 = vmatmul.mubr.msk.f32.vlgmr.msra.gmra.mrb[52].mxu1 %vm595_vm3, %v7552_v7 }
0x127d   : > { %5819 = vmatprep.mubr.msk.f32.mxu1 %vm595_vm3, %v7556_v47  ;;  %5981 = vmatpush3.bf16.msra.mxu1 %v6966_v0 }
0x1280   : > { %5820 = vmatmul.mubr.msk.f32.gmra.mrb[54].mxu1 %vm595_vm3, %v7562_v26 }
0x1345   : > { %v5833_v56 = vpop.f32.mrb[46].mxu0 }
0x1346   : > { %v4707_v55 = vpop.f32.mrb[47].mxu0  ;;  %v4713_v48 = vadd.f32 %v7482_v35, %v5833_v56 }
0x1347   : > { %v4708_v58 = vadd.f32 %v7482_v35, %v4707_v55 }
0x1348   : > { %v4719_v3 = vmul.f32 0.2, %v4713_v48  ;;  %vm4717_vm0 = vcmp.ge.f32.partialorder %v4713_v48, 0.0 }
0x1349   : > { %v5838_v20 = vpop.f32.mrb[48].mxu0  ;;  %v4718_v0 = vmul.f32 0.2, %v4708_v58  ;;  %vm4716_vm10 = vcmp.ge.f32.partialorder %v4708_v58, 0.0 }
0x134a   : > { %v4798_v41 = vsub.f32 %v5838_v20, %v6938_v43  ;;  %v4788_v12 = vpop.f32.mrb[49].mxu0  ;;  %v4721_v35 = vsel %vm4717_vm0, %v4713_v48, %v4719_v3 }
0x134b   : > { %v4797_v13 = vsub.f32 %v4788_v12, %v6942_v45  ;;  %v4720_v54 = vsel %vm4716_vm10, %v4708_v58, %v4718_v0 }
0x134c   : > { %v4800_v6 = vadd.f32 %v7488_v51, %v4798_v41 }
0x134d   : > { %v4799_v4 = vadd.f32 %v7488_v51, %v4797_v13 }
0x134e   : > { %vm4802_vm11 = vcmp.ge.f32.partialorder %v4800_v6, 0.0  ;;  %v4804_v40 = vmul.f32 0.2, %v4800_v6 }
0x134f   : > { %vm4801_vm9 = vcmp.ge.f32.partialorder %v4799_v4, 0.0  ;;  %v4803_v30 = vmul.f32 0.2, %v4799_v4  ;;  %v5818_v19 = vpop.f32.mrb[52].mxu1 }
0x1350   : > { %v4806_v22 = vsel %vm4802_vm11, %v4800_v6, %v4804_v40  ;;  %v4499_v43 = vadd.f32 %v5818_v19, %v7401_v15  ;;  %v4493_v49 = vpop.f32.mrb[53].mxu1 }
0x1351   : > { %v4808_v45 = vadd.f32 %v4806_v22, %v4721_v35  ;;  %v4805_v10 = vsel %vm4801_vm9, %v4799_v4, %v4803_v30  ;;  %v4494_v61 = vadd.f32 %v4493_v49, %v7399_v37 }
0x1352   : > { %vm4513_vm12 = vcmp.ge.f32.partialorder %v4499_v43, 0.0  ;;  %v4517_v32 = vmul.f32 0.2, %v4499_v43  ;;  %v4807_v59 = vadd.f32 %v4805_v10, %v4720_v54 }
0x1353   : > { %vm4512_vm13 = vcmp.ge.f32.partialorder %v4494_v61, 0.0  ;;  %v4516_v51 = vmul.f32 0.2, %v4494_v61  ;;  %v5821_v36 = vpop.f32.mrb[54].mxu1 }
0x1354   : > { %v4521_v9 = vsel %vm4513_vm12, %v4499_v43, %v4517_v32  ;;  %v4509_v11 = vadd.f32 %v5821_v36, %v7429_v18  ;;  %v4503_v8 = vpop.f32.mrb[55].mxu1  ;;  %5843 = vmatprep.mubr.msk.f32.mxu1 %vm595_vm3, %v4807_v59 }
0x1355   : > { %v4525_v44 = vmax.f32 %v7647_v28, %v4521_v9  ;;  %v4520_v14 = vsel %vm4512_vm13, %v4494_v61, %v4516_v51  ;;  %v4504_v17 = vadd.f32 %v4503_v8, %v7417_v52  ;;  %5844 = vmatmul.mubr.msk.f32.vlgmr.msra.gmra.mrb[56].mxu1 %vm595_vm3, %v4808_v45 }
0x1356   : > { %v4524_v50 = vmax.f32 %v7654_v1, %v4520_v14  ;;  %vm4515_vm5 = vcmp.ge.f32.partialorder %v4509_v11, 0.0  ;;  %v4519_v46 = vmul.f32 0.2, %v4509_v11 }
0x1357   : > { %vm4514_vm14 = vcmp.ge.f32.partialorder %v4504_v17, 0.0  ;;  %v4518_v63 = vmul.f32 0.2, %v4504_v17 }
0x1358   : > { %v4523_v27 = vsel %vm4515_vm5, %v4509_v11, %v4519_v46 }
0x1359   : > { %v4527_v16 = vmax.f32 %v7666_v38, %v4523_v27  ;;  %v4522_v31 = vsel %vm4514_vm14, %v4504_v17, %v4518_v63 }
0x135a   : > { %v4526_v5 = vmax.f32 %v7672_v21, %v4522_v31 }
0x1428   : > { %v5845_v25 = vpop.f32.mrb[56].mxu1 }
0x1429   : > { %v4887_v28 = vadd.f32 %v7534_v39, %v5845_v25  ;;  %v4881_v34 = vpop.f32.mrb[57].mxu1 }
0x142a   : > { %v4882_v29 = vadd.f32 %v7534_v39, %v4881_v34 }
0x142b   : > { %vm4891_vm15 = vcmp.ge.f32.partialorder %v4887_v28, 0.0  ;;  %v4893_v23 = vmul.f32 0.2, %v4887_v28 }
0x142c   : > { %vm4890_vm1 = vcmp.ge.f32.partialorder %v4882_v29, 0.0  ;;  %v4892_v1 = vmul.f32 0.2, %v4882_v29 }
0x142d   : > { %v4895_v60 = vsel %vm4891_vm15, %v4887_v28, %v4893_v23 }
0x142e   : > { %v4894_v53 = vsel %vm4890_vm1, %v4882_v29, %v4892_v1 }
0x142f   : > { %v5982_v2 = vpack.c.bf16 %v4895_v60, %v4894_v53 }
0x1431   : > { %5984 = vmatprep.subr.msk.bf16.mxu0 %vm7030_vm8, %v5982_v2 }
0x1432   : > { %5987 = vmatpush3.bf16.xpose.msk.msra.mxu0 %vm7030_vm8, %v5982_v2 }
0x1439   : > { %5851 = vmatmul.mubr.msk.f32.vlgmr.msra.gmra.mrb[50].mxu0 %vm595_vm3, %v7552_v7 }
0x143a   : > { %5853 = vmatprep.mubr.msk.f32.mxu0 %vm595_vm3, %v7556_v47 }
0x143d   : > { %5854 = vmatmul.mubr.msk.f32.gmra.mrb[52].mxu0 %vm595_vm3, %v7562_v26 }
0x150c   : > { %v5852_v39 = vpop.f32.mrb[50].mxu0 }
0x150d   : > { %v4974_v38 = vadd.f32 %v5852_v39, %v7401_v15  ;;  %v4968_v21 = vpop.f32.mrb[51].mxu0 }
0x150e   : > { %v4969_v62 = vadd.f32 %v4968_v21, %v7399_v37 }
0x150f   : > { %vm4988_vm2 = vcmp.ge.f32.partialorder %v4974_v38, 0.0  ;;  %v4992_v57 = vmul.f32 0.2, %v4974_v38 }
0x1510   : > { %vm4987_vm8 = vcmp.ge.f32.partialorder %v4969_v62, 0.0  ;;  %v4991_v24 = vmul.f32 0.2, %v4969_v62  ;;  %v5855_v42 = vpop.f32.mrb[52].mxu0 }
0x1511   : > { %v4996_v7 = vsel %vm4988_vm2, %v4974_v38, %v4992_v57  ;;  %v4984_v33 = vadd.f32 %v5855_v42, %v7429_v18  ;;  %v4978_v47 = vpop.f32.mrb[53].mxu0 }
0x1512   : > { %v5000_v56 = vmax.f32 %v4525_v44, %v4996_v7  ;;  %v4995_v55 = vsel %vm4987_vm8, %v4969_v62, %v4991_v24  ;;  %v4979_v26 = vadd.f32 %v4978_v47, %v7417_v52 }
0x1513   : > { %v4999_v48 = vmax.f32 %v4524_v50, %v4995_v55  ;;  %vm4990_vm4 = vcmp.ge.f32.partialorder %v4984_v33, 0.0  ;;  %v4994_v15 = vmul.f32 0.2, %v4984_v33 }
0x1514   : > { %5004 = vst.msk [vmem:[%s470_s12 + $0x8] sm:$0xff] %vm595_vm3, %v5000_v56  ;;  %vm4989_vm6 = vcmp.ge.f32.partialorder %v4979_v26, 0.0  ;;  %v4993_v37 = vmul.f32 0.2, %v4979_v26 }
0x1515   : > { %5003 = vst.msk [vmem:[%s470_s12] sm:$0xff] %vm595_vm3, %v4999_v48  ;;  %v4998_v18 = vsel %vm4990_vm4, %v4984_v33, %v4994_v15 }
0x1516   : > { %v5002_v58 = vmax.f32 %v4527_v16, %v4998_v18  ;;  %v4997_v20 = vsel %vm4989_vm6, %v4979_v26, %v4993_v37 }
0x1517   : > { %v5001_v52 = vmax.f32 %v4526_v5, %v4997_v20 }
0x1518   : > { %5006 = vst.msk [vmem:[%s470_s12 + $0x18] sm:$0xff] %vm595_vm3, %v5002_v58 }
0x1519   : > { %5005 = vst.msk [vmem:[%s470_s12 + $0x10] sm:$0xff] %vm595_vm3, %v5001_v52 }
0x151a   : > { %6415 = shalt.err (!%p6412_p8)
}
0x151b   : > { %s6416_s16 = scalar_lea.hbm %s7736_s21, 512  ;;  %s6420_s12 = scalar_lea.hbm %s7832_s1, 1024 }
0x151c   : > { %p6417_p9 = scmp.ne.s32.totalorder %s7736_s21, %s6416_s16  ;;  %p6421_p3 = scmp.lt.u32.totalorder %s7736_s21, %s7832_s1 }
0x151d   : > { %p6422_p7 = scmp.lt.u32.totalorder %s6420_s12, %s6416_s16  ;;  %p6424_p11 = scmp.lt.u32.totalorder %s6416_s16, %s7736_s21 }
0x151e   : > { %p6418_p4 = pnand %p6417_p9, %p7833_p0 }
0x151f   : > { %p6423_p12 = por %p6422_p7, %p6421_p3 }
0x1520   : > { %p6419_p6 = pneg %p6418_p4 }
0x1521   : > { %p6425_p5 = por %p6424_p11, %p6423_p12 }
0x1523   : > { %p6426_p1 = pnand %p6425_p5, %p6419_p6 }
0x1525   : > { %6429 = shalt.err (!%p6426_p1)
}
0x1526   : > { %s6516_s17 = smov 128   ;;  %s6517_s22 = smov 8  }
0x1527   : > { %6022 = dma.vmem_to_hbm [thread:$0]  (%p7833_p0), %s7738_s3, 512, %s7736_s21, %s5008_s27, %s6516_s17, %s6516_s17, %s6517_s22  }
0x1528 PF: > { %s5037_s29 = sand.u32 1, %s6480_s30   ;;  %p7834_p10 = scmp.ne.s32.totalorder %s7823_s28, 0 }
0x1529   : > { %p7835_p13 = scmp.ge.s32.totalorder %s6500_s14, 2  ;;  %s5038_s23 = scalar_lea.sflag [#allocation5], %s5037_s29 }
0x152b   : > { %p6054_p2 = pnand %p7835_p13, %p7834_p10 }
0x152d   : > { %6475 = dma.done.wait (!%p6054_p2), %s5038_s23, 512  }
0x152e   : > { %6477 = vsyncadd (!%p6054_p2), %s5038_s23, 4294966784  ;;  %s29_s14 = sadd.s32 1, %s6500_s14   ;;  %s7836_s30 = smov %s6484_s10 }
0x152f   : > { %p26_p8 = scmp.ge.s32.totalorder %s29_s14, 4   ;;  %s7837_s10 = smov %s6488_s11 }
0x1530   : > { %s7838_s11 = smov %s6822_s26  ;;  %s7839_s12 = smov %s6496_s13 }
0x1531   : > { %s7840_s13 = smov %s7842_s18  ;;  %28 = sbr.rel (!%p26_p8) target bundleno = 14 (0xe), region = 134 }
0x1538   :  { %5043 = vsyncpa [#allocation4], 1 }
0x1539   :  { %5045 = vsyncpa [#allocation4 + $0x1], 1 }
0x153a   :  { %5046 = vsyncpa [#allocation7], 1 }
0x153b   :  { %5047 = vsyncpa [#allocation10], 1 }
0x153c   :  { %5048 = vsyncpa [#allocation13], 1 }
0x153d   :  { %5049 = vsyncpa [#allocation16], 1 }
0x153e   :  { %5050 = vsyncpa [#allocation5], 1 }
0x153f   :  { %5052 = vsyncpa [#allocation5 + $0x1], 1 }

</bundles_post_ra>
